<compile_context>
chip_gen: v7x
topology: tpu7x:2x2x1
jax: 0.10.0
libtpu: 0.0.40
codegen_flags: <defaults>
</compile_context>

<pallas_src>
import math

import numpy as np
import jax
import jax.numpy as jnp
from jax.experimental import pallas as pl
from jax.experimental.pallas import tpu as pltpu


# ----------------------------------------------------------------------------
# small helpers
# ----------------------------------------------------------------------------
def _round_up(x, m):
    return (x + m - 1) // m * m


def _row(v):
    return jnp.asarray(v, jnp.float32).reshape(1, -1)


def _pack_alphas(vals):
    v = jnp.stack([jnp.asarray(a, jnp.float32) for a in vals])
    return jnp.pad(v, (0, 8 - v.shape[0])).reshape(1, 8)


def _bcast_spec(arr):
    """Full-array block, re-used (broadcast) at every grid step."""
    zeros = (0,) * arr.ndim
    return pl.BlockSpec(arr.shape, lambda i: zeros)


def _bn_fold(bn, eps=1e-5):
    s = bn["gamma"] * jax.lax.rsqrt(bn["var"] + eps)
    t = bn["beta"] - bn["mean"] * s
    return s, t


# ----------------------------------------------------------------------------
# Kernel 1: fused spectral chain  (conv1 -> res1 -> res2 -> conv2)
# ----------------------------------------------------------------------------
def _spectral_kernel(x_ref, m1, c1,
                     ma1, ba1, sa1, ta1, mb1, cb1,
                     ma2, ba2, sa2, ta2, mb2, cb2,
                     m2, c2, al, o_ref):
    a = al[...]                                     # (1, 8) PReLU slopes

    def prelu(v, alpha):                            # alpha: (1, 1)
        return jnp.where(v > 0, v, alpha * v)

    def dotw(u, w_ref):                             # bf16 MXU matmul, f32 acc
        w = w_ref[...]
        return jnp.dot(u.astype(w.dtype), w, preferred_element_type=jnp.float32)

    # conv1 (1,1,7)/(1,1,2) + BN1 (folded) + PReLU, one matmul vs the strided band matrix
    h = prelu(dotw(x_ref[...], m1) + c1[...], a[:, 0:1])

    def res_block(h, ma, ba, sa, ta, mb, cb, a_c, a_p):
        y = dotw(h, ma) + ba[...]                   # conv_a
        y = prelu(y, a_c)                           # PReLU inside conv Sequential
        y = y * sa[...] + ta[...]                   # BN1 (eval scale/shift)
        y = prelu(y, a_p)
        y = dotw(y, mb) + cb[...]                   # conv_b with BN2 folded in
        return prelu(y + h, a_p)                    # residual add + PReLU

    h = res_block(h, ma1, ba1, sa1, ta1, mb1, cb1, a[:, 1:2], a[:, 2:3])
    h = res_block(h, ma2, ba2, sa2, ta2, mb2, cb2, a[:, 3:4], a[:, 4:5])

    # conv2 (1,1,k3d) + BN2 (folded) + PReLU -> lane-dense 128-wide output
    y = prelu(dotw(h, m2) + c2[...], a[:, 5:6])
    o_ref[...] = y.astype(o_ref.dtype)


def spectral_chain(x_pix, weights, alphas, *, max_tile=1024):
    """x_pix: (P, band) per-pixel spectral vectors -> (P, 128) features."""
    P, B = x_pix.shape
    n_out = weights[-1].shape[-1]
    tile = min(max_tile, _round_up(P, 8))
    p_pad = _round_up(P, tile)
    if p_pad != P:
        x_pix = jnp.pad(x_pix, ((0, p_pad - P), (0, 0)))
    grid = (p_pad // tile,)

    in_specs = [pl.BlockSpec((tile, B), lambda i: (i, 0))]
    in_specs += [_bcast_spec(w) for w in weights]
    in_specs += [_bcast_spec(alphas)]

    out = pl.pallas_call(
        _spectral_kernel,
        out_shape=jax.ShapeDtypeStruct((p_pad, n_out), jnp.bfloat16),
        grid=grid,
        in_specs=in_specs,
        out_specs=pl.BlockSpec((tile, n_out), lambda i: (i, 0)),
        compiler_params=pltpu.CompilerParams(dimension_semantics=("parallel",)),
    )(x_pix.astype(jnp.bfloat16), *weights, alphas)
    return out[:P]


# ----------------------------------------------------------------------------
# Kernel 2: fused spatial chain (conv3 -> res3 -> res4 -> avgpool -> fc1 -> fc2)
# ----------------------------------------------------------------------------
def _make_spatial_kernel(Do, Ho):
    P = Do * Ho
    C = 24
    PAD = Ho + 1                                    # max |row offset| of a 3x3 tap

    def kernel(p_ref, m_ref, w3, c3,
               wa3, ba3, sa3, ta3, wb3, cb3,
               wa4, ba4, sa4, ta4, wb4, cb4,
               wf1, bf1, wf12, cf2, al,
               x4_ref, x5_ref, x6_ref):
        a = al[...]

        def prelu(v, alpha):
            return jnp.where(v > 0, v, alpha * v)

        def conv3x3(h, w_ref):                      # h: (P, C) f32, w_ref: (9, C, C)
            zpad = jnp.zeros((PAD, C), jnp.float32)
            hp = jnp.concatenate([zpad, h, zpad], axis=0)
            acc = jnp.zeros((P, C), jnp.float32)
            for dd in (-1, 0, 1):
                for hh in (-1, 0, 1):
                    tap = (dd + 1) * 3 + (hh + 1)
                    off = dd * Ho + hh
                    s = hp[PAD + off:PAD + off + P, :] * m_ref[tap]
                    acc = acc + jnp.dot(s, w_ref[tap],
                                        preferred_element_type=jnp.float32)
            return acc

        def res_block(h, wa, ba, sa, ta, wb, cb, a_c, a_p):
            y = conv3x3(h, wa) + ba[...]
            y = prelu(y, a_c)
            y = y * sa[...] + ta[...]
            y = prelu(y, a_p)
            y = conv3x3(y, wb) + cb[...]
            return prelu(y + h, a_p)

        # conv3 (3,3,128): single (P, 1152) @ (1152, 24) matmul, BN3 folded, PReLU
        h = jnp.dot(p_ref[0], w3[...], preferred_element_type=jnp.float32) + c3[...]
        h = prelu(h, a[:, 0:1])

        h = res_block(h, wa3, ba3, sa3, ta3, wb3, cb3, a[:, 1:2], a[:, 2:3])
        h = res_block(h, wa4, ba4, sa4, ta4, wb4, cb4, a[:, 3:4], a[:, 4:5])

        # AvgPool3d((5,5,1)) + fc1 + fc2 (fc2 composed with fc1 at prep time):
        #   x5 = mean(h) @ Wfc1 + b1 = mean(h @ Wfc1) + b1   (same math, MXU friendly)
        g1 = jnp.dot(h, wf1[...], preferred_element_type=jnp.float32)    # (P, 2)
        g2 = jnp.dot(h, wf12[...], preferred_element_type=jnp.float32)   # (P, n_cls)
        x4 = jnp.mean(h, axis=0, keepdims=True)                          # (1, 24)
        x5 = jnp.mean(g1, axis=0, keepdims=True) + bf1[...]              # (1, 2)
        x6 = jnp.mean(g2, axis=0, keepdims=True) + cf2[...]              # (1, n_cls)
        x4_ref[...] = x4[None]
        x5_ref[...] = x5[None]
        x6_ref[...] = x6[None]

    return kernel


def _spatial_tap_masks(Do, Ho, C):
    """(9, Do*Ho, C) 0/1 masks zeroing out-of-bounds taps of the 3x3 'same' conv."""
    m = np.zeros((9, Do * Ho, C), np.float32)
    for dd in (-1, 0, 1):
        for hh in (-1, 0, 1):
            tap = (dd + 1) * 3 + (hh + 1)
            for d in range(Do):
                for h in range(Ho):
                    if 0 <= d + dd < Do and 0 <= h + hh < Ho:
                        m[tap, d * Ho + h, :] = 1.0
    return jnp.asarray(m)


def spatial_chain(patches, weights, alphas, Do, Ho):
    """patches: (N, Do*Ho, 9*128) conv3 patches -> (x4, x5, logits)."""
    N, P, Kp = patches.shape
    n_cls = weights[-1].shape[-1]
    masks = _spatial_tap_masks(Do, Ho, 24)

    in_specs = [pl.BlockSpec((1, P, Kp), lambda n: (n, 0, 0)),
                _bcast_spec(masks)]
    in_specs += [_bcast_spec(w) for w in weights]
    in_specs += [_bcast_spec(alphas)]

    out_shape = (jax.ShapeDtypeStruct((N, 1, 24), jnp.float32),
                 jax.ShapeDtypeStruct((N, 1, 2), jnp.float32),
                 jax.ShapeDtypeStruct((N, 1, n_cls), jnp.float32))
    out_specs = (pl.BlockSpec((1, 1, 24), lambda n: (n, 0, 0)),
                 pl.BlockSpec((1, 1, 2), lambda n: (n, 0, 0)),
                 pl.BlockSpec((1, 1, n_cls), lambda n: (n, 0, 0)))

    x4, x5, x6 = pl.pallas_call(
        _make_spatial_kernel(Do, Ho),
        out_shape=out_shape,
        grid=(N,),
        in_specs=in_specs,
        out_specs=out_specs,
        compiler_params=pltpu.CompilerParams(dimension_semantics=("parallel",)),
    )(patches.astype(jnp.bfloat16), masks, *weights, alphas)
    return x4[:, 0], x5[:, 0], x6[:, 0]


# ----------------------------------------------------------------------------
# Parameter preparation: BN folding + banded "structured matmul" matrices
# ----------------------------------------------------------------------------
def prepare_params(p, band):
    C = 24
    W1 = (band - 7) // 2 + 1                   # spectral length after conv1 (stride 2)
    K3d = math.ceil((band - 6) / 2)            # conv2 spectral kernel size
    W2 = W1 - K3d + 1
    assert W2 == 1, "conv2 must collapse the spectral axis (as in the torch model)"
    L = W1 * C

    # conv1 (1,1,7)/(1,1,2), 1->24, fused with BN1 (PReLU applied in-kernel)
    s, t = _bn_fold(p["bn1"])
    m1 = jnp.zeros((band, L), jnp.float32)
    for w in range(W1):
        m1 = m1.at[2 * w:2 * w + 7, w * C:(w + 1) * C].set(p["conv1_w"])
    m1 = m1 * jnp.tile(s, W1)[None, :]
    c1 = jnp.tile(p["conv1_b"] * s + t, W1)

    def band_matrix(wflat):                    # 'same' 1x1x7 conv (pad 3) as (L, L)
        M = jnp.zeros((L, L), jnp.float32)
        for wo in range(W1):
            for k in range(7):
                wi = wo + k - 3
                if 0 <= wi < W1:
                    M = M.at[wi * C:(wi + 1) * C, wo * C:(wo + 1) * C].set(
                        wflat[k * C:(k + 1) * C, :])
        return M

    def prep_res_spectral(rp):
        ma = band_matrix(rp["wa"])                       # PReLU between conv_a and BN1
        s1, t1 = _bn_fold(rp["bn1"])                     # -> keep BN1 separate
        mb = band_matrix(rp["wb"])
        s2, t2 = _bn_fold(rp["bn2"])
        mb = mb * jnp.tile(s2, W1)[None, :]              # fold BN2 into conv_b
        cb = jnp.tile(rp["bb"] * s2 + t2, W1)
        return [ma.astype(jnp.bfloat16), _row(jnp.tile(rp["ba"], W1)),
                _row(jnp.tile(s1, W1)), _row(jnp.tile(t1, W1)),
                mb.astype(jnp.bfloat16), _row(cb)]

    # conv2 (1,1,K3d), 24->128, valid; fold BN2
    s, t = _bn_fold(p["bn2"])
    m2 = jnp.zeros((L, W2 * 128), jnp.float32)
    for wo in range(W2):
        for k in range(K3d):
            wi = wo + k
            m2 = m2.at[wi * C:(wi + 1) * C, wo * 128:(wo + 1) * 128].set(
                p["conv2_w"][k * C:(k + 1) * C, :])
    m2 = m2 * jnp.tile(s, W2)[None, :]
    c2 = jnp.tile(p["conv2_b"] * s + t, W2)

    spec_w = ([m1.astype(jnp.bfloat16), _row(c1)]
              + prep_res_spectral(p["res1"]) + prep_res_spectral(p["res2"])
              + [m2.astype(jnp.bfloat16), _row(c2)])
    spec_al = _pack_alphas([p["a_bn1"],
                            p["res1"]["a_c1"], p["res1"]["a_p"],
                            p["res2"]["a_c1"], p["res2"]["a_p"],
                            p["a_bn2"]])

    # conv3 (3,3,128), 1->24; fold BN3
    s, t = _bn_fold(p["bn3"])
    w3 = (p["conv3_w"] * s[None, :]).astype(jnp.bfloat16)
    c3 = _row(p["conv3_b"] * s + t)

    def prep_res_spatial(rp):
        s1, t1 = _bn_fold(rp["bn1"])
        s2, t2 = _bn_fold(rp["bn2"])
        wb = rp["wb"] * s2[None, None, :]
        cb = rp["bb"] * s2 + t2
        return [rp["wa"], _row(rp["ba"]), _row(s1), _row(t1), wb, _row(cb)]

    # fc2 composed with fc1 (Dropout is identity in eval)
    wf12 = p["fc1_w"] @ p["fc2_w"]
    cf2 = p["fc1_b"] @ p["fc2_w"] + p["fc2_b"]

    spat_w = ([w3, c3] + prep_res_spatial(p["res3"]) + prep_res_spatial(p["res4"])
              + [p["fc1_w"], _row(p["fc1_b"]), wf12, _row(cf2)])
    spat_al = _pack_alphas([p["a_bn3"],
                            p["res3"]["a_c1"], p["res3"]["a_p"],
                            p["res4"]["a_c1"], p["res4"]["a_p"]])

    return dict(spec_w=spec_w, spec_al=spec_al, spat_w=spat_w, spat_al=spat_al)


# ----------------------------------------------------------------------------
# Synthetic parameters (same logical shapes as the PyTorch module)
# ----------------------------------------------------------------------------
def init_params(key, band, num_classes):
    keys = iter(jax.random.split(key, 128))

    def nrm(shape, s=0.1):
        return s * jax.random.normal(next(keys), shape, jnp.float32)

    def bn(c):
        return dict(gamma=1.0 + nrm((c,)), beta=nrm((c,)), mean=nrm((c,)),
                    var=1.0 + 0.1 * jnp.abs(jax.random.normal(next(keys), (c,), jnp.float32)))

    def res_spectral():      # Residual(24,24,(1,1,7),(0,0,3)); weights stored (tap*cin, cout)
        return dict(wa=nrm((7 * 24, 24)), ba=nrm((24,)),
                    wb=nrm((7 * 24, 24)), bb=nrm((24,)),
                    bn1=bn(24), bn2=bn(24),
                    a_c1=jnp.float32(0.25), a_p=jnp.float32(0.25))

    def res_spatial():       # Residual(24,24,(3,3,1),(1,1,0)); weights stored (tap, cin, cout)
        return dict(wa=nrm((9, 24, 24)), ba=nrm((24,)),
                    wb=nrm((9, 24, 24)), bb=nrm((24,)),
                    bn1=bn(24), bn2=bn(24),
                    a_c1=jnp.float32(0.25), a_p=jnp.float32(0.25))

    kernel_3d = math.ceil((band - 6) / 2)
    return dict(
        conv1_w=nrm((7, 24)), conv1_b=nrm((24,)), bn1=bn(24), a_bn1=jnp.float32(0.25),
        res1=res_spectral(), res2=res_spectral(),
        conv2_w=nrm((kernel_3d * 24, 128)), conv2_b=nrm((128,)), bn2=bn(128),
        a_bn2=jnp.float32(0.25),
        conv3_w=nrm((9 * 128, 24)), conv3_b=nrm((24,)), bn3=bn(24),
        a_bn3=jnp.float32(0.25),
        res3=res_spatial(), res4=res_spatial(),
        fc1_w=nrm((24, 2)), fc1_b=nrm((2,)),
        fc2_w=nrm((2, num_classes)), fc2_b=nrm((num_classes,)),
    )


# ----------------------------------------------------------------------------
# Forward pass
# ----------------------------------------------------------------------------
def conv3_patches(y):
    """y: (N, D, H, 128) -> (N, (D-2)*(H-2), 9*128) patches for the (3,3,128) conv."""
    N, D, H, Cw = y.shape
    Do, Ho = D - 2, H - 2
    taps = [y[:, dd:dd + Do, hh:hh + Ho, :] for dd in range(3) for hh in range(3)]
    p = jnp.stack(taps, axis=3)                    # (N, Do, Ho, 9, Cw)
    return p.reshape(N, Do * Ho, 9 * Cw), Do, Ho


def rcn_forward(prep, x_ncdhw):
    """x_ncdhw: (N, 1, D, H, band) exactly like the PyTorch module (NCDHW)."""
    x = x_ncdhw[:, 0].astype(jnp.float32)          # (N, D, H, band)
    N, D, H, B = x.shape

    # fused spectral chain: conv1+BN1+PReLU -> res1 -> res2 -> conv2+BN2+PReLU
    y = spectral_chain(x.reshape(N * D * H, B), prep["spec_w"], prep["spec_al"])
    y = y.reshape(N, D, H, y.shape[-1])            # == torch permute(0,4,2,3,1) (W2==1)

    # conv3 patches gathered in plain JAX (K = 1152 contraction kept whole)
    patches, Do, Ho = conv3_patches(y)
    assert Do == 5 and Ho == 5, "RCN architecture requires a 7x7 spatial patch"

    # fused spatial chain: conv3+BN3+PReLU -> res3 -> res4 -> avgpool -> fc1 -> fc2
    x4, x5, x6 = spatial_chain(patches, prep["spat_w"], prep["spat_al"], Do, Ho)
    return x4, x5, x6


# ----------------------------------------------------------------------------
if __name__ == "__main__":
    band = 16            # spectral bands: kernel_3d = ceil((16-6)/2) = 5 collapses conv1 output
    num_classes = 4
    batch = 2

    key = jax.random.PRNGKey(0)
    k_x, k_p = jax.random.split(key)
    X = jax.random.normal(k_x, (batch, 1, 7, 7, band), jnp.float32)   # PyTorch NCDHW

    params = init_params(k_p, band, num_classes)
    prep = prepare_params(params, band)            # BN folding + structured matrices (one-time)

    fwd = jax.jit(rcn_forward)
    x4, x5, logits = fwd(prep, X)
    jax.block_until_ready((x4, x5, logits))

    assert x4.shape == (batch, 24)
    assert x5.shape == (batch, 2)
    assert logits.shape == (batch, num_classes)
    assert bool(jnp.isfinite(x4).all() and jnp.isfinite(x5).all() and jnp.isfinite(logits).all())
    print("KERNEL_OK")
</pallas_src>

<mosaic_0001>
module attributes {stable_mosaic.version = 11 : i64} {
  func.func @_spectral_kernel(%arg0: i32, %arg1: memref<104x16xbf16, #tpu.memory_space<vmem>>, %arg2: memref<16x120xbf16, #tpu.memory_space<vmem>>, %arg3: memref<1x120xf32, #tpu.memory_space<vmem>>, %arg4: memref<120x120xbf16, #tpu.memory_space<vmem>>, %arg5: memref<1x120xf32, #tpu.memory_space<vmem>>, %arg6: memref<1x120xf32, #tpu.memory_space<vmem>>, %arg7: memref<1x120xf32, #tpu.memory_space<vmem>>, %arg8: memref<120x120xbf16, #tpu.memory_space<vmem>>, %arg9: memref<1x120xf32, #tpu.memory_space<vmem>>, %arg10: memref<120x120xbf16, #tpu.memory_space<vmem>>, %arg11: memref<1x120xf32, #tpu.memory_space<vmem>>, %arg12: memref<1x120xf32, #tpu.memory_space<vmem>>, %arg13: memref<1x120xf32, #tpu.memory_space<vmem>>, %arg14: memref<120x120xbf16, #tpu.memory_space<vmem>>, %arg15: memref<1x120xf32, #tpu.memory_space<vmem>>, %arg16: memref<120x128xbf16, #tpu.memory_space<vmem>>, %arg17: memref<1x128xf32, #tpu.memory_space<vmem>>, %arg18: memref<1x8xf32, #tpu.memory_space<vmem>>, %arg19: memref<104x128xbf16, #tpu.memory_space<vmem>>) attributes {dimension_semantics = [#tpu.dimension_semantics<parallel>], iteration_bounds = array<i64: 1>, scalar_prefetch = 0 : i64, scratch_operands = 0 : i64, tpu.core_type = #tpu.core_type<tc>, window_params = [{transform_indices = @transform_0, window_bounds = array<i64: 104, 16>}, {pipeline_mode = #tpu.pipeline_mode<synchronous>, transform_indices = @transform_1, window_bounds = array<i64: 16, 120>}, {pipeline_mode = #tpu.pipeline_mode<synchronous>, transform_indices = @transform_2, window_bounds = array<i64: 1, 120>}, {pipeline_mode = #tpu.pipeline_mode<synchronous>, transform_indices = @transform_3, window_bounds = array<i64: 120, 120>}, {pipeline_mode = #tpu.pipeline_mode<synchronous>, transform_indices = @transform_4, window_bounds = array<i64: 1, 120>}, {pipeline_mode = #tpu.pipeline_mode<synchronous>, transform_indices = @transform_5, window_bounds = array<i64: 1, 120>}, {pipeline_mode = #tpu.pipeline_mode<synchronous>, transform_indices = @transform_6, window_bounds = array<i64: 1, 120>}, {pipeline_mode = #tpu.pipeline_mode<synchronous>, transform_indices = @transform_7, window_bounds = array<i64: 120, 120>}, {pipeline_mode = #tpu.pipeline_mode<synchronous>, transform_indices = @transform_8, window_bounds = array<i64: 1, 120>}, {pipeline_mode = #tpu.pipeline_mode<synchronous>, transform_indices = @transform_9, window_bounds = array<i64: 120, 120>}, {pipeline_mode = #tpu.pipeline_mode<synchronous>, transform_indices = @transform_10, window_bounds = array<i64: 1, 120>}, {pipeline_mode = #tpu.pipeline_mode<synchronous>, transform_indices = @transform_11, window_bounds = array<i64: 1, 120>}, {pipeline_mode = #tpu.pipeline_mode<synchronous>, transform_indices = @transform_12, window_bounds = array<i64: 1, 120>}, {pipeline_mode = #tpu.pipeline_mode<synchronous>, transform_indices = @transform_13, window_bounds = array<i64: 120, 120>}, {pipeline_mode = #tpu.pipeline_mode<synchronous>, transform_indices = @transform_14, window_bounds = array<i64: 1, 120>}, {pipeline_mode = #tpu.pipeline_mode<synchronous>, transform_indices = @transform_15, window_bounds = array<i64: 120, 128>}, {pipeline_mode = #tpu.pipeline_mode<synchronous>, transform_indices = @transform_16, window_bounds = array<i64: 1, 128>}, {pipeline_mode = #tpu.pipeline_mode<synchronous>, transform_indices = @transform_17, window_bounds = array<i64: 1, 8>}, {transform_indices = @transform_18, window_bounds = array<i64: 104, 128>}]} {
    %c0 = arith.constant 0 : index
    %c0_0 = arith.constant 0 : index
    %0 = vector.load %arg18[%c0, %c0_0] : memref<1x8xf32, #tpu.memory_space<vmem>>, vector<1x8xf32>
    %c0_1 = arith.constant 0 : index
    %c0_2 = arith.constant 0 : index
    %1 = vector.load %arg1[%c0_1, %c0_2] : memref<104x16xbf16, #tpu.memory_space<vmem>>, vector<104x16xbf16>
    %c0_3 = arith.constant 0 : index
    %c0_4 = arith.constant 0 : index
    %2 = vector.load %arg2[%c0_3, %c0_4] : memref<16x120xbf16, #tpu.memory_space<vmem>>, vector<16x120xbf16>
    %cst = arith.constant dense<0.000000e+00> : vector<104x120xf32>
    %3 = tpu.matmul %1, %2, %cst {dimension_numbers = #tpu.dot_dimension_numbers<[1], [0], [0], [1], [0, 0, 1, 1], [], []>} : vector<104x16xbf16>, vector<16x120xbf16>, vector<104x120xf32> -> vector<104x120xf32>
    %c0_5 = arith.constant 0 : index
    %c0_6 = arith.constant 0 : index
    %4 = vector.load %arg3[%c0_5, %c0_6] : memref<1x120xf32, #tpu.memory_space<vmem>>, vector<1x120xf32>
    %5 = vector.broadcast %4 : vector<1x120xf32> to vector<104x120xf32>
    %6 = arith.addf %3, %5 : vector<104x120xf32>
    %7 = vector.extract_strided_slice %0 {offsets = [0, 0], sizes = [1, 1], strides = [1, 1]} : vector<1x8xf32> to vector<1x1xf32>
    %cst_7 = arith.constant 0.000000e+00 : f32
    %8 = vector.broadcast %cst_7 : f32 to vector<104x120xf32>
    %9 = arith.cmpf ogt, %6, %8 : vector<104x120xf32>
    %10 = vector.broadcast %7 : vector<1x1xf32> to vector<104x120xf32>
    %11 = arith.mulf %10, %6 : vector<104x120xf32>
    %12 = arith.select %9, %6, %11 : vector<104x120xi1>, vector<104x120xf32>
    %13 = vector.extract_strided_slice %0 {offsets = [0, 1], sizes = [1, 1], strides = [1, 1]} : vector<1x8xf32> to vector<1x1xf32>
    %14 = vector.extract_strided_slice %0 {offsets = [0, 2], sizes = [1, 1], strides = [1, 1]} : vector<1x8xf32> to vector<1x1xf32>
    %c0_8 = arith.constant 0 : index
    %c0_9 = arith.constant 0 : index
    %15 = vector.load %arg4[%c0_8, %c0_9] : memref<120x120xbf16, #tpu.memory_space<vmem>>, vector<120x120xbf16>
    %16 = arith.truncf %12 : vector<104x120xf32> to vector<104x120xbf16>
    %cst_10 = arith.constant dense<0.000000e+00> : vector<104x120xf32>
    %17 = tpu.matmul %16, %15, %cst_10 {dimension_numbers = #tpu.dot_dimension_numbers<[1], [0], [0], [1], [0, 0, 1, 1], [], []>} : vector<104x120xbf16>, vector<120x120xbf16>, vector<104x120xf32> -> vector<104x120xf32>
    %c0_11 = arith.constant 0 : index
    %c0_12 = arith.constant 0 : index
    %18 = vector.load %arg5[%c0_11, %c0_12] : memref<1x120xf32, #tpu.memory_space<vmem>>, vector<1x120xf32>
    %19 = vector.broadcast %18 : vector<1x120xf32> to vector<104x120xf32>
    %20 = arith.addf %17, %19 : vector<104x120xf32>
    %cst_13 = arith.constant 0.000000e+00 : f32
    %21 = vector.broadcast %cst_13 : f32 to vector<104x120xf32>
    %22 = arith.cmpf ogt, %20, %21 : vector<104x120xf32>
    %23 = vector.broadcast %13 : vector<1x1xf32> to vector<104x120xf32>
    %24 = arith.mulf %23, %20 : vector<104x120xf32>
    %25 = arith.select %22, %20, %24 : vector<104x120xi1>, vector<104x120xf32>
    %c0_14 = arith.constant 0 : index
    %c0_15 = arith.constant 0 : index
    %26 = vector.load %arg6[%c0_14, %c0_15] : memref<1x120xf32, #tpu.memory_space<vmem>>, vector<1x120xf32>
    %27 = vector.broadcast %26 : vector<1x120xf32> to vector<104x120xf32>
    %28 = arith.mulf %25, %27 : vector<104x120xf32>
    %c0_16 = arith.constant 0 : index
    %c0_17 = arith.constant 0 : index
    %29 = vector.load %arg7[%c0_16, %c0_17] : memref<1x120xf32, #tpu.memory_space<vmem>>, vector<1x120xf32>
    %30 = vector.broadcast %29 : vector<1x120xf32> to vector<104x120xf32>
    %31 = arith.addf %28, %30 : vector<104x120xf32>
    %cst_18 = arith.constant 0.000000e+00 : f32
    %32 = vector.broadcast %cst_18 : f32 to vector<104x120xf32>
    %33 = arith.cmpf ogt, %31, %32 : vector<104x120xf32>
    %34 = vector.broadcast %14 : vector<1x1xf32> to vector<104x120xf32>
    %35 = arith.mulf %34, %31 : vector<104x120xf32>
    %36 = arith.select %33, %31, %35 : vector<104x120xi1>, vector<104x120xf32>
    %c0_19 = arith.constant 0 : index
    %c0_20 = arith.constant 0 : index
    %37 = vector.load %arg8[%c0_19, %c0_20] : memref<120x120xbf16, #tpu.memory_space<vmem>>, vector<120x120xbf16>
    %38 = arith.truncf %36 : vector<104x120xf32> to vector<104x120xbf16>
    %cst_21 = arith.constant dense<0.000000e+00> : vector<104x120xf32>
    %39 = tpu.matmul %38, %37, %cst_21 {dimension_numbers = #tpu.dot_dimension_numbers<[1], [0], [0], [1], [0, 0, 1, 1], [], []>} : vector<104x120xbf16>, vector<120x120xbf16>, vector<104x120xf32> -> vector<104x120xf32>
    %c0_22 = arith.constant 0 : index
    %c0_23 = arith.constant 0 : index
    %40 = vector.load %arg9[%c0_22, %c0_23] : memref<1x120xf32, #tpu.memory_space<vmem>>, vector<1x120xf32>
    %41 = vector.broadcast %40 : vector<1x120xf32> to vector<104x120xf32>
    %42 = arith.addf %39, %41 : vector<104x120xf32>
    %43 = arith.addf %42, %12 : vector<104x120xf32>
    %cst_24 = arith.constant 0.000000e+00 : f32
    %44 = vector.broadcast %cst_24 : f32 to vector<104x120xf32>
    %45 = arith.cmpf ogt, %43, %44 : vector<104x120xf32>
    %46 = vector.broadcast %14 : vector<1x1xf32> to vector<104x120xf32>
    %47 = arith.mulf %46, %43 : vector<104x120xf32>
    %48 = arith.select %45, %43, %47 : vector<104x120xi1>, vector<104x120xf32>
    %49 = vector.extract_strided_slice %0 {offsets = [0, 3], sizes = [1, 1], strides = [1, 1]} : vector<1x8xf32> to vector<1x1xf32>
    %50 = vector.extract_strided_slice %0 {offsets = [0, 4], sizes = [1, 1], strides = [1, 1]} : vector<1x8xf32> to vector<1x1xf32>
    %c0_25 = arith.constant 0 : index
    %c0_26 = arith.constant 0 : index
    %51 = vector.load %arg10[%c0_25, %c0_26] : memref<120x120xbf16, #tpu.memory_space<vmem>>, vector<120x120xbf16>
    %52 = arith.truncf %48 : vector<104x120xf32> to vector<104x120xbf16>
    %cst_27 = arith.constant dense<0.000000e+00> : vector<104x120xf32>
    %53 = tpu.matmul %52, %51, %cst_27 {dimension_numbers = #tpu.dot_dimension_numbers<[1], [0], [0], [1], [0, 0, 1, 1], [], []>} : vector<104x120xbf16>, vector<120x120xbf16>, vector<104x120xf32> -> vector<104x120xf32>
    %c0_28 = arith.constant 0 : index
    %c0_29 = arith.constant 0 : index
    %54 = vector.load %arg11[%c0_28, %c0_29] : memref<1x120xf32, #tpu.memory_space<vmem>>, vector<1x120xf32>
    %55 = vector.broadcast %54 : vector<1x120xf32> to vector<104x120xf32>
    %56 = arith.addf %53, %55 : vector<104x120xf32>
    %cst_30 = arith.constant 0.000000e+00 : f32
    %57 = vector.broadcast %cst_30 : f32 to vector<104x120xf32>
    %58 = arith.cmpf ogt, %56, %57 : vector<104x120xf32>
    %59 = vector.broadcast %49 : vector<1x1xf32> to vector<104x120xf32>
    %60 = arith.mulf %59, %56 : vector<104x120xf32>
    %61 = arith.select %58, %56, %60 : vector<104x120xi1>, vector<104x120xf32>
    %c0_31 = arith.constant 0 : index
    %c0_32 = arith.constant 0 : index
    %62 = vector.load %arg12[%c0_31, %c0_32] : memref<1x120xf32, #tpu.memory_space<vmem>>, vector<1x120xf32>
    %63 = vector.broadcast %62 : vector<1x120xf32> to vector<104x120xf32>
    %64 = arith.mulf %61, %63 : vector<104x120xf32>
    %c0_33 = arith.constant 0 : index
    %c0_34 = arith.constant 0 : index
    %65 = vector.load %arg13[%c0_33, %c0_34] : memref<1x120xf32, #tpu.memory_space<vmem>>, vector<1x120xf32>
    %66 = vector.broadcast %65 : vector<1x120xf32> to vector<104x120xf32>
    %67 = arith.addf %64, %66 : vector<104x120xf32>
    %cst_35 = arith.constant 0.000000e+00 : f32
    %68 = vector.broadcast %cst_35 : f32 to vector<104x120xf32>
    %69 = arith.cmpf ogt, %67, %68 : vector<104x120xf32>
    %70 = vector.broadcast %50 : vector<1x1xf32> to vector<104x120xf32>
    %71 = arith.mulf %70, %67 : vector<104x120xf32>
    %72 = arith.select %69, %67, %71 : vector<104x120xi1>, vector<104x120xf32>
    %c0_36 = arith.constant 0 : index
    %c0_37 = arith.constant 0 : index
    %73 = vector.load %arg14[%c0_36, %c0_37] : memref<120x120xbf16, #tpu.memory_space<vmem>>, vector<120x120xbf16>
    %74 = arith.truncf %72 : vector<104x120xf32> to vector<104x120xbf16>
    %cst_38 = arith.constant dense<0.000000e+00> : vector<104x120xf32>
    %75 = tpu.matmul %74, %73, %cst_38 {dimension_numbers = #tpu.dot_dimension_numbers<[1], [0], [0], [1], [0, 0, 1, 1], [], []>} : vector<104x120xbf16>, vector<120x120xbf16>, vector<104x120xf32> -> vector<104x120xf32>
    %c0_39 = arith.constant 0 : index
    %c0_40 = arith.constant 0 : index
    %76 = vector.load %arg15[%c0_39, %c0_40] : memref<1x120xf32, #tpu.memory_space<vmem>>, vector<1x120xf32>
    %77 = vector.broadcast %76 : vector<1x120xf32> to vector<104x120xf32>
    %78 = arith.addf %75, %77 : vector<104x120xf32>
    %79 = arith.addf %78, %48 : vector<104x120xf32>
    %cst_41 = arith.constant 0.000000e+00 : f32
    %80 = vector.broadcast %cst_41 : f32 to vector<104x120xf32>
    %81 = arith.cmpf ogt, %79, %80 : vector<104x120xf32>
    %82 = vector.broadcast %50 : vector<1x1xf32> to vector<104x120xf32>
    %83 = arith.mulf %82, %79 : vector<104x120xf32>
    %84 = arith.select %81, %79, %83 : vector<104x120xi1>, vector<104x120xf32>
    %c0_42 = arith.constant 0 : index
    %c0_43 = arith.constant 0 : index
    %85 = vector.load %arg16[%c0_42, %c0_43] : memref<120x128xbf16, #tpu.memory_space<vmem>>, vector<120x128xbf16>
    %86 = arith.truncf %84 : vector<104x120xf32> to vector<104x120xbf16>
    %cst_44 = arith.constant dense<0.000000e+00> : vector<104x128xf32>
    %87 = tpu.matmul %86, %85, %cst_44 {dimension_numbers = #tpu.dot_dimension_numbers<[1], [0], [0], [1], [0, 0, 1, 1], [], []>} : vector<104x120xbf16>, vector<120x128xbf16>, vector<104x128xf32> -> vector<104x128xf32>
    %c0_45 = arith.constant 0 : index
    %c0_46 = arith.constant 0 : index
    %88 = vector.load %arg17[%c0_45, %c0_46] : memref<1x128xf32, #tpu.memory_space<vmem>>, vector<1x128xf32>
    %89 = vector.broadcast %88 : vector<1x128xf32> to vector<104x128xf32>
    %90 = arith.addf %87, %89 : vector<104x128xf32>
    %91 = vector.extract_strided_slice %0 {offsets = [0, 5], sizes = [1, 1], strides = [1, 1]} : vector<1x8xf32> to vector<1x1xf32>
    %cst_47 = arith.constant 0.000000e+00 : f32
    %92 = vector.broadcast %cst_47 : f32 to vector<104x128xf32>
    %93 = arith.cmpf ogt, %90, %92 : vector<104x128xf32>
    %94 = vector.broadcast %91 : vector<1x1xf32> to vector<104x128xf32>
    %95 = arith.mulf %94, %90 : vector<104x128xf32>
    %96 = arith.select %93, %90, %95 : vector<104x128xi1>, vector<104x128xf32>
    %97 = arith.truncf %96 : vector<104x128xf32> to vector<104x128xbf16>
    %c0_48 = arith.constant 0 : index
    %c0_49 = arith.constant 0 : index
    %98 = vector.load %arg19[%c0_48, %c0_49] : memref<104x128xbf16, #tpu.memory_space<vmem>>, vector<104x128xbf16>
    tpu.vector_store %arg19[%c0_48, %c0_49], %97 {strides = array<i32>} : memref<104x128xbf16, #tpu.memory_space<vmem>>, vector<104x128xbf16>,
    return
  }
  func.func @transform_0(%arg0: i32) -> (i32, i32) {
    %c0_i32 = arith.constant 0 : i32
    %c0_i32_0 = arith.constant 0 : i32
    return %arg0, %c0_i32 : i32, i32
  }
  func.func @transform_1(%arg0: i32) -> (i32, i32) {
    %c0_i32 = arith.constant 0 : i32
    %c0_i32_0 = arith.constant 0 : i32
    %c0_i32_1 = arith.constant 0 : i32
    return %c0_i32, %c0_i32_0 : i32, i32
  }
  func.func @transform_2(%arg0: i32) -> (i32, i32) {
    %c0_i32 = arith.constant 0 : i32
    %c0_i32_0 = arith.constant 0 : i32
    %c0_i32_1 = arith.constant 0 : i32
    return %c0_i32, %c0_i32_0 : i32, i32
  }
  func.func @transform_3(%arg0: i32) -> (i32, i32) {
    %c0_i32 = arith.constant 0 : i32
    %c0_i32_0 = arith.constant 0 : i32
    %c0_i32_1 = arith.constant 0 : i32
    return %c0_i32, %c0_i32_0 : i32, i32
  }
  func.func @transform_4(%arg0: i32) -> (i32, i32) {
    %c0_i32 = arith.constant 0 : i32
    %c0_i32_0 = arith.constant 0 : i32
    %c0_i32_1 = arith.constant 0 : i32
    return %c0_i32, %c0_i32_0 : i32, i32
  }
  func.func @transform_5(%arg0: i32) -> (i32, i32) {
    %c0_i32 = arith.constant 0 : i32
    %c0_i32_0 = arith.constant 0 : i32
    %c0_i32_1 = arith.constant 0 : i32
    return %c0_i32, %c0_i32_0 : i32, i32
  }
  func.func @transform_6(%arg0: i32) -> (i32, i32) {
    %c0_i32 = arith.constant 0 : i32
    %c0_i32_0 = arith.constant 0 : i32
    %c0_i32_1 = arith.constant 0 : i32
    return %c0_i32, %c0_i32_0 : i32, i32
  }
  func.func @transform_7(%arg0: i32) -> (i32, i32) {
    %c0_i32 = arith.constant 0 : i32
    %c0_i32_0 = arith.constant 0 : i32
    %c0_i32_1 = arith.constant 0 : i32
    return %c0_i32, %c0_i32_0 : i32, i32
  }
  func.func @transform_8(%arg0: i32) -> (i32, i32) {
    %c0_i32 = arith.constant 0 : i32
    %c0_i32_0 = arith.constant 0 : i32
    %c0_i32_1 = arith.constant 0 : i32
    return %c0_i32, %c0_i32_0 : i32, i32
  }
  func.func @transform_9(%arg0: i32) -> (i32, i32) {
    %c0_i32 = arith.constant 0 : i32
    %c0_i32_0 = arith.constant 0 : i32
    %c0_i32_1 = arith.constant 0 : i32
    return %c0_i32, %c0_i32_0 : i32, i32
  }
  func.func @transform_10(%arg0: i32) -> (i32, i32) {
    %c0_i32 = arith.constant 0 : i32
    %c0_i32_0 = arith.constant 0 : i32
    %c0_i32_1 = arith.constant 0 : i32
    return %c0_i32, %c0_i32_0 : i32, i32
  }
  func.func @transform_11(%arg0: i32) -> (i32, i32) {
    %c0_i32 = arith.constant 0 : i32
    %c0_i32_0 = arith.constant 0 : i32
    %c0_i32_1 = arith.constant 0 : i32
    return %c0_i32, %c0_i32_0 : i32, i32
  }
  func.func @transform_12(%arg0: i32) -> (i32, i32) {
    %c0_i32 = arith.constant 0 : i32
    %c0_i32_0 = arith.constant 0 : i32
    %c0_i32_1 = arith.constant 0 : i32
    return %c0_i32, %c0_i32_0 : i32, i32
  }
  func.func @transform_13(%arg0: i32) -> (i32, i32) {
    %c0_i32 = arith.constant 0 : i32
    %c0_i32_0 = arith.constant 0 : i32
    %c0_i32_1 = arith.constant 0 : i32
    return %c0_i32, %c0_i32_0 : i32, i32
  }
  func.func @transform_14(%arg0: i32) -> (i32, i32) {
    %c0_i32 = arith.constant 0 : i32
    %c0_i32_0 = arith.constant 0 : i32
    %c0_i32_1 = arith.constant 0 : i32
    return %c0_i32, %c0_i32_0 : i32, i32
  }
  func.func @transform_15(%arg0: i32) -> (i32, i32) {
    %c0_i32 = arith.constant 0 : i32
    %c0_i32_0 = arith.constant 0 : i32
    %c0_i32_1 = arith.constant 0 : i32
    return %c0_i32, %c0_i32_0 : i32, i32
  }
  func.func @transform_16(%arg0: i32) -> (i32, i32) {
    %c0_i32 = arith.constant 0 : i32
    %c0_i32_0 = arith.constant 0 : i32
    %c0_i32_1 = arith.constant 0 : i32
    return %c0_i32, %c0_i32_0 : i32, i32
  }
  func.func @transform_17(%arg0: i32) -> (i32, i32) {
    %c0_i32 = arith.constant 0 : i32
    %c0_i32_0 = arith.constant 0 : i32
    %c0_i32_1 = arith.constant 0 : i32
    return %c0_i32, %c0_i32_0 : i32, i32
  }
  func.func @transform_18(%arg0: i32) -> (i32, i32) {
    %c0_i32 = arith.constant 0 : i32
    %c0_i32_0 = arith.constant 0 : i32
    return %arg0, %c0_i32 : i32, i32
  }
}

module attributes {stable_mosaic.version = 11 : i64} {
  func.func @kernel(%arg0: i32, %arg1: memref<1x25x1152xbf16, #tpu.memory_space<vmem>>, %arg2: memref<9x25x24xf32, #tpu.memory_space<vmem>>, %arg3: memref<1152x24xbf16, #tpu.memory_space<vmem>>, %arg4: memref<1x24xf32, #tpu.memory_space<vmem>>, %arg5: memref<9x24x24xf32, #tpu.memory_space<vmem>>, %arg6: memref<1x24xf32, #tpu.memory_space<vmem>>, %arg7: memref<1x24xf32, #tpu.memory_space<vmem>>, %arg8: memref<1x24xf32, #tpu.memory_space<vmem>>, %arg9: memref<9x24x24xf32, #tpu.memory_space<vmem>>, %arg10: memref<1x24xf32, #tpu.memory_space<vmem>>, %arg11: memref<9x24x24xf32, #tpu.memory_space<vmem>>, %arg12: memref<1x24xf32, #tpu.memory_space<vmem>>, %arg13: memref<1x24xf32, #tpu.memory_space<vmem>>, %arg14: memref<1x24xf32, #tpu.memory_space<vmem>>, %arg15: memref<9x24x24xf32, #tpu.memory_space<vmem>>, %arg16: memref<1x24xf32, #tpu.memory_space<vmem>>, %arg17: memref<24x2xf32, #tpu.memory_space<vmem>>, %arg18: memref<1x2xf32, #tpu.memory_space<vmem>>, %arg19: memref<24x4xf32, #tpu.memory_space<vmem>>, %arg20: memref<1x4xf32, #tpu.memory_space<vmem>>, %arg21: memref<1x8xf32, #tpu.memory_space<vmem>>, %arg22: memref<1x1x24xf32, #tpu.memory_space<vmem>>, %arg23: memref<1x1x2xf32, #tpu.memory_space<vmem>>, %arg24: memref<1x1x4xf32, #tpu.memory_space<vmem>>) attributes {dimension_semantics = [#tpu.dimension_semantics<parallel>], iteration_bounds = array<i64: 2>, scalar_prefetch = 0 : i64, scratch_operands = 0 : i64, tpu.core_type = #tpu.core_type<tc>, window_params = [{transform_indices = @transform_0, window_bounds = array<i64: 1, 25, 1152>}, {pipeline_mode = #tpu.pipeline_mode<synchronous>, transform_indices = @transform_1, window_bounds = array<i64: 9, 25, 24>}, {pipeline_mode = #tpu.pipeline_mode<synchronous>, transform_indices = @transform_2, window_bounds = array<i64: 1152, 24>}, {pipeline_mode = #tpu.pipeline_mode<synchronous>, transform_indices = @transform_3, window_bounds = array<i64: 1, 24>}, {pipeline_mode = #tpu.pipeline_mode<synchronous>, transform_indices = @transform_4, window_bounds = array<i64: 9, 24, 24>}, {pipeline_mode = #tpu.pipeline_mode<synchronous>, transform_indices = @transform_5, window_bounds = array<i64: 1, 24>}, {pipeline_mode = #tpu.pipeline_mode<synchronous>, transform_indices = @transform_6, window_bounds = array<i64: 1, 24>}, {pipeline_mode = #tpu.pipeline_mode<synchronous>, transform_indices = @transform_7, window_bounds = array<i64: 1, 24>}, {pipeline_mode = #tpu.pipeline_mode<synchronous>, transform_indices = @transform_8, window_bounds = array<i64: 9, 24, 24>}, {pipeline_mode = #tpu.pipeline_mode<synchronous>, transform_indices = @transform_9, window_bounds = array<i64: 1, 24>}, {pipeline_mode = #tpu.pipeline_mode<synchronous>, transform_indices = @transform_10, window_bounds = array<i64: 9, 24, 24>}, {pipeline_mode = #tpu.pipeline_mode<synchronous>, transform_indices = @transform_11, window_bounds = array<i64: 1, 24>}, {pipeline_mode = #tpu.pipeline_mode<synchronous>, transform_indices = @transform_12, window_bounds = array<i64: 1, 24>}, {pipeline_mode = #tpu.pipeline_mode<synchronous>, transform_indices = @transform_13, window_bounds = array<i64: 1, 24>}, {pipeline_mode = #tpu.pipeline_mode<synchronous>, transform_indices = @transform_14, window_bounds = array<i64: 9, 24, 24>}, {pipeline_mode = #tpu.pipeline_mode<synchronous>, transform_indices = @transform_15, window_bounds = array<i64: 1, 24>}, {pipeline_mode = #tpu.pipeline_mode<synchronous>, transform_indices = @transform_16, window_bounds = array<i64: 24, 2>}, {pipeline_mode = #tpu.pipeline_mode<synchronous>, transform_indices = @transform_17, window_bounds = array<i64: 1, 2>}, {pipeline_mode = #tpu.pipeline_mode<synchronous>, transform_indices = @transform_18, window_bounds = array<i64: 24, 4>}, {pipeline_mode = #tpu.pipeline_mode<synchronous>, transform_indices = @transform_19, window_bounds = array<i64: 1, 4>}, {pipeline_mode = #tpu.pipeline_mode<synchronous>, transform_indices = @transform_20, window_bounds = array<i64: 1, 8>}, {transform_indices = @transform_21, window_bounds = array<i64: 1, 1, 24>}, {transform_indices = @transform_22, window_bounds = array<i64: 1, 1, 2>}, {transform_indices = @transform_23, window_bounds = array<i64: 1, 1, 4>}]} {
    %c0 = arith.constant 0 : index
    %c0_0 = arith.constant 0 : index
    %0 = vector.load %arg21[%c0, %c0_0] : memref<1x8xf32, #tpu.memory_space<vmem>>, vector<1x8xf32>
    %c0_1 = arith.constant 0 : index
    %c0_2 = arith.constant 0 : index
    %c0_3 = arith.constant 0 : index
    %1 = vector.load %arg1[%c0_1, %c0_2, %c0_3] : memref<1x25x1152xbf16, #tpu.memory_space<vmem>>, vector<1x25x1152xbf16>
    %2 = vector.shape_cast %1 : vector<1x25x1152xbf16> to vector<25x1152xbf16>
    %c0_4 = arith.constant 0 : index
    %c0_5 = arith.constant 0 : index
    %3 = vector.load %arg3[%c0_4, %c0_5] : memref<1152x24xbf16, #tpu.memory_space<vmem>>, vector<1152x24xbf16>
    %cst = arith.constant dense<0.000000e+00> : vector<25x24xf32>
    %4 = tpu.matmul %2, %3, %cst {dimension_numbers = #tpu.dot_dimension_numbers<[1], [0], [0], [1], [0, 0, 1, 1], [], []>} : vector<25x1152xbf16>, vector<1152x24xbf16>, vector<25x24xf32> -> vector<25x24xf32>
    %c0_6 = arith.constant 0 : index
    %c0_7 = arith.constant 0 : index
    %5 = vector.load %arg4[%c0_6, %c0_7] : memref<1x24xf32, #tpu.memory_space<vmem>>, vector<1x24xf32>
    %6 = vector.broadcast %5 : vector<1x24xf32> to vector<25x24xf32>
    %7 = arith.addf %4, %6 : vector<25x24xf32>
    %8 = vector.extract_strided_slice %0 {offsets = [0, 0], sizes = [1, 1], strides = [1, 1]} : vector<1x8xf32> to vector<1x1xf32>
    %cst_8 = arith.constant 0.000000e+00 : f32
    %9 = vector.broadcast %cst_8 : f32 to vector<25x24xf32>
    %10 = arith.cmpf ogt, %7, %9 : vector<25x24xf32>
    %11 = vector.broadcast %8 : vector<1x1xf32> to vector<25x24xf32>
    %12 = arith.mulf %11, %7 : vector<25x24xf32>
    %13 = arith.select %10, %7, %12 : vector<25x24xi1>, vector<25x24xf32>
    %14 = vector.extract_strided_slice %0 {offsets = [0, 1], sizes = [1, 1], strides = [1, 1]} : vector<1x8xf32> to vector<1x1xf32>
    %15 = vector.extract_strided_slice %0 {offsets = [0, 2], sizes = [1, 1], strides = [1, 1]} : vector<1x8xf32> to vector<1x1xf32>
    %cst_9 = arith.constant 0.000000e+00 : f32
    %16 = vector.broadcast %cst_9 : f32 to vector<6x24xf32>
    %17 = tpu.concatenate %16, %13, %16 in 0 : vector<6x24xf32>, vector<25x24xf32>, vector<6x24xf32> -> vector<37x24xf32>
    %cst_10 = arith.constant 0.000000e+00 : f32
    %18 = vector.broadcast %cst_10 : f32 to vector<25x24xf32>
    %19 = vector.extract_strided_slice %17 {offsets = [0, 0], sizes = [25, 24], strides = [1, 1]} : vector<37x24xf32> to vector<25x24xf32>
    %c0_11 = arith.constant 0 : index
    %c0_12 = arith.constant 0 : index
    %c0_13 = arith.constant 0 : index
    %20 = vector.load %arg2[%c0_11, %c0_12, %c0_13] : memref<9x25x24xf32, #tpu.memory_space<vmem>>, vector<1x25x24xf32>
    %21 = vector.shape_cast %20 : vector<1x25x24xf32> to vector<25x24xf32>
    %22 = arith.mulf %19, %21 : vector<25x24xf32>
    %c0_14 = arith.constant 0 : index
    %c0_15 = arith.constant 0 : index
    %c0_16 = arith.constant 0 : index
    %23 = vector.load %arg5[%c0_14, %c0_15, %c0_16] : memref<9x24x24xf32, #tpu.memory_space<vmem>>, vector<1x24x24xf32>
    %24 = vector.shape_cast %23 : vector<1x24x24xf32> to vector<24x24xf32>
    %cst_17 = arith.constant dense<0.000000e+00> : vector<25x24xf32>
    %25 = tpu.matmul %22, %24, %cst_17 {dimension_numbers = #tpu.dot_dimension_numbers<[1], [0], [0], [1], [0, 0, 1, 1], [], []>} : vector<25x24xf32>, vector<24x24xf32>, vector<25x24xf32> -> vector<25x24xf32>
    %26 = arith.addf %18, %25 : vector<25x24xf32>
    %27 = vector.extract_strided_slice %17 {offsets = [1, 0], sizes = [25, 24], strides = [1, 1]} : vector<37x24xf32> to vector<25x24xf32>
    %c1 = arith.constant 1 : index
    %c0_18 = arith.constant 0 : index
    %c0_19 = arith.constant 0 : index
    %28 = vector.load %arg2[%c1, %c0_18, %c0_19] : memref<9x25x24xf32, #tpu.memory_space<vmem>>, vector<1x25x24xf32>
    %29 = vector.shape_cast %28 : vector<1x25x24xf32> to vector<25x24xf32>
    %30 = arith.mulf %27, %29 : vector<25x24xf32>
    %c1_20 = arith.constant 1 : index
    %c0_21 = arith.constant 0 : index
    %c0_22 = arith.constant 0 : index
    %31 = vector.load %arg5[%c1_20, %c0_21, %c0_22] : memref<9x24x24xf32, #tpu.memory_space<vmem>>, vector<1x24x24xf32>
    %32 = vector.shape_cast %31 : vector<1x24x24xf32> to vector<24x24xf32>
    %cst_23 = arith.constant dense<0.000000e+00> : vector<25x24xf32>
    %33 = tpu.matmul %30, %32, %cst_23 {dimension_numbers = #tpu.dot_dimension_numbers<[1], [0], [0], [1], [0, 0, 1, 1], [], []>} : vector<25x24xf32>, vector<24x24xf32>, vector<25x24xf32> -> vector<25x24xf32>
    %34 = arith.addf %26, %33 : vector<25x24xf32>
    %35 = vector.extract_strided_slice %17 {offsets = [2, 0], sizes = [25, 24], strides = [1, 1]} : vector<37x24xf32> to vector<25x24xf32>
    %c2 = arith.constant 2 : index
    %c0_24 = arith.constant 0 : index
    %c0_25 = arith.constant 0 : index
    %36 = vector.load %arg2[%c2, %c0_24, %c0_25] : memref<9x25x24xf32, #tpu.memory_space<vmem>>, vector<1x25x24xf32>
    %37 = vector.shape_cast %36 : vector<1x25x24xf32> to vector<25x24xf32>
    %38 = arith.mulf %35, %37 : vector<25x24xf32>
    %c2_26 = arith.constant 2 : index
    %c0_27 = arith.constant 0 : index
    %c0_28 = arith.constant 0 : index
    %39 = vector.load %arg5[%c2_26, %c0_27, %c0_28] : memref<9x24x24xf32, #tpu.memory_space<vmem>>, vector<1x24x24xf32>
    %40 = vector.shape_cast %39 : vector<1x24x24xf32> to vector<24x24xf32>
    %cst_29 = arith.constant dense<0.000000e+00> : vector<25x24xf32>
    %41 = tpu.matmul %38, %40, %cst_29 {dimension_numbers = #tpu.dot_dimension_numbers<[1], [0], [0], [1], [0, 0, 1, 1], [], []>} : vector<25x24xf32>, vector<24x24xf32>, vector<25x24xf32> -> vector<25x24xf32>
    %42 = arith.addf %34, %41 : vector<25x24xf32>
    %43 = vector.extract_strided_slice %17 {offsets = [5, 0], sizes = [25, 24], strides = [1, 1]} : vector<37x24xf32> to vector<25x24xf32>
    %c3 = arith.constant 3 : index
    %c0_30 = arith.constant 0 : index
    %c0_31 = arith.constant 0 : index
    %44 = vector.load %arg2[%c3, %c0_30, %c0_31] : memref<9x25x24xf32, #tpu.memory_space<vmem>>, vector<1x25x24xf32>
    %45 = vector.shape_cast %44 : vector<1x25x24xf32> to vector<25x24xf32>
    %46 = arith.mulf %43, %45 : vector<25x24xf32>
    %c3_32 = arith.constant 3 : index
    %c0_33 = arith.constant 0 : index
    %c0_34 = arith.constant 0 : index
    %47 = vector.load %arg5[%c3_32, %c0_33, %c0_34] : memref<9x24x24xf32, #tpu.memory_space<vmem>>, vector<1x24x24xf32>
    %48 = vector.shape_cast %47 : vector<1x24x24xf32> to vector<24x24xf32>
    %cst_35 = arith.constant dense<0.000000e+00> : vector<25x24xf32>
    %49 = tpu.matmul %46, %48, %cst_35 {dimension_numbers = #tpu.dot_dimension_numbers<[1], [0], [0], [1], [0, 0, 1, 1], [], []>} : vector<25x24xf32>, vector<24x24xf32>, vector<25x24xf32> -> vector<25x24xf32>
    %50 = arith.addf %42, %49 : vector<25x24xf32>
    %51 = vector.extract_strided_slice %17 {offsets = [6, 0], sizes = [25, 24], strides = [1, 1]} : vector<37x24xf32> to vector<25x24xf32>
    %c4 = arith.constant 4 : index
    %c0_36 = arith.constant 0 : index
    %c0_37 = arith.constant 0 : index
    %52 = vector.load %arg2[%c4, %c0_36, %c0_37] : memref<9x25x24xf32, #tpu.memory_space<vmem>>, vector<1x25x24xf32>
    %53 = vector.shape_cast %52 : vector<1x25x24xf32> to vector<25x24xf32>
    %54 = arith.mulf %51, %53 : vector<25x24xf32>
    %c4_38 = arith.constant 4 : index
    %c0_39 = arith.constant 0 : index
    %c0_40 = arith.constant 0 : index
    %55 = vector.load %arg5[%c4_38, %c0_39, %c0_40] : memref<9x24x24xf32, #tpu.memory_space<vmem>>, vector<1x24x24xf32>
    %56 = vector.shape_cast %55 : vector<1x24x24xf32> to vector<24x24xf32>
    %cst_41 = arith.constant dense<0.000000e+00> : vector<25x24xf32>
    %57 = tpu.matmul %54, %56, %cst_41 {dimension_numbers = #tpu.dot_dimension_numbers<[1], [0], [0], [1], [0, 0, 1, 1], [], []>} : vector<25x24xf32>, vector<24x24xf32>, vector<25x24xf32> -> vector<25x24xf32>
    %58 = arith.addf %50, %57 : vector<25x24xf32>
    %59 = vector.extract_strided_slice %17 {offsets = [7, 0], sizes = [25, 24], strides = [1, 1]} : vector<37x24xf32> to vector<25x24xf32>
    %c5 = arith.constant 5 : index
    %c0_42 = arith.constant 0 : index
    %c0_43 = arith.constant 0 : index
    %60 = vector.load %arg2[%c5, %c0_42, %c0_43] : memref<9x25x24xf32, #tpu.memory_space<vmem>>, vector<1x25x24xf32>
    %61 = vector.shape_cast %60 : vector<1x25x24xf32> to vector<25x24xf32>
    %62 = arith.mulf %59, %61 : vector<25x24xf32>
    %c5_44 = arith.constant 5 : index
    %c0_45 = arith.constant 0 : index
    %c0_46 = arith.constant 0 : index
    %63 = vector.load %arg5[%c5_44, %c0_45, %c0_46] : memref<9x24x24xf32, #tpu.memory_space<vmem>>, vector<1x24x24xf32>
    %64 = vector.shape_cast %63 : vector<1x24x24xf32> to vector<24x24xf32>
    %cst_47 = arith.constant dense<0.000000e+00> : vector<25x24xf32>
    %65 = tpu.matmul %62, %64, %cst_47 {dimension_numbers = #tpu.dot_dimension_numbers<[1], [0], [0], [1], [0, 0, 1, 1], [], []>} : vector<25x24xf32>, vector<24x24xf32>, vector<25x24xf32> -> vector<25x24xf32>
    %66 = arith.addf %58, %65 : vector<25x24xf32>
    %67 = vector.extract_strided_slice %17 {offsets = [10, 0], sizes = [25, 24], strides = [1, 1]} : vector<37x24xf32> to vector<25x24xf32>
    %c6 = arith.constant 6 : index
    %c0_48 = arith.constant 0 : index
    %c0_49 = arith.constant 0 : index
    %68 = vector.load %arg2[%c6, %c0_48, %c0_49] : memref<9x25x24xf32, #tpu.memory_space<vmem>>, vector<1x25x24xf32>
    %69 = vector.shape_cast %68 : vector<1x25x24xf32> to vector<25x24xf32>
    %70 = arith.mulf %67, %69 : vector<25x24xf32>
    %c6_50 = arith.constant 6 : index
    %c0_51 = arith.constant 0 : index
    %c0_52 = arith.constant 0 : index
    %71 = vector.load %arg5[%c6_50, %c0_51, %c0_52] : memref<9x24x24xf32, #tpu.memory_space<vmem>>, vector<1x24x24xf32>
    %72 = vector.shape_cast %71 : vector<1x24x24xf32> to vector<24x24xf32>
    %cst_53 = arith.constant dense<0.000000e+00> : vector<25x24xf32>
    %73 = tpu.matmul %70, %72, %cst_53 {dimension_numbers = #tpu.dot_dimension_numbers<[1], [0], [0], [1], [0, 0, 1, 1], [], []>} : vector<25x24xf32>, vector<24x24xf32>, vector<25x24xf32> -> vector<25x24xf32>
    %74 = arith.addf %66, %73 : vector<25x24xf32>
    %75 = vector.extract_strided_slice %17 {offsets = [11, 0], sizes = [25, 24], strides = [1, 1]} : vector<37x24xf32> to vector<25x24xf32>
    %c7 = arith.constant 7 : index
    %c0_54 = arith.constant 0 : index
    %c0_55 = arith.constant 0 : index
    %76 = vector.load %arg2[%c7, %c0_54, %c0_55] : memref<9x25x24xf32, #tpu.memory_space<vmem>>, vector<1x25x24xf32>
    %77 = vector.shape_cast %76 : vector<1x25x24xf32> to vector<25x24xf32>
    %78 = arith.mulf %75, %77 : vector<25x24xf32>
    %c7_56 = arith.constant 7 : index
    %c0_57 = arith.constant 0 : index
    %c0_58 = arith.constant 0 : index
    %79 = vector.load %arg5[%c7_56, %c0_57, %c0_58] : memref<9x24x24xf32, #tpu.memory_space<vmem>>, vector<1x24x24xf32>
    %80 = vector.shape_cast %79 : vector<1x24x24xf32> to vector<24x24xf32>
    %cst_59 = arith.constant dense<0.000000e+00> : vector<25x24xf32>
    %81 = tpu.matmul %78, %80, %cst_59 {dimension_numbers = #tpu.dot_dimension_numbers<[1], [0], [0], [1], [0, 0, 1, 1], [], []>} : vector<25x24xf32>, vector<24x24xf32>, vector<25x24xf32> -> vector<25x24xf32>
    %82 = arith.addf %74, %81 : vector<25x24xf32>
    %83 = vector.extract_strided_slice %17 {offsets = [12, 0], sizes = [25, 24], strides = [1, 1]} : vector<37x24xf32> to vector<25x24xf32>
    %c8 = arith.constant 8 : index
    %c0_60 = arith.constant 0 : index
    %c0_61 = arith.constant 0 : index
    %84 = vector.load %arg2[%c8, %c0_60, %c0_61] : memref<9x25x24xf32, #tpu.memory_space<vmem>>, vector<1x25x24xf32>
    %85 = vector.shape_cast %84 : vector<1x25x24xf32> to vector<25x24xf32>
    %86 = arith.mulf %83, %85 : vector<25x24xf32>
    %c8_62 = arith.constant 8 : index
    %c0_63 = arith.constant 0 : index
    %c0_64 = arith.constant 0 : index
    %87 = vector.load %arg5[%c8_62, %c0_63, %c0_64] : memref<9x24x24xf32, #tpu.memory_space<vmem>>, vector<1x24x24xf32>
    %88 = vector.shape_cast %87 : vector<1x24x24xf32> to vector<24x24xf32>
    %cst_65 = arith.constant dense<0.000000e+00> : vector<25x24xf32>
    %89 = tpu.matmul %86, %88, %cst_65 {dimension_numbers = #tpu.dot_dimension_numbers<[1], [0], [0], [1], [0, 0, 1, 1], [], []>} : vector<25x24xf32>, vector<24x24xf32>, vector<25x24xf32> -> vector<25x24xf32>
    %90 = arith.addf %82, %89 : vector<25x24xf32>
    %c0_66 = arith.constant 0 : index
    %c0_67 = arith.constant 0 : index
    %91 = vector.load %arg6[%c0_66, %c0_67] : memref<1x24xf32, #tpu.memory_space<vmem>>, vector<1x24xf32>
    %92 = vector.broadcast %91 : vector<1x24xf32> to vector<25x24xf32>
    %93 = arith.addf %90, %92 : vector<25x24xf32>
    %cst_68 = arith.constant 0.000000e+00 : f32
    %94 = vector.broadcast %cst_68 : f32 to vector<25x24xf32>
    %95 = arith.cmpf ogt, %93, %94 : vector<25x24xf32>
    %96 = vector.broadcast %14 : vector<1x1xf32> to vector<25x24xf32>
    %97 = arith.mulf %96, %93 : vector<25x24xf32>
    %98 = arith.select %95, %93, %97 : vector<25x24xi1>, vector<25x24xf32>
    %c0_69 = arith.constant 0 : index
    %c0_70 = arith.constant 0 : index
    %99 = vector.load %arg7[%c0_69, %c0_70] : memref<1x24xf32, #tpu.memory_space<vmem>>, vector<1x24xf32>
    %100 = vector.broadcast %99 : vector<1x24xf32> to vector<25x24xf32>
    %101 = arith.mulf %98, %100 : vector<25x24xf32>
    %c0_71 = arith.constant 0 : index
    %c0_72 = arith.constant 0 : index
    %102 = vector.load %arg8[%c0_71, %c0_72] : memref<1x24xf32, #tpu.memory_space<vmem>>, vector<1x24xf32>
    %103 = vector.broadcast %102 : vector<1x24xf32> to vector<25x24xf32>
    %104 = arith.addf %101, %103 : vector<25x24xf32>
    %cst_73 = arith.constant 0.000000e+00 : f32
    %105 = vector.broadcast %cst_73 : f32 to vector<25x24xf32>
    %106 = arith.cmpf ogt, %104, %105 : vector<25x24xf32>
    %107 = vector.broadcast %15 : vector<1x1xf32> to vector<25x24xf32>
    %108 = arith.mulf %107, %104 : vector<25x24xf32>
    %109 = arith.select %106, %104, %108 : vector<25x24xi1>, vector<25x24xf32>
    %cst_74 = arith.constant 0.000000e+00 : f32
    %110 = vector.broadcast %cst_74 : f32 to vector<6x24xf32>
    %111 = tpu.concatenate %110, %109, %110 in 0 : vector<6x24xf32>, vector<25x24xf32>, vector<6x24xf32> -> vector<37x24xf32>
    %cst_75 = arith.constant 0.000000e+00 : f32
    %112 = vector.broadcast %cst_75 : f32 to vector<25x24xf32>
    %113 = vector.extract_strided_slice %111 {offsets = [0, 0], sizes = [25, 24], strides = [1, 1]} : vector<37x24xf32> to vector<25x24xf32>
    %c0_76 = arith.constant 0 : index
    %c0_77 = arith.constant 0 : index
    %c0_78 = arith.constant 0 : index
    %114 = vector.load %arg2[%c0_76, %c0_77, %c0_78] : memref<9x25x24xf32, #tpu.memory_space<vmem>>, vector<1x25x24xf32>
    %115 = vector.shape_cast %114 : vector<1x25x24xf32> to vector<25x24xf32>
    %116 = arith.mulf %113, %115 : vector<25x24xf32>
    %c0_79 = arith.constant 0 : index
    %c0_80 = arith.constant 0 : index
    %c0_81 = arith.constant 0 : index
    %117 = vector.load %arg9[%c0_79, %c0_80, %c0_81] : memref<9x24x24xf32, #tpu.memory_space<vmem>>, vector<1x24x24xf32>
    %118 = vector.shape_cast %117 : vector<1x24x24xf32> to vector<24x24xf32>
    %cst_82 = arith.constant dense<0.000000e+00> : vector<25x24xf32>
    %119 = tpu.matmul %116, %118, %cst_82 {dimension_numbers = #tpu.dot_dimension_numbers<[1], [0], [0], [1], [0, 0, 1, 1], [], []>} : vector<25x24xf32>, vector<24x24xf32>, vector<25x24xf32> -> vector<25x24xf32>
    %120 = arith.addf %112, %119 : vector<25x24xf32>
    %121 = vector.extract_strided_slice %111 {offsets = [1, 0], sizes = [25, 24], strides = [1, 1]} : vector<37x24xf32> to vector<25x24xf32>
    %c1_83 = arith.constant 1 : index
    %c0_84 = arith.constant 0 : index
    %c0_85 = arith.constant 0 : index
    %122 = vector.load %arg2[%c1_83, %c0_84, %c0_85] : memref<9x25x24xf32, #tpu.memory_space<vmem>>, vector<1x25x24xf32>
    %123 = vector.shape_cast %122 : vector<1x25x24xf32> to vector<25x24xf32>
    %124 = arith.mulf %121, %123 : vector<25x24xf32>
    %c1_86 = arith.constant 1 : index
    %c0_87 = arith.constant 0 : index
    %c0_88 = arith.constant 0 : index
    %125 = vector.load %arg9[%c1_86, %c0_87, %c0_88] : memref<9x24x24xf32, #tpu.memory_space<vmem>>, vector<1x24x24xf32>
    %126 = vector.shape_cast %125 : vector<1x24x24xf32> to vector<24x24xf32>
    %cst_89 = arith.constant dense<0.000000e+00> : vector<25x24xf32>
    %127 = tpu.matmul %124, %126, %cst_89 {dimension_numbers = #tpu.dot_dimension_numbers<[1], [0], [0], [1], [0, 0, 1, 1], [], []>} : vector<25x24xf32>, vector<24x24xf32>, vector<25x24xf32> -> vector<25x24xf32>
    %128 = arith.addf %120, %127 : vector<25x24xf32>
    %129 = vector.extract_strided_slice %111 {offsets = [2, 0], sizes = [25, 24], strides = [1, 1]} : vector<37x24xf32> to vector<25x24xf32>
    %c2_90 = arith.constant 2 : index
    %c0_91 = arith.constant 0 : index
    %c0_92 = arith.constant 0 : index
    %130 = vector.load %arg2[%c2_90, %c0_91, %c0_92] : memref<9x25x24xf32, #tpu.memory_space<vmem>>, vector<1x25x24xf32>
    %131 = vector.shape_cast %130 : vector<1x25x24xf32> to vector<25x24xf32>
    %132 = arith.mulf %129, %131 : vector<25x24xf32>
    %c2_93 = arith.constant 2 : index
    %c0_94 = arith.constant 0 : index
    %c0_95 = arith.constant 0 : index
    %133 = vector.load %arg9[%c2_93, %c0_94, %c0_95] : memref<9x24x24xf32, #tpu.memory_space<vmem>>, vector<1x24x24xf32>
    %134 = vector.shape_cast %133 : vector<1x24x24xf32> to vector<24x24xf32>
    %cst_96 = arith.constant dense<0.000000e+00> : vector<25x24xf32>
    %135 = tpu.matmul %132, %134, %cst_96 {dimension_numbers = #tpu.dot_dimension_numbers<[1], [0], [0], [1], [0, 0, 1, 1], [], []>} : vector<25x24xf32>, vector<24x24xf32>, vector<25x24xf32> -> vector<25x24xf32>
    %136 = arith.addf %128, %135 : vector<25x24xf32>
    %137 = vector.extract_strided_slice %111 {offsets = [5, 0], sizes = [25, 24], strides = [1, 1]} : vector<37x24xf32> to vector<25x24xf32>
    %c3_97 = arith.constant 3 : index
    %c0_98 = arith.constant 0 : index
    %c0_99 = arith.constant 0 : index
    %138 = vector.load %arg2[%c3_97, %c0_98, %c0_99] : memref<9x25x24xf32, #tpu.memory_space<vmem>>, vector<1x25x24xf32>
    %139 = vector.shape_cast %138 : vector<1x25x24xf32> to vector<25x24xf32>
    %140 = arith.mulf %137, %139 : vector<25x24xf32>
    %c3_100 = arith.constant 3 : index
    %c0_101 = arith.constant 0 : index
    %c0_102 = arith.constant 0 : index
    %141 = vector.load %arg9[%c3_100, %c0_101, %c0_102] : memref<9x24x24xf32, #tpu.memory_space<vmem>>, vector<1x24x24xf32>
    %142 = vector.shape_cast %141 : vector<1x24x24xf32> to vector<24x24xf32>
    %cst_103 = arith.constant dense<0.000000e+00> : vector<25x24xf32>
    %143 = tpu.matmul %140, %142, %cst_103 {dimension_numbers = #tpu.dot_dimension_numbers<[1], [0], [0], [1], [0, 0, 1, 1], [], []>} : vector<25x24xf32>, vector<24x24xf32>, vector<25x24xf32> -> vector<25x24xf32>
    %144 = arith.addf %136, %143 : vector<25x24xf32>
    %145 = vector.extract_strided_slice %111 {offsets = [6, 0], sizes = [25, 24], strides = [1, 1]} : vector<37x24xf32> to vector<25x24xf32>
    %c4_104 = arith.constant 4 : index
    %c0_105 = arith.constant 0 : index
    %c0_106 = arith.constant 0 : index
    %146 = vector.load %arg2[%c4_104, %c0_105, %c0_106] : memref<9x25x24xf32, #tpu.memory_space<vmem>>, vector<1x25x24xf32>
    %147 = vector.shape_cast %146 : vector<1x25x24xf32> to vector<25x24xf32>
    %148 = arith.mulf %145, %147 : vector<25x24xf32>
    %c4_107 = arith.constant 4 : index
    %c0_108 = arith.constant 0 : index
    %c0_109 = arith.constant 0 : index
    %149 = vector.load %arg9[%c4_107, %c0_108, %c0_109] : memref<9x24x24xf32, #tpu.memory_space<vmem>>, vector<1x24x24xf32>
    %150 = vector.shape_cast %149 : vector<1x24x24xf32> to vector<24x24xf32>
    %cst_110 = arith.constant dense<0.000000e+00> : vector<25x24xf32>
    %151 = tpu.matmul %148, %150, %cst_110 {dimension_numbers = #tpu.dot_dimension_numbers<[1], [0], [0], [1], [0, 0, 1, 1], [], []>} : vector<25x24xf32>, vector<24x24xf32>, vector<25x24xf32> -> vector<25x24xf32>
    %152 = arith.addf %144, %151 : vector<25x24xf32>
    %153 = vector.extract_strided_slice %111 {offsets = [7, 0], sizes = [25, 24], strides = [1, 1]} : vector<37x24xf32> to vector<25x24xf32>
    %c5_111 = arith.constant 5 : index
    %c0_112 = arith.constant 0 : index
    %c0_113 = arith.constant 0 : index
    %154 = vector.load %arg2[%c5_111, %c0_112, %c0_113] : memref<9x25x24xf32, #tpu.memory_space<vmem>>, vector<1x25x24xf32>
    %155 = vector.shape_cast %154 : vector<1x25x24xf32> to vector<25x24xf32>
    %156 = arith.mulf %153, %155 : vector<25x24xf32>
    %c5_114 = arith.constant 5 : index
    %c0_115 = arith.constant 0 : index
    %c0_116 = arith.constant 0 : index
    %157 = vector.load %arg9[%c5_114, %c0_115, %c0_116] : memref<9x24x24xf32, #tpu.memory_space<vmem>>, vector<1x24x24xf32>
    %158 = vector.shape_cast %157 : vector<1x24x24xf32> to vector<24x24xf32>
    %cst_117 = arith.constant dense<0.000000e+00> : vector<25x24xf32>
    %159 = tpu.matmul %156, %158, %cst_117 {dimension_numbers = #tpu.dot_dimension_numbers<[1], [0], [0], [1], [0, 0, 1, 1], [], []>} : vector<25x24xf32>, vector<24x24xf32>, vector<25x24xf32> -> vector<25x24xf32>
    %160 = arith.addf %152, %159 : vector<25x24xf32>
    %161 = vector.extract_strided_slice %111 {offsets = [10, 0], sizes = [25, 24], strides = [1, 1]} : vector<37x24xf32> to vector<25x24xf32>
    %c6_118 = arith.constant 6 : index
    %c0_119 = arith.constant 0 : index
    %c0_120 = arith.constant 0 : index
    %162 = vector.load %arg2[%c6_118, %c0_119, %c0_120] : memref<9x25x24xf32, #tpu.memory_space<vmem>>, vector<1x25x24xf32>
    %163 = vector.shape_cast %162 : vector<1x25x24xf32> to vector<25x24xf32>
    %164 = arith.mulf %161, %163 : vector<25x24xf32>
    %c6_121 = arith.constant 6 : index
    %c0_122 = arith.constant 0 : index
    %c0_123 = arith.constant 0 : index
    %165 = vector.load %arg9[%c6_121, %c0_122, %c0_123] : memref<9x24x24xf32, #tpu.memory_space<vmem>>, vector<1x24x24xf32>
    %166 = vector.shape_cast %165 : vector<1x24x24xf32> to vector<24x24xf32>
    %cst_124 = arith.constant dense<0.000000e+00> : vector<25x24xf32>
    %167 = tpu.matmul %164, %166, %cst_124 {dimension_numbers = #tpu.dot_dimension_numbers<[1], [0], [0], [1], [0, 0, 1, 1], [], []>} : vector<25x24xf32>, vector<24x24xf32>, vector<25x24xf32> -> vector<25x24xf32>
    %168 = arith.addf %160, %167 : vector<25x24xf32>
    %169 = vector.extract_strided_slice %111 {offsets = [11, 0], sizes = [25, 24], strides = [1, 1]} : vector<37x24xf32> to vector<25x24xf32>
    %c7_125 = arith.constant 7 : index
    %c0_126 = arith.constant 0 : index
    %c0_127 = arith.constant 0 : index
    %170 = vector.load %arg2[%c7_125, %c0_126, %c0_127] : memref<9x25x24xf32, #tpu.memory_space<vmem>>, vector<1x25x24xf32>
    %171 = vector.shape_cast %170 : vector<1x25x24xf32> to vector<25x24xf32>
    %172 = arith.mulf %169, %171 : vector<25x24xf32>
    %c7_128 = arith.constant 7 : index
    %c0_129 = arith.constant 0 : index
    %c0_130 = arith.constant 0 : index
    %173 = vector.load %arg9[%c7_128, %c0_129, %c0_130] : memref<9x24x24xf32, #tpu.memory_space<vmem>>, vector<1x24x24xf32>
    %174 = vector.shape_cast %173 : vector<1x24x24xf32> to vector<24x24xf32>
    %cst_131 = arith.constant dense<0.000000e+00> : vector<25x24xf32>
    %175 = tpu.matmul %172, %174, %cst_131 {dimension_numbers = #tpu.dot_dimension_numbers<[1], [0], [0], [1], [0, 0, 1, 1], [], []>} : vector<25x24xf32>, vector<24x24xf32>, vector<25x24xf32> -> vector<25x24xf32>
    %176 = arith.addf %168, %175 : vector<25x24xf32>
    %177 = vector.extract_strided_slice %111 {offsets = [12, 0], sizes = [25, 24], strides = [1, 1]} : vector<37x24xf32> to vector<25x24xf32>
    %c8_132 = arith.constant 8 : index
    %c0_133 = arith.constant 0 : index
    %c0_134 = arith.constant 0 : index
    %178 = vector.load %arg2[%c8_132, %c0_133, %c0_134] : memref<9x25x24xf32, #tpu.memory_space<vmem>>, vector<1x25x24xf32>
    %179 = vector.shape_cast %178 : vector<1x25x24xf32> to vector<25x24xf32>
    %180 = arith.mulf %177, %179 : vector<25x24xf32>
    %c8_135 = arith.constant 8 : index
    %c0_136 = arith.constant 0 : index
    %c0_137 = arith.constant 0 : index
    %181 = vector.load %arg9[%c8_135, %c0_136, %c0_137] : memref<9x24x24xf32, #tpu.memory_space<vmem>>, vector<1x24x24xf32>
    %182 = vector.shape_cast %181 : vector<1x24x24xf32> to vector<24x24xf32>
    %cst_138 = arith.constant dense<0.000000e+00> : vector<25x24xf32>
    %183 = tpu.matmul %180, %182, %cst_138 {dimension_numbers = #tpu.dot_dimension_numbers<[1], [0], [0], [1], [0, 0, 1, 1], [], []>} : vector<25x24xf32>, vector<24x24xf32>, vector<25x24xf32> -> vector<25x24xf32>
    %184 = arith.addf %176, %183 : vector<25x24xf32>
    %c0_139 = arith.constant 0 : index
    %c0_140 = arith.constant 0 : index
    %185 = vector.load %arg10[%c0_139, %c0_140] : memref<1x24xf32, #tpu.memory_space<vmem>>, vector<1x24xf32>
    %186 = vector.broadcast %185 : vector<1x24xf32> to vector<25x24xf32>
    %187 = arith.addf %184, %186 : vector<25x24xf32>
    %188 = arith.addf %187, %13 : vector<25x24xf32>
    %cst_141 = arith.constant 0.000000e+00 : f32
    %189 = vector.broadcast %cst_141 : f32 to vector<25x24xf32>
    %190 = arith.cmpf ogt, %188, %189 : vector<25x24xf32>
    %191 = vector.broadcast %15 : vector<1x1xf32> to vector<25x24xf32>
    %192 = arith.mulf %191, %188 : vector<25x24xf32>
    %193 = arith.select %190, %188, %192 : vector<25x24xi1>, vector<25x24xf32>
    %194 = vector.extract_strided_slice %0 {offsets = [0, 3], sizes = [1, 1], strides = [1, 1]} : vector<1x8xf32> to vector<1x1xf32>
    %195 = vector.extract_strided_slice %0 {offsets = [0, 4], sizes = [1, 1], strides = [1, 1]} : vector<1x8xf32> to vector<1x1xf32>
    %cst_142 = arith.constant 0.000000e+00 : f32
    %196 = vector.broadcast %cst_142 : f32 to vector<6x24xf32>
    %197 = tpu.concatenate %196, %193, %196 in 0 : vector<6x24xf32>, vector<25x24xf32>, vector<6x24xf32> -> vector<37x24xf32>
    %cst_143 = arith.constant 0.000000e+00 : f32
    %198 = vector.broadcast %cst_143 : f32 to vector<25x24xf32>
    %199 = vector.extract_strided_slice %197 {offsets = [0, 0], sizes = [25, 24], strides = [1, 1]} : vector<37x24xf32> to vector<25x24xf32>
    %c0_144 = arith.constant 0 : index
    %c0_145 = arith.constant 0 : index
    %c0_146 = arith.constant 0 : index
    %200 = vector.load %arg2[%c0_144, %c0_145, %c0_146] : memref<9x25x24xf32, #tpu.memory_space<vmem>>, vector<1x25x24xf32>
    %201 = vector.shape_cast %200 : vector<1x25x24xf32> to vector<25x24xf32>
    %202 = arith.mulf %199, %201 : vector<25x24xf32>
    %c0_147 = arith.constant 0 : index
    %c0_148 = arith.constant 0 : index
    %c0_149 = arith.constant 0 : index
    %203 = vector.load %arg11[%c0_147, %c0_148, %c0_149] : memref<9x24x24xf32, #tpu.memory_space<vmem>>, vector<1x24x24xf32>
    %204 = vector.shape_cast %203 : vector<1x24x24xf32> to vector<24x24xf32>
    %cst_150 = arith.constant dense<0.000000e+00> : vector<25x24xf32>
    %205 = tpu.matmul %202, %204, %cst_150 {dimension_numbers = #tpu.dot_dimension_numbers<[1], [0], [0], [1], [0, 0, 1, 1], [], []>} : vector<25x24xf32>, vector<24x24xf32>, vector<25x24xf32> -> vector<25x24xf32>
    %206 = arith.addf %198, %205 : vector<25x24xf32>
    %207 = vector.extract_strided_slice %197 {offsets = [1, 0], sizes = [25, 24], strides = [1, 1]} : vector<37x24xf32> to vector<25x24xf32>
    %c1_151 = arith.constant 1 : index
    %c0_152 = arith.constant 0 : index
    %c0_153 = arith.constant 0 : index
    %208 = vector.load %arg2[%c1_151, %c0_152, %c0_153] : memref<9x25x24xf32, #tpu.memory_space<vmem>>, vector<1x25x24xf32>
    %209 = vector.shape_cast %208 : vector<1x25x24xf32> to vector<25x24xf32>
    %210 = arith.mulf %207, %209 : vector<25x24xf32>
    %c1_154 = arith.constant 1 : index
    %c0_155 = arith.constant 0 : index
    %c0_156 = arith.constant 0 : index
    %211 = vector.load %arg11[%c1_154, %c0_155, %c0_156] : memref<9x24x24xf32, #tpu.memory_space<vmem>>, vector<1x24x24xf32>
    %212 = vector.shape_cast %211 : vector<1x24x24xf32> to vector<24x24xf32>
    %cst_157 = arith.constant dense<0.000000e+00> : vector<25x24xf32>
    %213 = tpu.matmul %210, %212, %cst_157 {dimension_numbers = #tpu.dot_dimension_numbers<[1], [0], [0], [1], [0, 0, 1, 1], [], []>} : vector<25x24xf32>, vector<24x24xf32>, vector<25x24xf32> -> vector<25x24xf32>
    %214 = arith.addf %206, %213 : vector<25x24xf32>
    %215 = vector.extract_strided_slice %197 {offsets = [2, 0], sizes = [25, 24], strides = [1, 1]} : vector<37x24xf32> to vector<25x24xf32>
    %c2_158 = arith.constant 2 : index
    %c0_159 = arith.constant 0 : index
    %c0_160 = arith.constant 0 : index
    %216 = vector.load %arg2[%c2_158, %c0_159, %c0_160] : memref<9x25x24xf32, #tpu.memory_space<vmem>>, vector<1x25x24xf32>
    %217 = vector.shape_cast %216 : vector<1x25x24xf32> to vector<25x24xf32>
    %218 = arith.mulf %215, %217 : vector<25x24xf32>
    %c2_161 = arith.constant 2 : index
    %c0_162 = arith.constant 0 : index
    %c0_163 = arith.constant 0 : index
    %219 = vector.load %arg11[%c2_161, %c0_162, %c0_163] : memref<9x24x24xf32, #tpu.memory_space<vmem>>, vector<1x24x24xf32>
    %220 = vector.shape_cast %219 : vector<1x24x24xf32> to vector<24x24xf32>
    %cst_164 = arith.constant dense<0.000000e+00> : vector<25x24xf32>
    %221 = tpu.matmul %218, %220, %cst_164 {dimension_numbers = #tpu.dot_dimension_numbers<[1], [0], [0], [1], [0, 0, 1, 1], [], []>} : vector<25x24xf32>, vector<24x24xf32>, vector<25x24xf32> -> vector<25x24xf32>
    %222 = arith.addf %214, %221 : vector<25x24xf32>
    %223 = vector.extract_strided_slice %197 {offsets = [5, 0], sizes = [25, 24], strides = [1, 1]} : vector<37x24xf32> to vector<25x24xf32>
    %c3_165 = arith.constant 3 : index
    %c0_166 = arith.constant 0 : index
    %c0_167 = arith.constant 0 : index
    %224 = vector.load %arg2[%c3_165, %c0_166, %c0_167] : memref<9x25x24xf32, #tpu.memory_space<vmem>>, vector<1x25x24xf32>
    %225 = vector.shape_cast %224 : vector<1x25x24xf32> to vector<25x24xf32>
    %226 = arith.mulf %223, %225 : vector<25x24xf32>
    %c3_168 = arith.constant 3 : index
    %c0_169 = arith.constant 0 : index
    %c0_170 = arith.constant 0 : index
    %227 = vector.load %arg11[%c3_168, %c0_169, %c0_170] : memref<9x24x24xf32, #tpu.memory_space<vmem>>, vector<1x24x24xf32>
    %228 = vector.shape_cast %227 : vector<1x24x24xf32> to vector<24x24xf32>
    %cst_171 = arith.constant dense<0.000000e+00> : vector<25x24xf32>
    %229 = tpu.matmul %226, %228, %cst_171 {dimension_numbers = #tpu.dot_dimension_numbers<[1], [0], [0], [1], [0, 0, 1, 1], [], []>} : vector<25x24xf32>, vector<24x24xf32>, vector<25x24xf32> -> vector<25x24xf32>
    %230 = arith.addf %222, %229 : vector<25x24xf32>
    %231 = vector.extract_strided_slice %197 {offsets = [6, 0], sizes = [25, 24], strides = [1, 1]} : vector<37x24xf32> to vector<25x24xf32>
    %c4_172 = arith.constant 4 : index
    %c0_173 = arith.constant 0 : index
    %c0_174 = arith.constant 0 : index
    %232 = vector.load %arg2[%c4_172, %c0_173, %c0_174] : memref<9x25x24xf32, #tpu.memory_space<vmem>>, vector<1x25x24xf32>
    %233 = vector.shape_cast %232 : vector<1x25x24xf32> to vector<25x24xf32>
    %234 = arith.mulf %231, %233 : vector<25x24xf32>
    %c4_175 = arith.constant 4 : index
    %c0_176 = arith.constant 0 : index
    %c0_177 = arith.constant 0 : index
    %235 = vector.load %arg11[%c4_175, %c0_176, %c0_177] : memref<9x24x24xf32, #tpu.memory_space<vmem>>, vector<1x24x24xf32>
    %236 = vector.shape_cast %235 : vector<1x24x24xf32> to vector<24x24xf32>
    %cst_178 = arith.constant dense<0.000000e+00> : vector<25x24xf32>
    %237 = tpu.matmul %234, %236, %cst_178 {dimension_numbers = #tpu.dot_dimension_numbers<[1], [0], [0], [1], [0, 0, 1, 1], [], []>} : vector<25x24xf32>, vector<24x24xf32>, vector<25x24xf32> -> vector<25x24xf32>
    %238 = arith.addf %230, %237 : vector<25x24xf32>
    %239 = vector.extract_strided_slice %197 {offsets = [7, 0], sizes = [25, 24], strides = [1, 1]} : vector<37x24xf32> to vector<25x24xf32>
    %c5_179 = arith.constant 5 : index
    %c0_180 = arith.constant 0 : index
    %c0_181 = arith.constant 0 : index
    %240 = vector.load %arg2[%c5_179, %c0_180, %c0_181] : memref<9x25x24xf32, #tpu.memory_space<vmem>>, vector<1x25x24xf32>
    %241 = vector.shape_cast %240 : vector<1x25x24xf32> to vector<25x24xf32>
    %242 = arith.mulf %239, %241 : vector<25x24xf32>
    %c5_182 = arith.constant 5 : index
    %c0_183 = arith.constant 0 : index
    %c0_184 = arith.constant 0 : index
    %243 = vector.load %arg11[%c5_182, %c0_183, %c0_184] : memref<9x24x24xf32, #tpu.memory_space<vmem>>, vector<1x24x24xf32>
    %244 = vector.shape_cast %243 : vector<1x24x24xf32> to vector<24x24xf32>
    %cst_185 = arith.constant dense<0.000000e+00> : vector<25x24xf32>
    %245 = tpu.matmul %242, %244, %cst_185 {dimension_numbers = #tpu.dot_dimension_numbers<[1], [0], [0], [1], [0, 0, 1, 1], [], []>} : vector<25x24xf32>, vector<24x24xf32>, vector<25x24xf32> -> vector<25x24xf32>
    %246 = arith.addf %238, %245 : vector<25x24xf32>
    %247 = vector.extract_strided_slice %197 {offsets = [10, 0], sizes = [25, 24], strides = [1, 1]} : vector<37x24xf32> to vector<25x24xf32>
    %c6_186 = arith.constant 6 : index
    %c0_187 = arith.constant 0 : index
    %c0_188 = arith.constant 0 : index
    %248 = vector.load %arg2[%c6_186, %c0_187, %c0_188] : memref<9x25x24xf32, #tpu.memory_space<vmem>>, vector<1x25x24xf32>
    %249 = vector.shape_cast %248 : vector<1x25x24xf32> to vector<25x24xf32>
    %250 = arith.mulf %247, %249 : vector<25x24xf32>
    %c6_189 = arith.constant 6 : index
    %c0_190 = arith.constant 0 : index
    %c0_191 = arith.constant 0 : index
    %251 = vector.load %arg11[%c6_189, %c0_190, %c0_191] : memref<9x24x24xf32, #tpu.memory_space<vmem>>, vector<1x24x24xf32>
    %252 = vector.shape_cast %251 : vector<1x24x24xf32> to vector<24x24xf32>
    %cst_192 = arith.constant dense<0.000000e+00> : vector<25x24xf32>
    %253 = tpu.matmul %250, %252, %cst_192 {dimension_numbers = #tpu.dot_dimension_numbers<[1], [0], [0], [1], [0, 0, 1, 1], [], []>} : vector<25x24xf32>, vector<24x24xf32>, vector<25x24xf32> -> vector<25x24xf32>
    %254 = arith.addf %246, %253 : vector<25x24xf32>
    %255 = vector.extract_strided_slice %197 {offsets = [11, 0], sizes = [25, 24], strides = [1, 1]} : vector<37x24xf32> to vector<25x24xf32>
    %c7_193 = arith.constant 7 : index
    %c0_194 = arith.constant 0 : index
    %c0_195 = arith.constant 0 : index
    %256 = vector.load %arg2[%c7_193, %c0_194, %c0_195] : memref<9x25x24xf32, #tpu.memory_space<vmem>>, vector<1x25x24xf32>
    %257 = vector.shape_cast %256 : vector<1x25x24xf32> to vector<25x24xf32>
    %258 = arith.mulf %255, %257 : vector<25x24xf32>
    %c7_196 = arith.constant 7 : index
    %c0_197 = arith.constant 0 : index
    %c0_198 = arith.constant 0 : index
    %259 = vector.load %arg11[%c7_196, %c0_197, %c0_198] : memref<9x24x24xf32, #tpu.memory_space<vmem>>, vector<1x24x24xf32>
    %260 = vector.shape_cast %259 : vector<1x24x24xf32> to vector<24x24xf32>
    %cst_199 = arith.constant dense<0.000000e+00> : vector<25x24xf32>
    %261 = tpu.matmul %258, %260, %cst_199 {dimension_numbers = #tpu.dot_dimension_numbers<[1], [0], [0], [1], [0, 0, 1, 1], [], []>} : vector<25x24xf32>, vector<24x24xf32>, vector<25x24xf32> -> vector<25x24xf32>
    %262 = arith.addf %254, %261 : vector<25x24xf32>
    %263 = vector.extract_strided_slice %197 {offsets = [12, 0], sizes = [25, 24], strides = [1, 1]} : vector<37x24xf32> to vector<25x24xf32>
    %c8_200 = arith.constant 8 : index
    %c0_201 = arith.constant 0 : index
    %c0_202 = arith.constant 0 : index
    %264 = vector.load %arg2[%c8_200, %c0_201, %c0_202] : memref<9x25x24xf32, #tpu.memory_space<vmem>>, vector<1x25x24xf32>
    %265 = vector.shape_cast %264 : vector<1x25x24xf32> to vector<25x24xf32>
    %266 = arith.mulf %263, %265 : vector<25x24xf32>
    %c8_203 = arith.constant 8 : index
    %c0_204 = arith.constant 0 : index
    %c0_205 = arith.constant 0 : index
    %267 = vector.load %arg11[%c8_203, %c0_204, %c0_205] : memref<9x24x24xf32, #tpu.memory_space<vmem>>, vector<1x24x24xf32>
    %268 = vector.shape_cast %267 : vector<1x24x24xf32> to vector<24x24xf32>
    %cst_206 = arith.constant dense<0.000000e+00> : vector<25x24xf32>
    %269 = tpu.matmul %266, %268, %cst_206 {dimension_numbers = #tpu.dot_dimension_numbers<[1], [0], [0], [1], [0, 0, 1, 1], [], []>} : vector<25x24xf32>, vector<24x24xf32>, vector<25x24xf32> -> vector<25x24xf32>
    %270 = arith.addf %262, %269 : vector<25x24xf32>
    %c0_207 = arith.constant 0 : index
    %c0_208 = arith.constant 0 : index
    %271 = vector.load %arg12[%c0_207, %c0_208] : memref<1x24xf32, #tpu.memory_space<vmem>>, vector<1x24xf32>
    %272 = vector.broadcast %271 : vector<1x24xf32> to vector<25x24xf32>
    %273 = arith.addf %270, %272 : vector<25x24xf32>
    %cst_209 = arith.constant 0.000000e+00 : f32
    %274 = vector.broadcast %cst_209 : f32 to vector<25x24xf32>
    %275 = arith.cmpf ogt, %273, %274 : vector<25x24xf32>
    %276 = vector.broadcast %194 : vector<1x1xf32> to vector<25x24xf32>
    %277 = arith.mulf %276, %273 : vector<25x24xf32>
    %278 = arith.select %275, %273, %277 : vector<25x24xi1>, vector<25x24xf32>
    %c0_210 = arith.constant 0 : index
    %c0_211 = arith.constant 0 : index
    %279 = vector.load %arg13[%c0_210, %c0_211] : memref<1x24xf32, #tpu.memory_space<vmem>>, vector<1x24xf32>
    %280 = vector.broadcast %279 : vector<1x24xf32> to vector<25x24xf32>
    %281 = arith.mulf %278, %280 : vector<25x24xf32>
    %c0_212 = arith.constant 0 : index
    %c0_213 = arith.constant 0 : index
    %282 = vector.load %arg14[%c0_212, %c0_213] : memref<1x24xf32, #tpu.memory_space<vmem>>, vector<1x24xf32>
    %283 = vector.broadcast %282 : vector<1x24xf32> to vector<25x24xf32>
    %284 = arith.addf %281, %283 : vector<25x24xf32>
    %cst_214 = arith.constant 0.000000e+00 : f32
    %285 = vector.broadcast %cst_214 : f32 to vector<25x24xf32>
    %286 = arith.cmpf ogt, %284, %285 : vector<25x24xf32>
    %287 = vector.broadcast %195 : vector<1x1xf32> to vector<25x24xf32>
    %288 = arith.mulf %287, %284 : vector<25x24xf32>
    %289 = arith.select %286, %284, %288 : vector<25x24xi1>, vector<25x24xf32>
    %cst_215 = arith.constant 0.000000e+00 : f32
    %290 = vector.broadcast %cst_215 : f32 to vector<6x24xf32>
    %291 = tpu.concatenate %290, %289, %290 in 0 : vector<6x24xf32>, vector<25x24xf32>, vector<6x24xf32> -> vector<37x24xf32>
    %cst_216 = arith.constant 0.000000e+00 : f32
    %292 = vector.broadcast %cst_216 : f32 to vector<25x24xf32>
    %293 = vector.extract_strided_slice %291 {offsets = [0, 0], sizes = [25, 24], strides = [1, 1]} : vector<37x24xf32> to vector<25x24xf32>
    %c0_217 = arith.constant 0 : index
    %c0_218 = arith.constant 0 : index
    %c0_219 = arith.constant 0 : index
    %294 = vector.load %arg2[%c0_217, %c0_218, %c0_219] : memref<9x25x24xf32, #tpu.memory_space<vmem>>, vector<1x25x24xf32>
    %295 = vector.shape_cast %294 : vector<1x25x24xf32> to vector<25x24xf32>
    %296 = arith.mulf %293, %295 : vector<25x24xf32>
    %c0_220 = arith.constant 0 : index
    %c0_221 = arith.constant 0 : index
    %c0_222 = arith.constant 0 : index
    %297 = vector.load %arg15[%c0_220, %c0_221, %c0_222] : memref<9x24x24xf32, #tpu.memory_space<vmem>>, vector<1x24x24xf32>
    %298 = vector.shape_cast %297 : vector<1x24x24xf32> to vector<24x24xf32>
    %cst_223 = arith.constant dense<0.000000e+00> : vector<25x24xf32>
    %299 = tpu.matmul %296, %298, %cst_223 {dimension_numbers = #tpu.dot_dimension_numbers<[1], [0], [0], [1], [0, 0, 1, 1], [], []>} : vector<25x24xf32>, vector<24x24xf32>, vector<25x24xf32> -> vector<25x24xf32>
    %300 = arith.addf %292, %299 : vector<25x24xf32>
    %301 = vector.extract_strided_slice %291 {offsets = [1, 0], sizes = [25, 24], strides = [1, 1]} : vector<37x24xf32> to vector<25x24xf32>
    %c1_224 = arith.constant 1 : index
    %c0_225 = arith.constant 0 : index
    %c0_226 = arith.constant 0 : index
    %302 = vector.load %arg2[%c1_224, %c0_225, %c0_226] : memref<9x25x24xf32, #tpu.memory_space<vmem>>, vector<1x25x24xf32>
    %303 = vector.shape_cast %302 : vector<1x25x24xf32> to vector<25x24xf32>
    %304 = arith.mulf %301, %303 : vector<25x24xf32>
    %c1_227 = arith.constant 1 : index
    %c0_228 = arith.constant 0 : index
    %c0_229 = arith.constant 0 : index
    %305 = vector.load %arg15[%c1_227, %c0_228, %c0_229] : memref<9x24x24xf32, #tpu.memory_space<vmem>>, vector<1x24x24xf32>
    %306 = vector.shape_cast %305 : vector<1x24x24xf32> to vector<24x24xf32>
    %cst_230 = arith.constant dense<0.000000e+00> : vector<25x24xf32>
    %307 = tpu.matmul %304, %306, %cst_230 {dimension_numbers = #tpu.dot_dimension_numbers<[1], [0], [0], [1], [0, 0, 1, 1], [], []>} : vector<25x24xf32>, vector<24x24xf32>, vector<25x24xf32> -> vector<25x24xf32>
    %308 = arith.addf %300, %307 : vector<25x24xf32>
    %309 = vector.extract_strided_slice %291 {offsets = [2, 0], sizes = [25, 24], strides = [1, 1]} : vector<37x24xf32> to vector<25x24xf32>
    %c2_231 = arith.constant 2 : index
    %c0_232 = arith.constant 0 : index
    %c0_233 = arith.constant 0 : index
    %310 = vector.load %arg2[%c2_231, %c0_232, %c0_233] : memref<9x25x24xf32, #tpu.memory_space<vmem>>, vector<1x25x24xf32>
    %311 = vector.shape_cast %310 : vector<1x25x24xf32> to vector<25x24xf32>
    %312 = arith.mulf %309, %311 : vector<25x24xf32>
    %c2_234 = arith.constant 2 : index
    %c0_235 = arith.constant 0 : index
    %c0_236 = arith.constant 0 : index
    %313 = vector.load %arg15[%c2_234, %c0_235, %c0_236] : memref<9x24x24xf32, #tpu.memory_space<vmem>>, vector<1x24x24xf32>
    %314 = vector.shape_cast %313 : vector<1x24x24xf32> to vector<24x24xf32>
    %cst_237 = arith.constant dense<0.000000e+00> : vector<25x24xf32>
    %315 = tpu.matmul %312, %314, %cst_237 {dimension_numbers = #tpu.dot_dimension_numbers<[1], [0], [0], [1], [0, 0, 1, 1], [], []>} : vector<25x24xf32>, vector<24x24xf32>, vector<25x24xf32> -> vector<25x24xf32>
    %316 = arith.addf %308, %315 : vector<25x24xf32>
    %317 = vector.extract_strided_slice %291 {offsets = [5, 0], sizes = [25, 24], strides = [1, 1]} : vector<37x24xf32> to vector<25x24xf32>
    %c3_238 = arith.constant 3 : index
    %c0_239 = arith.constant 0 : index
    %c0_240 = arith.constant 0 : index
    %318 = vector.load %arg2[%c3_238, %c0_239, %c0_240] : memref<9x25x24xf32, #tpu.memory_space<vmem>>, vector<1x25x24xf32>
    %319 = vector.shape_cast %318 : vector<1x25x24xf32> to vector<25x24xf32>
    %320 = arith.mulf %317, %319 : vector<25x24xf32>
    %c3_241 = arith.constant 3 : index
    %c0_242 = arith.constant 0 : index
    %c0_243 = arith.constant 0 : index
    %321 = vector.load %arg15[%c3_241, %c0_242, %c0_243] : memref<9x24x24xf32, #tpu.memory_space<vmem>>, vector<1x24x24xf32>
    %322 = vector.shape_cast %321 : vector<1x24x24xf32> to vector<24x24xf32>
    %cst_244 = arith.constant dense<0.000000e+00> : vector<25x24xf32>
    %323 = tpu.matmul %320, %322, %cst_244 {dimension_numbers = #tpu.dot_dimension_numbers<[1], [0], [0], [1], [0, 0, 1, 1], [], []>} : vector<25x24xf32>, vector<24x24xf32>, vector<25x24xf32> -> vector<25x24xf32>
    %324 = arith.addf %316, %323 : vector<25x24xf32>
    %325 = vector.extract_strided_slice %291 {offsets = [6, 0], sizes = [25, 24], strides = [1, 1]} : vector<37x24xf32> to vector<25x24xf32>
    %c4_245 = arith.constant 4 : index
    %c0_246 = arith.constant 0 : index
    %c0_247 = arith.constant 0 : index
    %326 = vector.load %arg2[%c4_245, %c0_246, %c0_247] : memref<9x25x24xf32, #tpu.memory_space<vmem>>, vector<1x25x24xf32>
    %327 = vector.shape_cast %326 : vector<1x25x24xf32> to vector<25x24xf32>
    %328 = arith.mulf %325, %327 : vector<25x24xf32>
    %c4_248 = arith.constant 4 : index
    %c0_249 = arith.constant 0 : index
    %c0_250 = arith.constant 0 : index
    %329 = vector.load %arg15[%c4_248, %c0_249, %c0_250] : memref<9x24x24xf32, #tpu.memory_space<vmem>>, vector<1x24x24xf32>
    %330 = vector.shape_cast %329 : vector<1x24x24xf32> to vector<24x24xf32>
    %cst_251 = arith.constant dense<0.000000e+00> : vector<25x24xf32>
    %331 = tpu.matmul %328, %330, %cst_251 {dimension_numbers = #tpu.dot_dimension_numbers<[1], [0], [0], [1], [0, 0, 1, 1], [], []>} : vector<25x24xf32>, vector<24x24xf32>, vector<25x24xf32> -> vector<25x24xf32>
    %332 = arith.addf %324, %331 : vector<25x24xf32>
    %333 = vector.extract_strided_slice %291 {offsets = [7, 0], sizes = [25, 24], strides = [1, 1]} : vector<37x24xf32> to vector<25x24xf32>
    %c5_252 = arith.constant 5 : index
    %c0_253 = arith.constant 0 : index
    %c0_254 = arith.constant 0 : index
    %334 = vector.load %arg2[%c5_252, %c0_253, %c0_254] : memref<9x25x24xf32, #tpu.memory_space<vmem>>, vector<1x25x24xf32>
    %335 = vector.shape_cast %334 : vector<1x25x24xf32> to vector<25x24xf32>
    %336 = arith.mulf %333, %335 : vector<25x24xf32>
    %c5_255 = arith.constant 5 : index
    %c0_256 = arith.constant 0 : index
    %c0_257 = arith.constant 0 : index
    %337 = vector.load %arg15[%c5_255, %c0_256, %c0_257] : memref<9x24x24xf32, #tpu.memory_space<vmem>>, vector<1x24x24xf32>
    %338 = vector.shape_cast %337 : vector<1x24x24xf32> to vector<24x24xf32>
    %cst_258 = arith.constant dense<0.000000e+00> : vector<25x24xf32>
    %339 = tpu.matmul %336, %338, %cst_258 {dimension_numbers = #tpu.dot_dimension_numbers<[1], [0], [0], [1], [0, 0, 1, 1], [], []>} : vector<25x24xf32>, vector<24x24xf32>, vector<25x24xf32> -> vector<25x24xf32>
    %340 = arith.addf %332, %339 : vector<25x24xf32>
    %341 = vector.extract_strided_slice %291 {offsets = [10, 0], sizes = [25, 24], strides = [1, 1]} : vector<37x24xf32> to vector<25x24xf32>
    %c6_259 = arith.constant 6 : index
    %c0_260 = arith.constant 0 : index
    %c0_261 = arith.constant 0 : index
    %342 = vector.load %arg2[%c6_259, %c0_260, %c0_261] : memref<9x25x24xf32, #tpu.memory_space<vmem>>, vector<1x25x24xf32>
    %343 = vector.shape_cast %342 : vector<1x25x24xf32> to vector<25x24xf32>
    %344 = arith.mulf %341, %343 : vector<25x24xf32>
    %c6_262 = arith.constant 6 : index
    %c0_263 = arith.constant 0 : index
    %c0_264 = arith.constant 0 : index
    %345 = vector.load %arg15[%c6_262, %c0_263, %c0_264] : memref<9x24x24xf32, #tpu.memory_space<vmem>>, vector<1x24x24xf32>
    %346 = vector.shape_cast %345 : vector<1x24x24xf32> to vector<24x24xf32>
    %cst_265 = arith.constant dense<0.000000e+00> : vector<25x24xf32>
    %347 = tpu.matmul %344, %346, %cst_265 {dimension_numbers = #tpu.dot_dimension_numbers<[1], [0], [0], [1], [0, 0, 1, 1], [], []>} : vector<25x24xf32>, vector<24x24xf32>, vector<25x24xf32> -> vector<25x24xf32>
    %348 = arith.addf %340, %347 : vector<25x24xf32>
    %349 = vector.extract_strided_slice %291 {offsets = [11, 0], sizes = [25, 24], strides = [1, 1]} : vector<37x24xf32> to vector<25x24xf32>
    %c7_266 = arith.constant 7 : index
    %c0_267 = arith.constant 0 : index
    %c0_268 = arith.constant 0 : index
    %350 = vector.load %arg2[%c7_266, %c0_267, %c0_268] : memref<9x25x24xf32, #tpu.memory_space<vmem>>, vector<1x25x24xf32>
    %351 = vector.shape_cast %350 : vector<1x25x24xf32> to vector<25x24xf32>
    %352 = arith.mulf %349, %351 : vector<25x24xf32>
    %c7_269 = arith.constant 7 : index
    %c0_270 = arith.constant 0 : index
    %c0_271 = arith.constant 0 : index
    %353 = vector.load %arg15[%c7_269, %c0_270, %c0_271] : memref<9x24x24xf32, #tpu.memory_space<vmem>>, vector<1x24x24xf32>
    %354 = vector.shape_cast %353 : vector<1x24x24xf32> to vector<24x24xf32>
    %cst_272 = arith.constant dense<0.000000e+00> : vector<25x24xf32>
    %355 = tpu.matmul %352, %354, %cst_272 {dimension_numbers = #tpu.dot_dimension_numbers<[1], [0], [0], [1], [0, 0, 1, 1], [], []>} : vector<25x24xf32>, vector<24x24xf32>, vector<25x24xf32> -> vector<25x24xf32>
    %356 = arith.addf %348, %355 : vector<25x24xf32>
    %357 = vector.extract_strided_slice %291 {offsets = [12, 0], sizes = [25, 24], strides = [1, 1]} : vector<37x24xf32> to vector<25x24xf32>
    %c8_273 = arith.constant 8 : index
    %c0_274 = arith.constant 0 : index
    %c0_275 = arith.constant 0 : index
    %358 = vector.load %arg2[%c8_273, %c0_274, %c0_275] : memref<9x25x24xf32, #tpu.memory_space<vmem>>, vector<1x25x24xf32>
    %359 = vector.shape_cast %358 : vector<1x25x24xf32> to vector<25x24xf32>
    %360 = arith.mulf %357, %359 : vector<25x24xf32>
    %c8_276 = arith.constant 8 : index
    %c0_277 = arith.constant 0 : index
    %c0_278 = arith.constant 0 : index
    %361 = vector.load %arg15[%c8_276, %c0_277, %c0_278] : memref<9x24x24xf32, #tpu.memory_space<vmem>>, vector<1x24x24xf32>
    %362 = vector.shape_cast %361 : vector<1x24x24xf32> to vector<24x24xf32>
    %cst_279 = arith.constant dense<0.000000e+00> : vector<25x24xf32>
    %363 = tpu.matmul %360, %362, %cst_279 {dimension_numbers = #tpu.dot_dimension_numbers<[1], [0], [0], [1], [0, 0, 1, 1], [], []>} : vector<25x24xf32>, vector<24x24xf32>, vector<25x24xf32> -> vector<25x24xf32>
    %364 = arith.addf %356, %363 : vector<25x24xf32>
    %c0_280 = arith.constant 0 : index
    %c0_281 = arith.constant 0 : index
    %365 = vector.load %arg16[%c0_280, %c0_281] : memref<1x24xf32, #tpu.memory_space<vmem>>, vector<1x24xf32>
    %366 = vector.broadcast %365 : vector<1x24xf32> to vector<25x24xf32>
    %367 = arith.addf %364, %366 : vector<25x24xf32>
    %368 = arith.addf %367, %193 : vector<25x24xf32>
    %cst_282 = arith.constant 0.000000e+00 : f32
    %369 = vector.broadcast %cst_282 : f32 to vector<25x24xf32>
    %370 = arith.cmpf ogt, %368, %369 : vector<25x24xf32>
    %371 = vector.broadcast %195 : vector<1x1xf32> to vector<25x24xf32>
    %372 = arith.mulf %371, %368 : vector<25x24xf32>
    %373 = arith.select %370, %368, %372 : vector<25x24xi1>, vector<25x24xf32>
    %c0_283 = arith.constant 0 : index
    %c0_284 = arith.constant 0 : index
    %374 = vector.load %arg17[%c0_283, %c0_284] : memref<24x2xf32, #tpu.memory_space<vmem>>, vector<24x2xf32>
    %cst_285 = arith.constant dense<0.000000e+00> : vector<25x2xf32>
    %375 = tpu.matmul %373, %374, %cst_285 {dimension_numbers = #tpu.dot_dimension_numbers<[1], [0], [0], [1], [0, 0, 1, 1], [], []>} : vector<25x24xf32>, vector<24x2xf32>, vector<25x2xf32> -> vector<25x2xf32>
    %c0_286 = arith.constant 0 : index
    %c0_287 = arith.constant 0 : index
    %376 = vector.load %arg19[%c0_286, %c0_287] : memref<24x4xf32, #tpu.memory_space<vmem>>, vector<24x4xf32>
    %cst_288 = arith.constant dense<0.000000e+00> : vector<25x4xf32>
    %377 = tpu.matmul %373, %376, %cst_288 {dimension_numbers = #tpu.dot_dimension_numbers<[1], [0], [0], [1], [0, 0, 1, 1], [], []>} : vector<25x24xf32>, vector<24x4xf32>, vector<25x4xf32> -> vector<25x4xf32>
    %cst_289 = arith.constant dense<0.000000e+00> : vector<24xf32>
    %378 = vector.multi_reduction <add>, %373, %cst_289 [0] : vector<25x24xf32> to vector<24xf32>
    %379 = vector.shape_cast %378 : vector<24xf32> to vector<1x24xf32>
    %cst_290 = arith.constant 2.500000e+01 : f32
    %380 = vector.broadcast %cst_290 : f32 to vector<1x24xf32>
    %381 = arith.divf %379, %380 : vector<1x24xf32>
    %cst_291 = arith.constant dense<0.000000e+00> : vector<2xf32>
    %382 = vector.multi_reduction <add>, %375, %cst_291 [0] : vector<25x2xf32> to vector<2xf32>
    %383 = vector.shape_cast %382 : vector<2xf32> to vector<1x2xf32>
    %cst_292 = arith.constant 2.500000e+01 : f32
    %384 = vector.broadcast %cst_292 : f32 to vector<1x2xf32>
    %385 = arith.divf %383, %384 : vector<1x2xf32>
    %c0_293 = arith.constant 0 : index
    %c0_294 = arith.constant 0 : index
    %386 = vector.load %arg18[%c0_293, %c0_294] : memref<1x2xf32, #tpu.memory_space<vmem>>, vector<1x2xf32>
    %387 = arith.addf %385, %386 : vector<1x2xf32>
    %cst_295 = arith.constant dense<0.000000e+00> : vector<4xf32>
    %388 = vector.multi_reduction <add>, %377, %cst_295 [0] : vector<25x4xf32> to vector<4xf32>
    %389 = vector.shape_cast %388 : vector<4xf32> to vector<1x4xf32>
    %cst_296 = arith.constant 2.500000e+01 : f32
    %390 = vector.broadcast %cst_296 : f32 to vector<1x4xf32>
    %391 = arith.divf %389, %390 : vector<1x4xf32>
    %c0_297 = arith.constant 0 : index
    %c0_298 = arith.constant 0 : index
    %392 = vector.load %arg20[%c0_297, %c0_298] : memref<1x4xf32, #tpu.memory_space<vmem>>, vector<1x4xf32>
    %393 = arith.addf %391, %392 : vector<1x4xf32>
    %394 = vector.shape_cast %381 : vector<1x24xf32> to vector<1x1x24xf32>
    %c0_299 = arith.constant 0 : index
    %c0_300 = arith.constant 0 : index
    %c0_301 = arith.constant 0 : index
    %395 = vector.load %arg22[%c0_299, %c0_300, %c0_301] : memref<1x1x24xf32, #tpu.memory_space<vmem>>, vector<1x1x24xf32>
    tpu.vector_store %arg22[%c0_299, %c0_300, %c0_301], %394 {strides = array<i32>} : memref<1x1x24xf32, #tpu.memory_space<vmem>>, vector<1x1x24xf32>,
    %396 = vector.shape_cast %387 : vector<1x2xf32> to vector<1x1x2xf32>
    %c0_302 = arith.constant 0 : index
    %c0_303 = arith.constant 0 : index
    %c0_304 = arith.constant 0 : index
    %397 = vector.load %arg23[%c0_302, %c0_303, %c0_304] : memref<1x1x2xf32, #tpu.memory_space<vmem>>, vector<1x1x2xf32>
    tpu.vector_store %arg23[%c0_302, %c0_303, %c0_304], %396 {strides = array<i32>} : memref<1x1x2xf32, #tpu.memory_space<vmem>>, vector<1x1x2xf32>,
    %398 = vector.shape_cast %393 : vector<1x4xf32> to vector<1x1x4xf32>
    %c0_305 = arith.constant 0 : index
    %c0_306 = arith.constant 0 : index
    %c0_307 = arith.constant 0 : index
    %399 = vector.load %arg24[%c0_305, %c0_306, %c0_307] : memref<1x1x4xf32, #tpu.memory_space<vmem>>, vector<1x1x4xf32>
    tpu.vector_store %arg24[%c0_305, %c0_306, %c0_307], %398 {strides = array<i32>} : memref<1x1x4xf32, #tpu.memory_space<vmem>>, vector<1x1x4xf32>,
    return
  }
  func.func @transform_0(%arg0: i32) -> (i32, i32, i32) {
    %c0_i32 = arith.constant 0 : i32
    %c0_i32_0 = arith.constant 0 : i32
    %c0_i32_1 = arith.constant 0 : i32
    return %arg0, %c0_i32, %c0_i32_0 : i32, i32, i32
  }
  func.func @transform_1(%arg0: i32) -> (i32, i32, i32) {
    %c0_i32 = arith.constant 0 : i32
    %c0_i32_0 = arith.constant 0 : i32
    %c0_i32_1 = arith.constant 0 : i32
    %c0_i32_2 = arith.constant 0 : i32
    return %c0_i32, %c0_i32_0, %c0_i32_1 : i32, i32, i32
  }
  func.func @transform_2(%arg0: i32) -> (i32, i32) {
    %c0_i32 = arith.constant 0 : i32
    %c0_i32_0 = arith.constant 0 : i32
    %c0_i32_1 = arith.constant 0 : i32
    return %c0_i32, %c0_i32_0 : i32, i32
  }
  func.func @transform_3(%arg0: i32) -> (i32, i32) {
    %c0_i32 = arith.constant 0 : i32
    %c0_i32_0 = arith.constant 0 : i32
    %c0_i32_1 = arith.constant 0 : i32
    return %c0_i32, %c0_i32_0 : i32, i32
  }
  func.func @transform_4(%arg0: i32) -> (i32, i32, i32) {
    %c0_i32 = arith.constant 0 : i32
    %c0_i32_0 = arith.constant 0 : i32
    %c0_i32_1 = arith.constant 0 : i32
    %c0_i32_2 = arith.constant 0 : i32
    return %c0_i32, %c0_i32_0, %c0_i32_1 : i32, i32, i32
  }
  func.func @transform_5(%arg0: i32) -> (i32, i32) {
    %c0_i32 = arith.constant 0 : i32
    %c0_i32_0 = arith.constant 0 : i32
    %c0_i32_1 = arith.constant 0 : i32
    return %c0_i32, %c0_i32_0 : i32, i32
  }
  func.func @transform_6(%arg0: i32) -> (i32, i32) {
    %c0_i32 = arith.constant 0 : i32
    %c0_i32_0 = arith.constant 0 : i32
    %c0_i32_1 = arith.constant 0 : i32
    return %c0_i32, %c0_i32_0 : i32, i32
  }
  func.func @transform_7(%arg0: i32) -> (i32, i32) {
    %c0_i32 = arith.constant 0 : i32
    %c0_i32_0 = arith.constant 0 : i32
    %c0_i32_1 = arith.constant 0 : i32
    return %c0_i32, %c0_i32_0 : i32, i32
  }
  func.func @transform_8(%arg0: i32) -> (i32, i32, i32) {
    %c0_i32 = arith.constant 0 : i32
    %c0_i32_0 = arith.constant 0 : i32
    %c0_i32_1 = arith.constant 0 : i32
    %c0_i32_2 = arith.constant 0 : i32
    return %c0_i32, %c0_i32_0, %c0_i32_1 : i32, i32, i32
  }
  func.func @transform_9(%arg0: i32) -> (i32, i32) {
    %c0_i32 = arith.constant 0 : i32
    %c0_i32_0 = arith.constant 0 : i32
    %c0_i32_1 = arith.constant 0 : i32
    return %c0_i32, %c0_i32_0 : i32, i32
  }
  func.func @transform_10(%arg0: i32) -> (i32, i32, i32) {
    %c0_i32 = arith.constant 0 : i32
    %c0_i32_0 = arith.constant 0 : i32
    %c0_i32_1 = arith.constant 0 : i32
    %c0_i32_2 = arith.constant 0 : i32
    return %c0_i32, %c0_i32_0, %c0_i32_1 : i32, i32, i32
  }
  func.func @transform_11(%arg0: i32) -> (i32, i32) {
    %c0_i32 = arith.constant 0 : i32
    %c0_i32_0 = arith.constant 0 : i32
    %c0_i32_1 = arith.constant 0 : i32
    return %c0_i32, %c0_i32_0 : i32, i32
  }
  func.func @transform_12(%arg0: i32) -> (i32, i32) {
    %c0_i32 = arith.constant 0 : i32
    %c0_i32_0 = arith.constant 0 : i32
    %c0_i32_1 = arith.constant 0 : i32
    return %c0_i32, %c0_i32_0 : i32, i32
  }
  func.func @transform_13(%arg0: i32) -> (i32, i32) {
    %c0_i32 = arith.constant 0 : i32
    %c0_i32_0 = arith.constant 0 : i32
    %c0_i32_1 = arith.constant 0 : i32
    return %c0_i32, %c0_i32_0 : i32, i32
  }
  func.func @transform_14(%arg0: i32) -> (i32, i32, i32) {
    %c0_i32 = arith.constant 0 : i32
    %c0_i32_0 = arith.constant 0 : i32
    %c0_i32_1 = arith.constant 0 : i32
    %c0_i32_2 = arith.constant 0 : i32
    return %c0_i32, %c0_i32_0, %c0_i32_1 : i32, i32, i32
  }
  func.func @transform_15(%arg0: i32) -> (i32, i32) {
    %c0_i32 = arith.constant 0 : i32
    %c0_i32_0 = arith.constant 0 : i32
    %c0_i32_1 = arith.constant 0 : i32
    return %c0_i32, %c0_i32_0 : i32, i32
  }
  func.func @transform_16(%arg0: i32) -> (i32, i32) {
    %c0_i32 = arith.constant 0 : i32
    %c0_i32_0 = arith.constant 0 : i32
    %c0_i32_1 = arith.constant 0 : i32
    return %c0_i32, %c0_i32_0 : i32, i32
  }
  func.func @transform_17(%arg0: i32) -> (i32, i32) {
    %c0_i32 = arith.constant 0 : i32
    %c0_i32_0 = arith.constant 0 : i32
    %c0_i32_1 = arith.constant 0 : i32
    return %c0_i32, %c0_i32_0 : i32, i32
  }
  func.func @transform_18(%arg0: i32) -> (i32, i32) {
    %c0_i32 = arith.constant 0 : i32
    %c0_i32_0 = arith.constant 0 : i32
    %c0_i32_1 = arith.constant 0 : i32
    return %c0_i32, %c0_i32_0 : i32, i32
  }
  func.func @transform_19(%arg0: i32) -> (i32, i32) {
    %c0_i32 = arith.constant 0 : i32
    %c0_i32_0 = arith.constant 0 : i32
    %c0_i32_1 = arith.constant 0 : i32
    return %c0_i32, %c0_i32_0 : i32, i32
  }
  func.func @transform_20(%arg0: i32) -> (i32, i32) {
    %c0_i32 = arith.constant 0 : i32
    %c0_i32_0 = arith.constant 0 : i32
    %c0_i32_1 = arith.constant 0 : i32
    return %c0_i32, %c0_i32_0 : i32, i32
  }
  func.func @transform_21(%arg0: i32) -> (i32, i32, i32) {
    %c0_i32 = arith.constant 0 : i32
    %c0_i32_0 = arith.constant 0 : i32
    %c0_i32_1 = arith.constant 0 : i32
    return %arg0, %c0_i32, %c0_i32_0 : i32, i32, i32
  }
  func.func @transform_22(%arg0: i32) -> (i32, i32, i32) {
    %c0_i32 = arith.constant 0 : i32
    %c0_i32_0 = arith.constant 0 : i32
    %c0_i32_1 = arith.constant 0 : i32
    return %arg0, %c0_i32, %c0_i32_0 : i32, i32, i32
  }
  func.func @transform_23(%arg0: i32) -> (i32, i32, i32) {
    %c0_i32 = arith.constant 0 : i32
    %c0_i32_0 = arith.constant 0 : i32
    %c0_i32_1 = arith.constant 0 : i32
    return %arg0, %c0_i32, %c0_i32_0 : i32, i32, i32
  }
}

</mosaic_0001>

<bundles_post_ra>
// kernel: squeeze.0
= control target key start
LH: loop header
LB: loop body
LE: loop exit
PB: predicated region body
PF: predicated region fallthrough
CT: control target
= control target key end

     0   :  { %vm226_vm0 = vcmask 130048   ;;  %v502_v54 = vmov 0.0   ;;  %s569_s0 = inlined_call_operand.vmem [shape: bf16[2,7,7,16], index: 0, kind: input, shape index: {}]   ;;  %s570_s1 = inlined_call_operand.vmem [shape: bf16[98,16], index: 1, kind: output, shape index: {}]  }
   0x1   :  { %v490_v0 = vld [vmem:[%s569_s0 + $0x30] sm:$0xff]   ;;  %v491_v1 = vld [vmem:[%s569_s0 + $0x28] sm:$0xff]   ;;  %v492_v2 = vld [vmem:[%s569_s0 + $0x20] sm:$0xff]  }
   0x2   :  { %v434_v3 = vunpack.c.l.bf16 %v490_v0  ;;  %v435_v4 = vunpack.c.h.bf16 %v490_v0  ;;  %v438_v5 = vunpack.c.l.bf16 %v491_v1  ;;  %v439_v6 = vunpack.c.h.bf16 %v491_v1  ;;  %v493_v7 = vld [vmem:[%s569_s0 + $0x18] sm:$0xff]   ;;  %v494_v8 = vld [vmem:[%s569_s0 + $0x10] sm:$0xff]   ;;  %v495_v9 = vld [vmem:[%s569_s0 + $0x8] sm:$0xff]  }
   0x3   :  { %v442_v10 = vunpack.c.l.bf16 %v492_v2  ;;  %v443_v11 = vunpack.c.h.bf16 %v492_v2  ;;  %v446_v12 = vunpack.c.l.bf16 %v493_v7  ;;  %v447_v13 = vunpack.c.h.bf16 %v493_v7  ;;  %v457_v14 = vld [vmem:[%s569_s0] sm:$0xff]  }
   0x4   :  { %20 = vst [vmem:[#allocation1 + $0x68] sm:$0xff] %v435_v4  ;;  %36 = vst [vmem:[#allocation1 + $0x60] sm:$0xff] %v434_v3  ;;  %v450_v15 = vunpack.c.l.bf16 %v494_v8  ;;  %v451_v16 = vunpack.c.h.bf16 %v494_v8  ;;  %v454_v17 = vunpack.c.l.bf16 %v495_v9  ;;  %v455_v18 = vunpack.c.h.bf16 %v495_v9 }
   0x5   :  { %52 = vst [vmem:[#allocation1 + $0x58] sm:$0xff] %v439_v6  ;;  %68 = vst [vmem:[#allocation1 + $0x50] sm:$0xff] %v438_v5  ;;  %v458_v19 = vunpack.c.l.bf16 %v457_v14  ;;  %v459_v20 = vunpack.c.h.bf16 %v457_v14 }
   0x6   :  { %84 = vst [vmem:[#allocation1 + $0x48] sm:$0xff] %v443_v11  ;;  %100 = vst [vmem:[#allocation1 + $0x40] sm:$0xff] %v442_v10 }
   0x7   :  { %116 = vst [vmem:[#allocation1 + $0x38] sm:$0xff] %v447_v13  ;;  %132 = vst [vmem:[#allocation1 + $0x30] sm:$0xff] %v446_v12 }
   0x8   :  { %148 = vst [vmem:[#allocation1 + $0x28] sm:$0xff] %v451_v16  ;;  %164 = vst [vmem:[#allocation1 + $0x20] sm:$0xff] %v450_v15 }
   0x9   :  { %180 = vst [vmem:[#allocation1 + $0x18] sm:$0xff] %v455_v18  ;;  %196 = vst [vmem:[#allocation1 + $0x10] sm:$0xff] %v454_v17 }
   0xa   :  { %211 = vst [vmem:[#allocation1 + $0x8] sm:$0xff] %v459_v20  ;;  %224 = vst [vmem:[#allocation1] sm:$0xff] %v458_v19 }
   0xb   :  { %v284_v23 = vld [vmem:[#allocation1 + $0x60] sm:$0x7f]   ;;  %v289_v34 = vld [vmem:[#allocation1 + $0x68] sm:$0x7f]  }
   0xc   :  { %v274_v21 = vld [vmem:[#allocation1 + $0x50] sm:$0x7f]   ;;  %v279_v22 = vld [vmem:[#allocation1 + $0x58] sm:$0x7f]   ;;  %287 = vst.msk [vmem:[#allocation0 + $0x54] sm:$0x7f] %vm226_vm0, %v284_v23  }
   0xd   :  { %v264_v26 = vld [vmem:[#allocation1 + $0x40] sm:$0x7f]   ;;  %277 = vst.msk [vmem:[#allocation0 + $0x46] sm:$0x7f] %vm226_vm0, %v274_v21   ;;  %282 = vst.msk [vmem:[#allocation0 + $0x4d] sm:$0x7f] %vm226_vm0, %v279_v22  }
   0xe   :  { %v254_v24 = vld [vmem:[#allocation1 + $0x30] sm:$0x7f]   ;;  %v259_v25 = vld [vmem:[#allocation1 + $0x38] sm:$0x7f]   ;;  %267 = vst.msk [vmem:[#allocation0 + $0x38] sm:$0x7f] %vm226_vm0, %v264_v26  }
   0xf   :  { %v244_v29 = vld [vmem:[#allocation1 + $0x20] sm:$0x7f]   ;;  %257 = vst.msk [vmem:[#allocation0 + $0x2a] sm:$0x7f] %vm226_vm0, %v254_v24   ;;  %262 = vst.msk [vmem:[#allocation0 + $0x31] sm:$0x7f] %vm226_vm0, %v259_v25  }
  0x10   :  { %v234_v27 = vld [vmem:[#allocation1 + $0x10] sm:$0x7f]   ;;  %v239_v28 = vld [vmem:[#allocation1 + $0x18] sm:$0x7f]   ;;  %247 = vst.msk [vmem:[#allocation0 + $0x1c] sm:$0x7f] %vm226_vm0, %v244_v29  }
  0x11   :  { %v225_v30 = vld [vmem:[#allocation1] sm:$0x7f]   ;;  %v229_v31 = vld [vmem:[#allocation1 + $0x8] sm:$0x7f]   ;;  %237 = vst.msk [vmem:[#allocation0 + $0xe] sm:$0x7f] %vm226_vm0, %v234_v27  }
  0x12   :  { %242 = vst.msk [vmem:[#allocation0 + $0x15] sm:$0x7f] %vm226_vm0, %v239_v28   ;;  %v249_v32 = vld [vmem:[#allocation1 + $0x28] sm:$0x7f]   ;;  %227 = vst.msk [vmem:[#allocation0] sm:$0x7f] %vm226_vm0, %v225_v30  }
  0x13   :  { %232 = vst.msk [vmem:[#allocation0 + $0x7] sm:$0x7f] %vm226_vm0, %v229_v31   ;;  %252 = vst.msk [vmem:[#allocation0 + $0x23] sm:$0x7f] %vm226_vm0, %v249_v32   ;;  %v269_v33 = vld [vmem:[#allocation1 + $0x48] sm:$0x7f]  }
  0x14   :  { %272 = vst.msk [vmem:[#allocation0 + $0x3f] sm:$0x7f] %vm226_vm0, %v269_v33   ;;  %292 = vst.msk [vmem:[#allocation0 + $0x5b] sm:$0x7f] %vm226_vm0, %v289_v34   ;;  %v357_v35 = vld [vmem:[#allocation0 + $0x48] sm:$0xff]  ;;  %v364_v36 = vld [vmem:[#allocation0 + $0x50] sm:$0xff] }
  0x16   :  { %v336_v39 = vld [vmem:[#allocation0 + $0x30] sm:$0xff] }
  0x19   :  { %v308_v37 = vld [vmem:[#allocation0 + $0x10] sm:$0xff]  ;;  %v315_v38 = vld [vmem:[#allocation0 + $0x18] sm:$0xff] }
  0x1a   :  { %v297_v40 = vld [vmem:[#allocation0] sm:$0xff]  ;;  %v302_v41 = vld [vmem:[#allocation0 + $0x8] sm:$0xff]  ;;  %v468_v42 = vpack.c.bf16 %v315_v38, %v308_v37 }
  0x1b   :  { %v322_v43 = vld [vmem:[#allocation0 + $0x20] sm:$0xff]  ;;  %v463_v44 = vpack.c.bf16 %v302_v41, %v297_v40  ;;  %v329_v45 = vld [vmem:[#allocation0 + $0x28] sm:$0xff]  ;;  %v343_v46 = vld [vmem:[#allocation0 + $0x38] sm:$0xff] }
  0x1c   :  { %v350_v47 = vld [vmem:[#allocation0 + $0x40] sm:$0xff]  ;;  %496 = vst [vmem:[%s570_s1 + $0x8] sm:$0xff] %v468_v42   ;;  %v473_v48 = vpack.c.bf16 %v329_v45, %v322_v43  ;;  %v478_v49 = vpack.c.bf16 %v343_v46, %v336_v39  ;;  %v371_v51 = vld [vmem:[#allocation0 + $0x58] sm:$0xff] }
  0x1d   :  { %v483_v50 = vpack.c.bf16 %v357_v35, %v350_v47  ;;  %v378_v52 = vld [vmem:[#allocation0 + $0x60] sm:$0xff]  ;;  %464 = vst [vmem:[%s570_s1] sm:$0xff] %v463_v44   ;;  %v488_v53 = vpack.c.bf16 %v371_v51, %v364_v36 }
  0x1e   :  { %v379_v55 = vpack.c.bf16 %v502_v54, %v378_v52  ;;  %497 = vst [vmem:[%s570_s1 + $0x10] sm:$0xff] %v473_v48   ;;  %498 = vst [vmem:[%s570_s1 + $0x18] sm:$0xff] %v478_v49  }
  0x1f   :  { %499 = vst [vmem:[%s570_s1 + $0x20] sm:$0xff] %v483_v50   ;;  %500 = vst [vmem:[%s570_s1 + $0x28] sm:$0xff] %v488_v53  }
  0x20   :  { %431 = vst [vmem:[%s570_s1 + $0x30] sm:$0xf] %v379_v55 }

// kernel: rcn_forward.2
= control target key start
LH: loop header
LB: loop body
LE: loop exit
PB: predicated region body
PF: predicated region fallthrough
CT: control target
= control target key end

     0   :  { %v2255_v0 = vmov 0.0   ;;  %vm2256_vm0 = vmmov 0   ;;  %v2257_v3 = vmov 0   ;;  %vm122_vm1 = vcmask 130048   ;;  %s3142_s1 = inlined_call_operand.vmem [shape: bf16[16,120], index: 1, kind: input, shape index: {}]   ;;  %s3143_s0 = inlined_call_operand.vmem [shape: bf16[104,16], index: 0, kind: input, shape index: {}]   ;;  %s3144_s17 = inlined_call_operand.vmem [shape: f32[1,8], index: 17, kind: input, shape index: {}]   ;;  %s3145_s3 = inlined_call_operand.vmem [shape: bf16[120,120], index: 3, kind: input, shape index: {}]   ;;  %s3146_s7 = inlined_call_operand.vmem [shape: bf16[120,120], index: 7, kind: input, shape index: {}]   ;;  %s3147_s2 = inlined_call_operand.vmem [shape: f32[1,120], index: 2, kind: input, shape index: {}]   ;;  %s3148_s9 = inlined_call_operand.vmem [shape: bf16[120,120], index: 9, kind: input, shape index: {}]   ;;  %s3149_s4 = inlined_call_operand.vmem [shape: f32[1,120], index: 4, kind: input, shape index: {}]   ;;  %s3150_s5 = inlined_call_operand.vmem [shape: f32[1,120], index: 5, kind: input, shape index: {}]   ;;  %s3151_s6 = inlined_call_operand.vmem [shape: f32[1,120], index: 6, kind: input, shape index: {}]   ;;  %s3152_s13 = inlined_call_operand.vmem [shape: bf16[120,120], index: 13, kind: input, shape index: {}]   ;;  %s3153_s8 = inlined_call_operand.vmem [shape: f32[1,120], index: 8, kind: input, shape index: {}]   ;;  %s3154_s15 = inlined_call_operand.vmem [shape: bf16[120,128], index: 15, kind: input, shape index: {}]   ;;  %s3155_s10 = inlined_call_operand.vmem [shape: f32[1,120], index: 10, kind: input, shape index: {}]   ;;  %s3156_s11 = inlined_call_operand.vmem [shape: f32[1,120], index: 11, kind: input, shape index: {}]   ;;  %s3157_s12 = inlined_call_operand.vmem [shape: f32[1,120], index: 12, kind: input, shape index: {}]   ;;  %s3158_s14 = inlined_call_operand.vmem [shape: f32[1,120], index: 14, kind: input, shape index: {}]   ;;  %s3159_s16 = inlined_call_operand.vmem [shape: f32[1,128], index: 16, kind: input, shape index: {}]   ;;  %s3160_s18 = inlined_call_operand.vmem [shape: bf16[104,128], index: 18, kind: output, shape index: {}]  }
   0x1   :  { %3163 = sst [smem:[#allocation2_spill]] %s3142_s1  ;;  %1926 = vmatprep.subr.bf16.mxu0 %v2255_v0  ;;  %1928 = vmatprep.mubr.msk.bf16.mxu0 %vm2256_vm0, %v2255_v0  ;;  %v2214_v5 = vld [vmem:[%s3145_s3] sm:$0xff]   ;;  %v2215_v7 = vld [vmem:[%s3145_s3 + $0x8] sm:$0xff]   ;;  %v2216_v8 = vld [vmem:[%s3145_s3 + $0x10] sm:$0xff]   ;;  %vm376_vm2 = vcmask 1043456   ;;  %v2258_v20 = vmov 1  }
   0x2   :  { %3164 = sst [smem:[#allocation3_spill]] %s3143_s0  ;;  %s3166_s29 = sld [smem:[#allocation2_spill]]  ;;  %2200 = vset.pattern.permute.xlu0 %v2257_v3  ;;  %1956 = vmatprep.subr.bf16.mxu1 %v2255_v0  ;;  %v2217_v10 = vld [vmem:[%s3145_s3 + $0x18] sm:$0xff]   ;;  %v2218_v11 = vld [vmem:[%s3145_s3 + $0x20] sm:$0xff]   ;;  %v2219_v13 = vld [vmem:[%s3145_s3 + $0x28] sm:$0xff]   ;;  %v2259_v21 = vmov 2  }
   0x3   :  { %3165 = sst [smem:[#allocation4_spill]] %s3144_s17  ;;  %s3167_s19 = sld [smem:[#allocation3_spill]]  ;;  %1972 = vmatprep.mubr.msk.bf16.mxu1 %vm2256_vm0, %v2255_v0  ;;  %1957 = vmatpush3.bf16.msra.mxu1 %v2214_v5  ;;  %v2220_v17 = vld [vmem:[%s3145_s3 + $0x30] sm:$0xff]   ;;  %v2221_v18 = vld [vmem:[%s3145_s3 + $0x38] ss:$0 sps:$4 sm:$0xff]   ;;  %v2222_v22 = vld [vmem:[%s3146_s7] sm:$0xff]  }
   0x4   :  { %s3168_s21 = sld [smem:[#allocation4_spill]]  ;;  %1958 = vmatprep.subr.bf16.mxu1 %v2255_v0  ;;  %v378_v19 = vsel %vm376_vm2, %v2221_v18, 0  ;;  %2202 = vset.pattern.permute.xlu1 %v2259_v21  ;;  %v2223_v23 = vld [vmem:[%s3146_s7 + $0x8] sm:$0xff]   ;;  %v2224_v24 = vld [vmem:[%s3146_s7 + $0x10] sm:$0xff]   ;;  %v2225_v25 = vld [vmem:[%s3146_s7 + $0x18] sm:$0xff]   ;;  %vm354_vm5 = vcmask 982016  }
   0x5   :  { %v2226_v26 = vld [vmem:[%s3146_s7 + $0x20] sm:$0xff]   ;;  %v2227_v27 = vld [vmem:[%s3146_s7 + $0x28] sm:$0xff]  }
   0x6   :  { %v2478_v28 = vld [vmem:[%s3147_s2] ss:$0 sm:$0xff] }
   0x7   :  { %1959 = vmatpush3.bf16.msra.mxu1 %v2215_v7 }
   0x8   :  { %v2206_v1 = vld [vmem:[%s3166_s29] sm:$0xff]   ;;  %1960 = vmatprep.subr.bf16.mxu1 %v2255_v0 }
   0x9   :  { %v2207_v2 = vld [vmem:[%s3167_s19] sm:$0xff]   ;;  %1927 = vmatpush3.bf16.msra.mxu0 %v2206_v1  ;;  %v2208_v6 = vld [vmem:[%s3167_s19 + $0x8] sm:$0xff]   ;;  %v2209_v9 = vld [vmem:[%s3167_s19 + $0x10] sm:$0xff]  }
   0xa   :  { %2000 = vmatprep.subr.bf16.mxu0 %v2255_v0  ;;  %v2377_v4 = vld [vmem:[%s3168_s21] ss:$0 sm:$0xff]  ;;  %v2210_v12 = vld [vmem:[%s3167_s19 + $0x18] sm:$0xff]   ;;  %v2212_v15 = vld [vmem:[%s3167_s19 + $0x28] sm:$0xff]  }
   0xb   :  { %251 = vperm.xlu0 %2200, %v2377_v4   ;;  %1961 = vmatpush3.bf16.msra.mxu1 %v2216_v8  ;;  %v2211_v14 = vld [vmem:[%s3167_s19 + $0x20] sm:$0xff]   ;;  %v2213_v16 = vld [vmem:[%s3167_s19 + $0x30] ss:$0 sps:$4 sm:$0xff]  }
   0xc   :  { %1929 = vmatmul.mubr.msk.bf16.vlgmr.msra.gmra.mrb[0].mxu0 %vm122_vm1, %v2207_v2  ;;  %1962 = vmatprep.subr.bf16.mxu1 %v2255_v0 }
   0xd   :  { %1932 = vmatprep.mubr.msk.bf16.mxu0 %vm2256_vm0, %v2255_v0  ;;  %565 = vperm.xlu1 %2202, %v2377_v4  }
   0xe   :  { %2001 = vmatpush3.bf16.msra.mxu0 %v2222_v22 }
   0xf   :  { %1963 = vmatpush3.bf16.msra.mxu1 %v2217_v10  ;;  %2201 = vset.pattern.permute.xlu0 %v2258_v20 }
  0x10   :  { %1964 = vmatprep.subr.bf16.mxu1 %v2255_v0  ;;  %482 = vperm.xlu0 %2201, %v2377_v4  }
  0x11   :  { %2002 = vmatprep.subr.bf16.mxu0 %v2255_v0 }
  0x12   :  { %2003 = vmatpush3.bf16.msra.mxu0 %v2223_v23 }
  0x13   :  { %1965 = vmatpush3.bf16.msra.mxu1 %v2218_v11  ;;  %2004 = vmatprep.subr.bf16.mxu0 %v2255_v0 }
  0x14   :  { %1933 = vmatmul.mubr.msk.bf16.gmra.mrb[4].mxu0 %vm122_vm1, %v2208_v6  ;;  %1966 = vmatprep.subr.bf16.mxu1 %v2255_v0 }
  0x15   :  { %1936 = vmatprep.mubr.msk.bf16.mxu0 %vm2256_vm0, %v2255_v0 }
  0x16   :  { %2005 = vmatpush3.bf16.msra.mxu0 %v2224_v24 }
  0x17   :  { %1967 = vmatpush3.bf16.msra.mxu1 %v2219_v13  ;;  %2006 = vmatprep.subr.bf16.mxu0 %v2255_v0 }
  0x18   :  { %1968 = vmatprep.subr.bf16.mxu1 %v2255_v0 }
  0x1a   :  { %2007 = vmatpush3.bf16.msra.mxu0 %v2225_v25 }
  0x1b   :  { %1969 = vmatpush3.bf16.msra.mxu1 %v2220_v17  ;;  %2008 = vmatprep.subr.bf16.mxu0 %v2255_v0 }
  0x1c   :  { %1937 = vmatmul.mubr.msk.bf16.gmra.mrb[8].mxu0 %vm122_vm1, %v2209_v9  ;;  %1970 = vmatprep.subr.bf16.mxu1 %v2255_v0 }
  0x1d   :  { %1940 = vmatprep.mubr.msk.bf16.mxu0 %vm2256_vm0, %v2255_v0 }
  0x1e   :  { %2009 = vmatpush3.bf16.msra.mxu0 %v2226_v26 }
  0x1f   :  { %1971 = vmatpush3.bf16.msra.mxu1 %v378_v19  ;;  %2010 = vmatprep.subr.bf16.mxu0 %v2255_v0 }
  0x20   :  { %2044 = vmatprep.subr.bf16.mxu1 %v2255_v0 }
  0x22   :  { %2011 = vmatpush3.bf16.msra.mxu0 %v2227_v27 }
  0x23   :  { %2012 = vmatprep.subr.bf16.mxu0 %v2255_v0 }
  0x24   :  { %1941 = vmatmul.mubr.msk.bf16.gmra.mrb[12].mxu0 %vm122_vm1, %v2210_v12 }
  0x25   :  { %1944 = vmatprep.mubr.msk.bf16.mxu0 %vm2256_vm0, %v2255_v0 }
  0x2c   :  { %1945 = vmatmul.mubr.msk.bf16.gmra.mrb[16].mxu0 %vm122_vm1, %v2211_v14 }
  0x2d   :  { %1948 = vmatprep.mubr.msk.bf16.mxu0 %vm2256_vm0, %v2255_v0 }
  0x34   :  { %1949 = vmatmul.mubr.msk.bf16.gmra.mrb[20].mxu0 %vm122_vm1, %v2212_v15 }
  0x35   :  { %1952 = vmatprep.mubr.msk.bf16.mxu0 %vm2256_vm0, %v2255_v0 }
  0x3c   :  { %1953 = vmatmul.mubr.msk.bf16.gmra.mrb[24].mxu0 %vm122_vm1, %v2213_v16 }
  0x3d   :  { %2016 = vmatprep.mubr.msk.bf16.mxu0 %vm2256_vm0, %v2255_v0 }
  0x8a   :  { %v2480_v30 = vpop.permute.xlu0 %251 }
  0xdf   :  { %v178_v29 = vpop.f32.mrb[0].mxu0 }
  0xe0   :  { %v179_v31 = vadd.f32 %v2478_v28, %v178_v29  ;;  %v1930_v32 = vpop.f32.mrb[1].mxu0 }
  0xe1   :  { %v181_v33 = vpop.f32.mrb[2].mxu0 }
  0xe2   :  { %v182_v34 = vadd.f32 %v2478_v28, %v181_v33  ;;  %v254_v35 = vmul.f32 %v2480_v30, %v179_v31  ;;  %v1931_v36 = vpop.f32.mrb[3].mxu0  ;;  %vm232_vm3 = vcmp.gt.f32.partialorder %v179_v31, 0.0 }
  0xe4   :  { %vm233_vm4 = vcmp.gt.f32.partialorder %v182_v34, 0.0  ;;  %v255_v37 = vmul.f32 %v2480_v30, %v182_v34  ;;  %v2486_v38 = vsel %vm232_vm3, %v179_v31, %v254_v35 }
  0xe6   :  { %v2488_v39 = vsel %vm233_vm4, %v182_v34, %v255_v37 }
  0xe7   :  { %v295_v40 = vpack.c.bf16 %v2488_v39, %v2486_v38  ;;  %v186_v41 = vpop.f32.mrb[4].mxu0 }
  0xe8   :  { %v187_v42 = vadd.f32 %v2478_v28, %v186_v41  ;;  %v1934_v43 = vpop.f32.mrb[5].mxu0 }
  0xe9   :  { %v189_v44 = vpop.f32.mrb[6].mxu0  ;;  %1973 = vmatmul.mubr.msk.bf16.vlgmr.msra.gmra.mrb[0].mxu1 %vm354_vm5, %v295_v40 }
  0xea   :  { %v256_v45 = vmul.f32 %v2480_v30, %v187_v42  ;;  %v190_v46 = vadd.f32 %v2478_v28, %v189_v44  ;;  %v1935_v47 = vpop.f32.mrb[7].mxu0  ;;  %1976 = vmatprep.mubr.msk.bf16.mxu1 %vm2256_vm0, %v2255_v0  ;;  %vm234_vm6 = vcmp.gt.f32.partialorder %v187_v42, 0.0 }
  0xeb   :  { %v2230_v47 = vld [vmem:[%s3148_s9] sm:$0xff]  }
  0xec   :  { %vm235_vm7 = vcmp.gt.f32.partialorder %v190_v46, 0.0  ;;  %v257_v48 = vmul.f32 %v2480_v30, %v190_v46  ;;  %v2499_v49 = vsel %vm234_vm6, %v187_v42, %v256_v45  ;;  %2045 = vmatpush3.bf16.msra.mxu1 %v2230_v47 }
  0xed   :  { %2046 = vmatprep.subr.bf16.mxu1 %v2255_v0 }
  0xee   :  { %v2501_v50 = vsel %vm235_vm7, %v190_v46, %v257_v48  ;;  %v2231_v48 = vld [vmem:[%s3148_s9 + $0x8] sm:$0xff]  }
  0xef   :  { %v296_v51 = vpack.c.bf16 %v2501_v50, %v2499_v49  ;;  %v194_v52 = vpop.f32.mrb[8].mxu0 }
  0xf0   :  { %v195_v53 = vadd.f32 %v2478_v28, %v194_v52  ;;  %v1938_v54 = vpop.f32.mrb[9].mxu0  ;;  %2047 = vmatpush3.bf16.msra.mxu1 %v2231_v48  ;;  %v2233_v52 = vld [vmem:[%s3148_s9 + $0x18] sm:$0xff]  }
  0xf1   :  { %v197_v55 = vpop.f32.mrb[10].mxu0  ;;  %1977 = vmatmul.mubr.msk.bf16.gmra.mrb[4].mxu1 %vm354_vm5, %v296_v51  ;;  %v2232_v51 = vld [vmem:[%s3148_s9 + $0x10] sm:$0xff]   ;;  %2048 = vmatprep.subr.bf16.mxu1 %v2255_v0  ;;  %v2235_v54 = vld [vmem:[%s3148_s9 + $0x28] sm:$0xff]  }
  0xf2   :  { %v258_v56 = vmul.f32 %v2480_v30, %v195_v53  ;;  %v198_v57 = vadd.f32 %v2478_v28, %v197_v55  ;;  %v1939_v58 = vpop.f32.mrb[11].mxu0  ;;  %1980 = vmatprep.mubr.msk.bf16.mxu1 %vm2256_vm0, %v2255_v0  ;;  %vm236_vm8 = vcmp.gt.f32.partialorder %v195_v53, 0.0  ;;  %v2236_v55 = vld [vmem:[%s3148_s9 + $0x30] sm:$0xff]  }
  0xf3   :  { %v2611_v58 = vpop.permute.xlu0 %482 }
  0xf4   :  { %vm237_vm9 = vcmp.gt.f32.partialorder %v198_v57, 0.0  ;;  %v259_v59 = vmul.f32 %v2480_v30, %v198_v57  ;;  %v2512_v60 = vsel %vm236_vm8, %v195_v53, %v258_v56  ;;  %2049 = vmatpush3.bf16.msra.mxu1 %v2232_v51  ;;  %v2234_v53 = vld [vmem:[%s3148_s9 + $0x20] sm:$0xff]  }
  0xf5   :  { %2050 = vmatprep.subr.bf16.mxu1 %v2255_v0  ;;  %v2609_v56 = vld [vmem:[%s3149_s4] ss:$0 sm:$0xff] }
  0xf6   :  { %v2514_v61 = vsel %vm237_vm9, %v198_v57, %v259_v59 }
  0xf7   :  { %v297_v62 = vpack.c.bf16 %v2514_v61, %v2512_v60  ;;  %v202_v63 = vpop.f32.mrb[12].mxu0 }
  0xf8   :  { %v203_v1 = vadd.f32 %v2478_v28, %v202_v63  ;;  %v1942_v2 = vpop.f32.mrb[13].mxu0  ;;  %2051 = vmatpush3.bf16.msra.mxu1 %v2233_v52 }
  0xf9   :  { %v205_v3 = vpop.f32.mrb[14].mxu0  ;;  %1981 = vmatmul.mubr.msk.bf16.gmra.mrb[8].mxu1 %vm354_vm5, %v297_v62  ;;  %2052 = vmatprep.subr.bf16.mxu1 %v2255_v0  ;;  %v2618_v2 = vld [vmem:[%s3150_s5] ss:$0 sm:$0xff] }
  0xfa   :  { %v260_v5 = vmul.f32 %v2480_v30, %v203_v1  ;;  %v206_v6 = vadd.f32 %v2478_v28, %v205_v3  ;;  %v1943_v7 = vpop.f32.mrb[15].mxu0  ;;  %1984 = vmatprep.mubr.msk.bf16.mxu1 %vm2256_vm0, %v2255_v0  ;;  %vm238_vm10 = vcmp.gt.f32.partialorder %v203_v1, 0.0 }
  0xfb   :  { %v2625_v7 = vld [vmem:[%s3151_s6] ss:$0 sm:$0xff] }
  0xfc   :  { %vm239_vm11 = vcmp.gt.f32.partialorder %v206_v6, 0.0  ;;  %v261_v8 = vmul.f32 %v2480_v30, %v206_v6  ;;  %v2525_v9 = vsel %vm238_vm10, %v203_v1, %v260_v5  ;;  %2053 = vmatpush3.bf16.msra.mxu1 %v2234_v53 }
  0xfd   :  { %2054 = vmatprep.subr.bf16.mxu1 %v2255_v0 }
  0xfe   :  { %v2527_v10 = vsel %vm239_vm11, %v206_v6, %v261_v8 }
  0xff   :  { %v298_v11 = vpack.c.bf16 %v2527_v10, %v2525_v9  ;;  %v210_v12 = vpop.f32.mrb[16].mxu0 }
 0x100   :  { %v211_v13 = vadd.f32 %v2478_v28, %v210_v12  ;;  %v1946_v14 = vpop.f32.mrb[17].mxu0  ;;  %2055 = vmatpush3.bf16.msra.mxu1 %v2235_v54 }
 0x101   :  { %v213_v15 = vpop.f32.mrb[18].mxu0  ;;  %1985 = vmatmul.mubr.msk.bf16.gmra.mrb[12].mxu1 %vm354_vm5, %v298_v11  ;;  %2056 = vmatprep.subr.bf16.mxu1 %v2255_v0 }
 0x102   :  { %v262_v16 = vmul.f32 %v2480_v30, %v211_v13  ;;  %v214_v17 = vadd.f32 %v2478_v28, %v213_v15  ;;  %v1947_v18 = vpop.f32.mrb[19].mxu0  ;;  %1988 = vmatprep.mubr.msk.bf16.mxu1 %vm2256_vm0, %v2255_v0  ;;  %vm240_vm12 = vcmp.gt.f32.partialorder %v211_v13, 0.0 }
 0x104   :  { %vm241_vm13 = vcmp.gt.f32.partialorder %v214_v17, 0.0  ;;  %v263_v19 = vmul.f32 %v2480_v30, %v214_v17  ;;  %v2538_v20 = vsel %vm240_vm12, %v211_v13, %v262_v16  ;;  %2057 = vmatpush3.bf16.msra.mxu1 %v2236_v55  ;;  %v2628_v13 = vpop.permute.xlu1 %565 }
 0x105   :  { %2058 = vmatprep.subr.bf16.mxu1 %v2255_v0 }
 0x106   :  { %v2540_v21 = vsel %vm241_vm13, %v214_v17, %v263_v19 }
 0x107   :  { %v299_v22 = vpack.c.bf16 %v2540_v21, %v2538_v20  ;;  %v218_v23 = vpop.f32.mrb[20].mxu0 }
 0x108   :  { %v219_v24 = vadd.f32 %v2478_v28, %v218_v23  ;;  %v1950_v25 = vpop.f32.mrb[21].mxu0 }
 0x109   :  { %v221_v26 = vpop.f32.mrb[22].mxu0  ;;  %1989 = vmatmul.mubr.msk.bf16.gmra.mrb[16].mxu1 %vm354_vm5, %v299_v22 }
 0x10a   :  { %v264_v27 = vmul.f32 %v2480_v30, %v219_v24  ;;  %v222_v29 = vadd.f32 %v2478_v28, %v221_v26  ;;  %v1951_v31 = vpop.f32.mrb[23].mxu0  ;;  %1992 = vmatprep.mubr.msk.bf16.mxu1 %vm2256_vm0, %v2255_v0  ;;  %vm242_vm14 = vcmp.gt.f32.partialorder %v219_v24, 0.0 }
 0x10c   :  { %vm243_vm15 = vcmp.gt.f32.partialorder %v222_v29, 0.0  ;;  %v265_v32 = vmul.f32 %v2480_v30, %v222_v29  ;;  %v2551_v33 = vsel %vm242_vm14, %v219_v24, %v264_v27 }
 0x10e   :  { %v2553_v34 = vsel %vm243_vm15, %v222_v29, %v265_v32 }
 0x10f   :  { %v300_v35 = vpack.c.bf16 %v2553_v34, %v2551_v33  ;;  %v226_v36 = vpop.f32.mrb[24].mxu0 }
 0x110   :  { %v227_v37 = vadd.f32 %v2478_v28, %v226_v36  ;;  %v1954_v40 = vpop.f32.mrb[25].mxu0  ;;  %v2228_v28 = vld [vmem:[%s3146_s7 + $0x30] sm:$0xff]  }
 0x111   :  { %1993 = vmatmul.mubr.msk.bf16.gmra.mrb[20].mxu1 %vm354_vm5, %v300_v35  ;;  %v229_v41 = vpop.f32.mrb[26].mxu0  ;;  %2013 = vmatpush3.bf16.msra.mxu0 %v2228_v28 }
 0x112   :  { %vm244_vm1 = vcmp.gt.f32.partialorder %v227_v37, 0.0  ;;  %v266_v42 = vmul.f32 %v2480_v30, %v227_v37  ;;  %1996 = vmatprep.mubr.msk.bf16.mxu1 %vm2256_vm0, %v2255_v0  ;;  %v1955_v43 = vpop.f32.mrb[27].mxu0  ;;  %2014 = vmatprep.subr.bf16.mxu0 %v2255_v0  ;;  %v2229_v30 = vld [vmem:[%s3146_s7 + $0x38] ss:$0 sps:$4 sm:$0xff]  }
 0x113   :  { %v690_v46 = vsel %vm376_vm2, %v2229_v30, 0 }
 0x114   :  { %v2562_v44 = vsel %vm244_vm1, %v227_v37, %v266_v42 }
 0x115   :  { %v301_v45 = vpack.c.bf16 %v2562_v44, %v2562_v44  ;;  %2015 = vmatpush3.bf16.msra.mxu0 %v690_v46 }
 0x116   :  { %2088 = vmatprep.subr.bf16.mxu0 %v2255_v0 }
 0x119   :  { %1997 = vmatmul.mubr.msk.bf16.gmra.mrb[24].mxu1 %vm354_vm5, %v301_v45 }
 0x11a   :  { %2060 = vmatprep.mubr.msk.bf16.mxu1 %vm2256_vm0, %v2255_v0 }
 0x1bc   :  { %v414_v57 = vpop.f32.mrb[0].mxu1 }
 0x1bd   :  { %v415_v59 = vadd.f32 %v2609_v56, %v414_v57  ;;  %v1974_v62 = vpop.f32.mrb[1].mxu1 }
 0x1be   :  { %v417_v63 = vpop.f32.mrb[2].mxu1 }
 0x1bf   :  { %vm468_vm3 = vcmp.gt.f32.partialorder %v415_v59, 0.0  ;;  %v418_v1 = vadd.f32 %v2609_v56, %v417_v63  ;;  %v1975_v3 = vpop.f32.mrb[3].mxu1  ;;  %v485_v5 = vmul.f32 %v2611_v58, %v415_v59 }
 0x1c1   :  { %vm469_vm4 = vcmp.gt.f32.partialorder %v418_v1, 0.0  ;;  %v486_v6 = vmul.f32 %v2611_v58, %v418_v1  ;;  %v498_v8 = vsel %vm468_vm3, %v415_v59, %v485_v5 }
 0x1c2   :  { %v518_v11 = vmul.f32 %v2618_v2, %v498_v8 }
 0x1c3   :  { %v499_v12 = vsel %vm469_vm4, %v418_v1, %v486_v6 }
 0x1c4   :  { %v519_v14 = vmul.f32 %v2618_v2, %v499_v12  ;;  %v422_v15 = vpop.f32.mrb[4].mxu1  ;;  %v538_v16 = vadd.f32 %v2625_v7, %v518_v11 }
 0x1c5   :  { %v423_v17 = vadd.f32 %v2609_v56, %v422_v15  ;;  %v1978_v18 = vpop.f32.mrb[5].mxu1 }
 0x1c6   :  { %v539_v19 = vadd.f32 %v2625_v7, %v519_v14  ;;  %v425_v22 = vpop.f32.mrb[6].mxu1  ;;  %v568_v23 = vmul.f32 %v2628_v13, %v538_v16  ;;  %vm551_vm7 = vcmp.gt.f32.partialorder %v538_v16, 0.0 }
 0x1c7   :  { %vm470_vm6 = vcmp.gt.f32.partialorder %v423_v17, 0.0  ;;  %v487_v24 = vmul.f32 %v2611_v58, %v423_v17  ;;  %v426_v25 = vadd.f32 %v2609_v56, %v425_v22  ;;  %v1979_v26 = vpop.f32.mrb[7].mxu1 }
 0x1c8   :  { %vm552_vm8 = vcmp.gt.f32.partialorder %v539_v19, 0.0  ;;  %v569_v27 = vmul.f32 %v2628_v13, %v539_v19  ;;  %v581_v35 = vsel %vm551_vm7, %v538_v16, %v568_v23 }
 0x1c9   :  { %v500_v29 = vsel %vm470_vm6, %v423_v17, %v487_v24  ;;  %vm471_vm9 = vcmp.gt.f32.partialorder %v426_v25, 0.0  ;;  %v488_v31 = vmul.f32 %v2611_v58, %v426_v25 }
 0x1ca   :  { %v520_v32 = vmul.f32 %v2618_v2, %v500_v29  ;;  %v582_v36 = vsel %vm552_vm8, %v539_v19, %v569_v27 }
 0x1cb   :  { %v501_v37 = vsel %vm471_vm9, %v426_v25, %v488_v31  ;;  %v609_v40 = vpack.c.bf16 %v582_v36, %v581_v35 }
 0x1cc   :  { %v540_v41 = vadd.f32 %v2625_v7, %v520_v32  ;;  %v521_v42 = vmul.f32 %v2618_v2, %v501_v37  ;;  %v430_v43 = vpop.f32.mrb[8].mxu1 }
 0x1cd   :  { %v431_v45 = vadd.f32 %v2609_v56, %v430_v43  ;;  %v1982_v28 = vpop.f32.mrb[9].mxu1  ;;  %2017 = vmatmul.mubr.msk.bf16.vlgmr.msra.gmra.mrb[28].mxu0 %vm354_vm5, %v609_v40 }
 0x1ce   :  { %v541_v30 = vadd.f32 %v2625_v7, %v521_v42  ;;  %v433_v46 = vpop.f32.mrb[10].mxu1  ;;  %2020 = vmatprep.mubr.msk.bf16.mxu0 %vm2256_vm0, %v2255_v0  ;;  %v570_v47 = vmul.f32 %v2628_v13, %v540_v41  ;;  %vm553_vm11 = vcmp.gt.f32.partialorder %v540_v41, 0.0 }
 0x1cf   :  { %vm472_vm10 = vcmp.gt.f32.partialorder %v431_v45, 0.0  ;;  %v489_v48 = vmul.f32 %v2611_v58, %v431_v45  ;;  %v434_v51 = vadd.f32 %v2609_v56, %v433_v46  ;;  %v1983_v52 = vpop.f32.mrb[11].mxu1 }
 0x1d0   :  { %v571_v53 = vmul.f32 %v2628_v13, %v541_v30  ;;  %vm554_vm12 = vcmp.gt.f32.partialorder %v541_v30, 0.0  ;;  %v583_v59 = vsel %vm553_vm11, %v540_v41, %v570_v47 }
 0x1d1   :  { %v502_v54 = vsel %vm472_vm10, %v431_v45, %v489_v48  ;;  %vm473_vm13 = vcmp.gt.f32.partialorder %v434_v51, 0.0  ;;  %v490_v55 = vmul.f32 %v2611_v58, %v434_v51 }
 0x1d2   :  { %v522_v57 = vmul.f32 %v2618_v2, %v502_v54  ;;  %v584_v62 = vsel %vm554_vm12, %v541_v30, %v571_v53 }
 0x1d3   :  { %v503_v63 = vsel %vm473_vm13, %v434_v51, %v490_v55  ;;  %v610_v1 = vpack.c.bf16 %v584_v62, %v583_v59 }
 0x1d4   :  { %v542_v3 = vadd.f32 %v2625_v7, %v522_v57  ;;  %v523_v5 = vmul.f32 %v2618_v2, %v503_v63  ;;  %v438_v6 = vpop.f32.mrb[12].mxu1 }
 0x1d5   :  { %v439_v8 = vadd.f32 %v2609_v56, %v438_v6  ;;  %v1986_v11 = vpop.f32.mrb[13].mxu1  ;;  %2021 = vmatmul.mubr.msk.bf16.gmra.mrb[32].mxu0 %vm354_vm5, %v610_v1 }
 0x1d6   :  { %v572_v12 = vmul.f32 %v2628_v13, %v542_v3  ;;  %v543_v14 = vadd.f32 %v2625_v7, %v523_v5  ;;  %v441_v15 = vpop.f32.mrb[14].mxu1  ;;  %2024 = vmatprep.mubr.msk.bf16.mxu0 %vm2256_vm0, %v2255_v0  ;;  %vm555_vm15 = vcmp.gt.f32.partialorder %v542_v3, 0.0 }
 0x1d7   :  { %vm474_vm14 = vcmp.gt.f32.partialorder %v439_v8, 0.0  ;;  %v491_v16 = vmul.f32 %v2611_v58, %v439_v8  ;;  %v442_v17 = vadd.f32 %v2609_v56, %v441_v15  ;;  %v1987_v18 = vpop.f32.mrb[15].mxu1 }
 0x1d8   :  { %v573_v19 = vmul.f32 %v2628_v13, %v543_v14  ;;  %vm556_vm1 = vcmp.gt.f32.partialorder %v543_v14, 0.0  ;;  %v585_v25 = vsel %vm555_vm15, %v542_v3, %v572_v12 }
 0x1d9   :  { %v504_v22 = vsel %vm474_vm14, %v439_v8, %v491_v16  ;;  %vm475_vm3 = vcmp.gt.f32.partialorder %v442_v17, 0.0  ;;  %v492_v23 = vmul.f32 %v2611_v58, %v442_v17 }
 0x1da   :  { %v524_v24 = vmul.f32 %v2618_v2, %v504_v22  ;;  %v586_v26 = vsel %vm556_vm1, %v543_v14, %v573_v19 }
 0x1db   :  { %v505_v27 = vsel %vm475_vm3, %v442_v17, %v492_v23  ;;  %v611_v29 = vpack.c.bf16 %v586_v26, %v585_v25 }
 0x1dc   :  { %v544_v31 = vadd.f32 %v2625_v7, %v524_v24  ;;  %v525_v32 = vmul.f32 %v2618_v2, %v505_v27  ;;  %v446_v35 = vpop.f32.mrb[16].mxu1 }
 0x1dd   :  { %v447_v36 = vadd.f32 %v2609_v56, %v446_v35  ;;  %v1990_v37 = vpop.f32.mrb[17].mxu1  ;;  %2025 = vmatmul.mubr.msk.bf16.gmra.mrb[36].mxu0 %vm354_vm5, %v611_v29 }
 0x1de   :  { %v574_v40 = vmul.f32 %v2628_v13, %v544_v31  ;;  %v545_v41 = vadd.f32 %v2625_v7, %v525_v32  ;;  %v449_v42 = vpop.f32.mrb[18].mxu1  ;;  %2028 = vmatprep.mubr.msk.bf16.mxu0 %vm2256_vm0, %v2255_v0  ;;  %vm557_vm6 = vcmp.gt.f32.partialorder %v544_v31, 0.0 }
 0x1df   :  { %vm476_vm4 = vcmp.gt.f32.partialorder %v447_v36, 0.0  ;;  %v493_v43 = vmul.f32 %v2611_v58, %v447_v36  ;;  %v450_v45 = vadd.f32 %v2609_v56, %v449_v42  ;;  %v1991_v28 = vpop.f32.mrb[19].mxu1 }
 0x1e0   :  { %v575_v30 = vmul.f32 %v2628_v13, %v545_v41  ;;  %vm558_vm7 = vcmp.gt.f32.partialorder %v545_v41, 0.0  ;;  %v587_v51 = vsel %vm557_vm6, %v544_v31, %v574_v40 }
 0x1e1   :  { %v506_v46 = vsel %vm476_vm4, %v447_v36, %v493_v43  ;;  %vm477_vm8 = vcmp.gt.f32.partialorder %v450_v45, 0.0  ;;  %v494_v47 = vmul.f32 %v2611_v58, %v450_v45 }
 0x1e2   :  { %v526_v48 = vmul.f32 %v2618_v2, %v506_v46  ;;  %v588_v52 = vsel %vm558_vm7, %v545_v41, %v575_v30  ;;  %v2260_v46 = vmov 3  }
 0x1e3   :  { %v507_v53 = vsel %vm477_vm8, %v450_v45, %v494_v47  ;;  %v612_v54 = vpack.c.bf16 %v588_v52, %v587_v51  ;;  %2203 = vset.pattern.permute.xlu1 %v2260_v46  ;;  %v2238_v47 = vld [vmem:[%s3152_s13] sm:$0xff]   ;;  %v2261_v51 = vmov 4   ;;  %v2240_v52 = vld [vmem:[%s3152_s13 + $0x10] sm:$0xff]  }
 0x1e4   :  { %v546_v55 = vadd.f32 %v2625_v7, %v526_v48  ;;  %v527_v57 = vmul.f32 %v2618_v2, %v507_v53  ;;  %v454_v59 = vpop.f32.mrb[20].mxu1  ;;  %1032 = vperm.xlu1 %2203, %v2377_v4   ;;  %2089 = vmatpush3.bf16.msra.mxu0 %v2238_v47  ;;  %v2239_v48 = vld [vmem:[%s3152_s13 + $0x8] sm:$0xff]   ;;  %v2241_v53 = vld [vmem:[%s3152_s13 + $0x18] sm:$0xff]  }
 0x1e5   :  { %v455_v62 = vadd.f32 %v2609_v56, %v454_v59  ;;  %v1994_v63 = vpop.f32.mrb[21].mxu1  ;;  %2029 = vmatmul.mubr.msk.bf16.gmra.mrb[40].mxu0 %vm354_vm5, %v612_v54  ;;  %2090 = vmatprep.subr.bf16.mxu0 %v2255_v0  ;;  %v2242_v54 = vld [vmem:[%s3152_s13 + $0x20] sm:$0xff]  }
 0x1e6   :  { %v576_v1 = vmul.f32 %v2628_v13, %v546_v55  ;;  %v547_v3 = vadd.f32 %v2625_v7, %v527_v57  ;;  %v457_v5 = vpop.f32.mrb[22].mxu1  ;;  %2032 = vmatprep.mubr.msk.bf16.mxu0 %vm2256_vm0, %v2255_v0  ;;  %vm559_vm10 = vcmp.gt.f32.partialorder %v546_v55, 0.0 }
 0x1e7   :  { %vm478_vm9 = vcmp.gt.f32.partialorder %v455_v62, 0.0  ;;  %v495_v6 = vmul.f32 %v2611_v58, %v455_v62  ;;  %v458_v8 = vadd.f32 %v2609_v56, %v457_v5  ;;  %v1995_v11 = vpop.f32.mrb[23].mxu1 }
 0x1e8   :  { %v577_v12 = vmul.f32 %v2628_v13, %v547_v3  ;;  %vm560_vm11 = vcmp.gt.f32.partialorder %v547_v3, 0.0  ;;  %v589_v17 = vsel %vm559_vm10, %v546_v55, %v576_v1  ;;  %2204 = vset.pattern.permute.xlu1 %v2261_v51  ;;  %2091 = vmatpush3.bf16.msra.mxu0 %v2239_v48  ;;  %v2745_v55 = vld [vmem:[%s3153_s8] ss:$0 sm:$0xff] }
 0x1e9   :  { %v508_v14 = vsel %vm478_vm9, %v455_v62, %v495_v6  ;;  %vm479_vm12 = vcmp.gt.f32.partialorder %v458_v8, 0.0  ;;  %v496_v15 = vmul.f32 %v2611_v58, %v458_v8  ;;  %1115 = vperm.xlu1 %2204, %v2377_v4   ;;  %2092 = vmatprep.subr.bf16.mxu0 %v2255_v0  ;;  %v2243_v4 = vld [vmem:[%s3152_s13 + $0x28] sm:$0xff]  }
 0x1ea   :  { %v528_v16 = vmul.f32 %v2618_v2, %v508_v14  ;;  %v590_v18 = vsel %vm560_vm11, %v547_v3, %v577_v12 }
 0x1eb   :  { %v509_v19 = vsel %vm479_vm12, %v458_v8, %v496_v15  ;;  %v613_v22 = vpack.c.bf16 %v590_v18, %v589_v17 }
 0x1ec   :  { %v548_v23 = vadd.f32 %v2625_v7, %v528_v16  ;;  %v529_v24 = vmul.f32 %v2618_v2, %v509_v19  ;;  %v462_v25 = vpop.f32.mrb[24].mxu1  ;;  %2093 = vmatpush3.bf16.msra.mxu0 %v2240_v52 }
 0x1ed   :  { %v463_v26 = vadd.f32 %v2609_v56, %v462_v25  ;;  %v1998_v27 = vpop.f32.mrb[25].mxu1  ;;  %2033 = vmatmul.mubr.msk.bf16.gmra.mrb[44].mxu0 %vm354_vm5, %v613_v22  ;;  %2094 = vmatprep.subr.bf16.mxu0 %v2255_v0 }
 0x1ee   :  { %v578_v29 = vmul.f32 %v2628_v13, %v548_v23  ;;  %v549_v31 = vadd.f32 %v2625_v7, %v529_v24  ;;  %v465_v32 = vpop.f32.mrb[26].mxu1  ;;  %2036 = vmatprep.mubr.msk.bf16.mxu0 %vm2256_vm0, %v2255_v0  ;;  %vm561_vm14 = vcmp.gt.f32.partialorder %v548_v23, 0.0 }
 0x1ef   :  { %vm480_vm13 = vcmp.gt.f32.partialorder %v463_v26, 0.0  ;;  %v497_v35 = vmul.f32 %v2611_v58, %v463_v26  ;;  %v1999_v36 = vpop.f32.mrb[27].mxu1 }
 0x1f0   :  { %v579_v37 = vmul.f32 %v2628_v13, %v549_v31  ;;  %vm562_vm15 = vcmp.gt.f32.partialorder %v549_v31, 0.0  ;;  %v591_v41 = vsel %vm561_vm14, %v548_v23, %v578_v29  ;;  %2095 = vmatpush3.bf16.msra.mxu0 %v2241_v53 }
 0x1f1   :  { %v510_v56 = vsel %vm480_vm13, %v463_v26, %v497_v35  ;;  %2096 = vmatprep.subr.bf16.mxu0 %v2255_v0 }
 0x1f2   :  { %v530_v40 = vmul.f32 %v2618_v2, %v510_v56  ;;  %v592_v42 = vsel %vm562_vm15, %v549_v31, %v579_v37  ;;  %v2237_v2 = vld [vmem:[%s3148_s9 + $0x38] ss:$0 sps:$4 sm:$0xff]  }
 0x1f3   :  { %v614_v43 = vpack.c.bf16 %v592_v42, %v591_v41 }
 0x1f4   :  { %v550_v45 = vadd.f32 %v2625_v7, %v530_v40  ;;  %v928_v7 = vsel %vm376_vm2, %v2237_v2, 0  ;;  %2097 = vmatpush3.bf16.msra.mxu0 %v2242_v54 }
 0x1f5   :  { %2037 = vmatmul.mubr.msk.bf16.gmra.mrb[48].mxu0 %vm354_vm5, %v614_v43  ;;  %2059 = vmatpush3.bf16.msra.mxu1 %v928_v7 }
 0x1f6   :  { %2040 = vmatprep.mubr.msk.bf16.mxu0 %vm2256_vm0, %v2255_v0  ;;  %vm563_vm1 = vcmp.gt.f32.partialorder %v550_v45, 0.0  ;;  %v580_v58 = vmul.f32 %v2628_v13, %v550_v45  ;;  %2176 = vmatprep.subr.bf16.mxu1 %v2255_v0 }
 0x1f7   :  { %2098 = vmatprep.subr.bf16.mxu0 %v2255_v0 }
 0x1f8   :  { %v593_v28 = vsel %vm563_vm1, %v550_v45, %v580_v58  ;;  %2099 = vmatpush3.bf16.msra.mxu0 %v2243_v4 }
 0x1f9   :  { %v615_v30 = vpack.c.bf16 %v593_v28, %v593_v28  ;;  %2100 = vmatprep.subr.bf16.mxu0 %v2255_v0 }
 0x1fd   :  { %2041 = vmatmul.mubr.msk.bf16.gmra.mrb[52].mxu0 %vm354_vm5, %v615_v30 }
 0x1fe   :  { %2104 = vmatprep.mubr.msk.bf16.mxu0 %vm2256_vm0, %v2255_v0 }
 0x2a0   :  { %v726_v57 = vpop.f32.mrb[28].mxu0 }
 0x2a1   :  { %v727_v59 = vadd.f32 %v2745_v55, %v726_v57  ;;  %v2018_v62 = vpop.f32.mrb[29].mxu0 }
 0x2a2   :  { %v729_v63 = vpop.f32.mrb[30].mxu0 }
 0x2a3   :  { %v780_v1 = vadd.f32 %v727_v59, %v2486_v38  ;;  %v730_v3 = vadd.f32 %v2745_v55, %v729_v63  ;;  %v2019_v5 = vpop.f32.mrb[31].mxu0 }
 0x2a5   :  { %v806_v6 = vmul.f32 %v780_v1, %v2628_v13  ;;  %v781_v8 = vadd.f32 %v730_v3, %v2488_v39  ;;  %vm793_vm3 = vcmp.gt.f32.partialorder %v780_v1, 0.0 }
 0x2a7   :  { %vm794_vm4 = vcmp.gt.f32.partialorder %v781_v8, 0.0  ;;  %v807_v11 = vmul.f32 %v781_v8, %v2628_v13  ;;  %v2753_v14 = vsel %vm793_vm3, %v780_v1, %v806_v6 }
 0x2a8   :  { %v734_v12 = vpop.f32.mrb[32].mxu0 }
 0x2a9   :  { %v2755_v15 = vsel %vm794_vm4, %v781_v8, %v807_v11  ;;  %v735_v16 = vadd.f32 %v2745_v55, %v734_v12  ;;  %v2022_v17 = vpop.f32.mrb[33].mxu0 }
 0x2aa   :  { %v847_v38 = vpack.c.bf16 %v2755_v15, %v2753_v14  ;;  %v737_v18 = vpop.f32.mrb[34].mxu0 }
 0x2ab   :  { %v782_v19 = vadd.f32 %v735_v16, %v2499_v49  ;;  %v738_v39 = vadd.f32 %v2745_v55, %v737_v18  ;;  %v2023_v22 = vpop.f32.mrb[35].mxu0 }
 0x2ac   :  { %2061 = vmatmul.mubr.msk.bf16.vlgmr.msra.gmra.mrb[28].mxu1 %vm354_vm5, %v847_v38 }
 0x2ad   :  { %v808_v23 = vmul.f32 %v782_v19, %v2628_v13  ;;  %v783_v24 = vadd.f32 %v738_v39, %v2501_v50  ;;  %2064 = vmatprep.mubr.msk.bf16.mxu1 %vm2256_vm0, %v2255_v0  ;;  %vm795_vm6 = vcmp.gt.f32.partialorder %v782_v19, 0.0 }
 0x2af   :  { %vm796_vm7 = vcmp.gt.f32.partialorder %v783_v24, 0.0  ;;  %v809_v25 = vmul.f32 %v783_v24, %v2628_v13  ;;  %v2768_v27 = vsel %vm795_vm6, %v782_v19, %v808_v23 }
 0x2b0   :  { %v742_v26 = vpop.f32.mrb[36].mxu0 }
 0x2b1   :  { %v2770_v49 = vsel %vm796_vm7, %v783_v24, %v809_v25  ;;  %v743_v29 = vadd.f32 %v2745_v55, %v742_v26  ;;  %v2026_v31 = vpop.f32.mrb[37].mxu0 }
 0x2b2   :  { %v745_v32 = vpop.f32.mrb[38].mxu0  ;;  %v848_v35 = vpack.c.bf16 %v2770_v49, %v2768_v27 }
 0x2b3   :  { %v784_v50 = vadd.f32 %v743_v29, %v2512_v60  ;;  %v746_v36 = vadd.f32 %v2745_v55, %v745_v32  ;;  %v2027_v37 = vpop.f32.mrb[39].mxu0 }
 0x2b4   :  { %2065 = vmatmul.mubr.msk.bf16.gmra.mrb[32].mxu1 %vm354_vm5, %v848_v35  ;;  %v2866_v37 = vld [vmem:[%s3154_s15 + $0x8] sm:$0xff]  }
 0x2b5   :  { %v810_v56 = vmul.f32 %v784_v50, %v2628_v13  ;;  %v785_v40 = vadd.f32 %v746_v36, %v2514_v61  ;;  %2068 = vmatprep.mubr.msk.bf16.mxu1 %vm2256_vm0, %v2255_v0  ;;  %vm797_vm8 = vcmp.gt.f32.partialorder %v784_v50, 0.0  ;;  %v2859_v36 = vld [vmem:[%s3154_s15] sm:$0xff]  }
 0x2b6   :  { %2184 = vmatpush3.bf16.msra.mxu1 %v2859_v36 }
 0x2b7   :  { %vm798_vm9 = vcmp.gt.f32.partialorder %v785_v40, 0.0  ;;  %v811_v41 = vmul.f32 %v785_v40, %v2628_v13  ;;  %v2783_v43 = vsel %vm797_vm8, %v784_v50, %v810_v56  ;;  %2177 = vmatprep.subr.bf16.mxu1 %v2255_v0  ;;  %v2873_v56 = vld [vmem:[%s3154_s15 + $0x10] sm:$0xff]  }
 0x2b8   :  { %v750_v42 = vpop.f32.mrb[40].mxu0 }
 0x2b9   :  { %v2785_v60 = vsel %vm798_vm9, %v785_v40, %v811_v41  ;;  %v751_v45 = vadd.f32 %v2745_v55, %v750_v42  ;;  %v2030_v58 = vpop.f32.mrb[41].mxu0  ;;  %v2880_v40 = vld [vmem:[%s3154_s15 + $0x18] sm:$0xff]   ;;  %v2887_v41 = vld [vmem:[%s3154_s15 + $0x20] sm:$0xff]   ;;  %v2894_v42 = vld [vmem:[%s3154_s15 + $0x28] sm:$0xff]  }
 0x2ba   :  { %v753_v28 = vpop.f32.mrb[42].mxu0  ;;  %v849_v30 = vpack.c.bf16 %v2785_v60, %v2783_v43  ;;  %2185 = vmatpush3.bf16.msra.mxu1 %v2866_v37 }
 0x2bb   :  { %v786_v61 = vadd.f32 %v751_v45, %v2525_v9  ;;  %v754_v2 = vadd.f32 %v2745_v55, %v753_v28  ;;  %v2031_v7 = vpop.f32.mrb[43].mxu0  ;;  %2178 = vmatprep.subr.bf16.mxu1 %v2255_v0  ;;  %v2901_v45 = vld [vmem:[%s3155_s10] ss:$0 sm:$0xff]  ;;  %v2903_v28 = vpop.permute.xlu1 %1032 }
 0x2bc   :  { %2069 = vmatmul.mubr.msk.bf16.gmra.mrb[36].mxu1 %vm354_vm5, %v849_v30 }
 0x2bd   :  { %v812_v46 = vmul.f32 %v786_v61, %v2628_v13  ;;  %v787_v47 = vadd.f32 %v754_v2, %v2527_v10  ;;  %2072 = vmatprep.mubr.msk.bf16.mxu1 %vm2256_vm0, %v2255_v0  ;;  %vm799_vm10 = vcmp.gt.f32.partialorder %v786_v61, 0.0 }
 0x2be   :  { %2186 = vmatpush3.bf16.msra.mxu1 %v2873_v56 }
 0x2bf   :  { %vm800_vm11 = vcmp.gt.f32.partialorder %v787_v47, 0.0  ;;  %v813_v48 = vmul.f32 %v787_v47, %v2628_v13  ;;  %v2798_v52 = vsel %vm799_vm10, %v786_v61, %v812_v46  ;;  %2179 = vmatprep.subr.bf16.mxu1 %v2255_v0  ;;  %v2910_v46 = vld [vmem:[%s3156_s11] ss:$0 sm:$0xff] }
 0x2c0   :  { %v758_v51 = vpop.f32.mrb[44].mxu0 }
 0x2c1   :  { %v2800_v9 = vsel %vm800_vm11, %v787_v47, %v813_v48  ;;  %v759_v53 = vadd.f32 %v2745_v55, %v758_v51  ;;  %v2034_v54 = vpop.f32.mrb[45].mxu0 }
 0x2c2   :  { %v761_v4 = vpop.f32.mrb[46].mxu0  ;;  %v850_v57 = vpack.c.bf16 %v2800_v9, %v2798_v52  ;;  %2187 = vmatpush3.bf16.msra.mxu1 %v2880_v40 }
 0x2c3   :  { %v788_v10 = vadd.f32 %v759_v53, %v2538_v20  ;;  %v762_v59 = vadd.f32 %v2745_v55, %v761_v4  ;;  %v2035_v62 = vpop.f32.mrb[47].mxu0  ;;  %2180 = vmatprep.subr.bf16.mxu1 %v2255_v0  ;;  %v2917_v53 = vld [vmem:[%s3157_s12] ss:$0 sm:$0xff] }
 0x2c4   :  { %2073 = vmatmul.mubr.msk.bf16.gmra.mrb[40].mxu1 %vm354_vm5, %v850_v57 }
 0x2c5   :  { %v814_v63 = vmul.f32 %v788_v10, %v2628_v13  ;;  %v789_v1 = vadd.f32 %v762_v59, %v2540_v21  ;;  %2076 = vmatprep.mubr.msk.bf16.mxu1 %vm2256_vm0, %v2255_v0  ;;  %vm801_vm12 = vcmp.gt.f32.partialorder %v788_v10, 0.0 }
 0x2c6   :  { %2188 = vmatpush3.bf16.msra.mxu1 %v2887_v41 }
 0x2c7   :  { %vm802_vm13 = vcmp.gt.f32.partialorder %v789_v1, 0.0  ;;  %v815_v3 = vmul.f32 %v789_v1, %v2628_v13  ;;  %v2813_v6 = vsel %vm801_vm12, %v788_v10, %v814_v63  ;;  %2181 = vmatprep.subr.bf16.mxu1 %v2255_v0  ;;  %v2920_v10 = vpop.permute.xlu1 %1115 }
 0x2c8   :  { %v766_v5 = vpop.f32.mrb[48].mxu0 }
 0x2c9   :  { %v2815_v20 = vsel %vm802_vm13, %v789_v1, %v815_v3  ;;  %v767_v8 = vadd.f32 %v2745_v55, %v766_v5  ;;  %v2038_v11 = vpop.f32.mrb[49].mxu0 }
 0x2ca   :  { %v769_v12 = vpop.f32.mrb[50].mxu0  ;;  %v851_v16 = vpack.c.bf16 %v2815_v20, %v2813_v6  ;;  %2189 = vmatpush3.bf16.msra.mxu1 %v2894_v42 }
 0x2cb   :  { %v790_v21 = vadd.f32 %v767_v8, %v2551_v33  ;;  %v770_v17 = vadd.f32 %v2745_v55, %v769_v12  ;;  %v2039_v38 = vpop.f32.mrb[51].mxu0  ;;  %2182 = vmatprep.subr.bf16.mxu1 %v2255_v0 }
 0x2cc   :  { %2077 = vmatmul.mubr.msk.bf16.gmra.mrb[44].mxu1 %vm354_vm5, %v851_v16 }
 0x2cd   :  { %v816_v18 = vmul.f32 %v790_v21, %v2628_v13  ;;  %v791_v19 = vadd.f32 %v770_v17, %v2553_v34  ;;  %2080 = vmatprep.mubr.msk.bf16.mxu1 %vm2256_vm0, %v2255_v0  ;;  %vm803_vm14 = vcmp.gt.f32.partialorder %v790_v21, 0.0 }
 0x2cf   :  { %vm804_vm15 = vcmp.gt.f32.partialorder %v791_v19, 0.0  ;;  %v817_v39 = vmul.f32 %v791_v19, %v2628_v13  ;;  %v2828_v23 = vsel %vm803_vm14, %v790_v21, %v816_v18 }
 0x2d0   :  { %v774_v22 = vpop.f32.mrb[52].mxu0 }
 0x2d1   :  { %v2830_v33 = vsel %vm804_vm15, %v791_v19, %v817_v39  ;;  %v775_v24 = vadd.f32 %v2745_v55, %v774_v22  ;;  %v2042_v25 = vpop.f32.mrb[53].mxu0 }
 0x2d2   :  { %v777_v26 = vpop.f32.mrb[54].mxu0  ;;  %v852_v29 = vpack.c.bf16 %v2830_v33, %v2828_v23 }
 0x2d3   :  { %v792_v34 = vadd.f32 %v775_v24, %v2562_v44  ;;  %v2043_v31 = vpop.f32.mrb[55].mxu0  ;;  %v2244_v44 = vld [vmem:[%s3152_s13 + $0x30] sm:$0xff]  }
 0x2d4   :  { %2081 = vmatmul.mubr.msk.bf16.gmra.mrb[48].mxu1 %vm354_vm5, %v852_v29  ;;  %2101 = vmatpush3.bf16.msra.mxu0 %v2244_v44 }
 0x2d5   :  { %vm805_vm1 = vcmp.gt.f32.partialorder %v792_v34, 0.0  ;;  %v818_v32 = vmul.f32 %v792_v34, %v2628_v13  ;;  %2084 = vmatprep.mubr.msk.bf16.mxu1 %vm2256_vm0, %v2255_v0  ;;  %2102 = vmatprep.subr.bf16.mxu0 %v2255_v0  ;;  %v2245_v13 = vld [vmem:[%s3152_s13 + $0x38] ss:$0 sps:$4 sm:$0xff]  }
 0x2d6   :  { %v1240_v50 = vsel %vm376_vm2, %v2245_v13, 0 }
 0x2d7   :  { %v2840_v35 = vsel %vm805_vm1, %v792_v34, %v818_v32 }
 0x2d8   :  { %v853_v55 = vpack.c.bf16 %v2840_v35, %v2840_v35  ;;  %2103 = vmatpush3.bf16.msra.mxu0 %v1240_v50 }
 0x2d9   :  { %2132 = vmatprep.subr.bf16.mxu0 %v2255_v0 }
 0x2dc   :  { %2085 = vmatmul.mubr.msk.bf16.gmra.mrb[52].mxu1 %vm354_vm5, %v853_v55 }
 0x2dd   :  { %2152 = vmatprep.mubr.msk.bf16.mxu1 %vm2256_vm0, %v2255_v0 }
 0x37f   :  { %v964_v58 = vpop.f32.mrb[28].mxu1 }
 0x380   :  { %v965_v30 = vadd.f32 %v2901_v45, %v964_v58  ;;  %v2062_v61 = vpop.f32.mrb[29].mxu1 }
 0x381   :  { %v967_v2 = vpop.f32.mrb[30].mxu1 }
 0x382   :  { %vm1018_vm3 = vcmp.gt.f32.partialorder %v965_v30, 0.0  ;;  %v968_v7 = vadd.f32 %v2901_v45, %v967_v2  ;;  %v2063_v47 = vpop.f32.mrb[31].mxu1  ;;  %v1035_v48 = vmul.f32 %v2903_v28, %v965_v30 }
 0x384   :  { %vm1019_vm4 = vcmp.gt.f32.partialorder %v968_v7, 0.0  ;;  %v1036_v51 = vmul.f32 %v2903_v28, %v968_v7  ;;  %v1048_v54 = vsel %vm1018_vm3, %v965_v30, %v1035_v48 }
 0x385   :  { %v1068_v4 = vmul.f32 %v2910_v46, %v1048_v54 }
 0x386   :  { %v1049_v57 = vsel %vm1019_vm4, %v968_v7, %v1036_v51 }
 0x387   :  { %v1069_v59 = vmul.f32 %v2910_v46, %v1049_v57  ;;  %v972_v62 = vpop.f32.mrb[32].mxu1  ;;  %v1088_v63 = vadd.f32 %v2917_v53, %v1068_v4 }
 0x388   :  { %v973_v1 = vadd.f32 %v2901_v45, %v972_v62  ;;  %v2066_v3 = vpop.f32.mrb[33].mxu1 }
 0x389   :  { %v1089_v5 = vadd.f32 %v2917_v53, %v1069_v59  ;;  %v975_v8 = vpop.f32.mrb[34].mxu1  ;;  %v1118_v11 = vmul.f32 %v2920_v10, %v1088_v63  ;;  %vm1101_vm7 = vcmp.gt.f32.partialorder %v1088_v63, 0.0 }
 0x38a   :  { %vm1020_vm6 = vcmp.gt.f32.partialorder %v973_v1, 0.0  ;;  %v1037_v12 = vmul.f32 %v2903_v28, %v973_v1  ;;  %v976_v16 = vadd.f32 %v2901_v45, %v975_v8  ;;  %v2067_v21 = vpop.f32.mrb[35].mxu1 }
 0x38b   :  { %vm1102_vm8 = vcmp.gt.f32.partialorder %v1089_v5, 0.0  ;;  %v1119_v17 = vmul.f32 %v2920_v10, %v1089_v5  ;;  %v1131_v39 = vsel %vm1101_vm7, %v1088_v63, %v1118_v11 }
 0x38c   :  { %v1050_v38 = vsel %vm1020_vm6, %v973_v1, %v1037_v12  ;;  %vm1021_vm9 = vcmp.gt.f32.partialorder %v976_v16, 0.0  ;;  %v1038_v18 = vmul.f32 %v2903_v28, %v976_v16 }
 0x38d   :  { %v1070_v19 = vmul.f32 %v2910_v46, %v1050_v38  ;;  %v1132_v22 = vsel %vm1102_vm8, %v1089_v5, %v1119_v17 }
 0x38e   :  { %v1051_v24 = vsel %vm1021_vm9, %v976_v16, %v1038_v18  ;;  %v1159_v25 = vpack.c.bf16 %v1132_v22, %v1131_v39 }
 0x38f   :  { %v1090_v26 = vadd.f32 %v2917_v53, %v1070_v19  ;;  %v1071_v29 = vmul.f32 %v2910_v46, %v1051_v24  ;;  %v980_v34 = vpop.f32.mrb[36].mxu1 }
 0x390   :  { %v981_v31 = vadd.f32 %v2901_v45, %v980_v34  ;;  %v2070_v32 = vpop.f32.mrb[37].mxu1  ;;  %2105 = vmatmul.mubr.msk.bf16.vlgmr.msra.gmra.mrb[56].mxu0 %vm354_vm5, %v1159_v25 }
 0x391   :  { %v1091_v55 = vadd.f32 %v2917_v53, %v1071_v29  ;;  %v983_v44 = vpop.f32.mrb[38].mxu1  ;;  %2108 = vmatprep.mubr.msk.bf16.mxu0 %vm2256_vm0, %v2255_v0  ;;  %v1120_v13 = vmul.f32 %v2920_v10, %v1090_v26  ;;  %2133 = vmatpush3.bf16.msra.mxu0 %v2859_v36  ;;  %vm1103_vm11 = vcmp.gt.f32.partialorder %v1090_v26, 0.0 }
 0x392   :  { %vm1022_vm10 = vcmp.gt.f32.partialorder %v981_v31, 0.0  ;;  %v1039_v50 = vmul.f32 %v2903_v28, %v981_v31  ;;  %v984_v58 = vadd.f32 %v2901_v45, %v983_v44  ;;  %v2071_v30 = vpop.f32.mrb[39].mxu1  ;;  %2134 = vmatprep.subr.bf16.mxu0 %v2255_v0 }
 0x393   :  { %v1121_v61 = vmul.f32 %v2920_v10, %v1091_v55  ;;  %vm1104_vm12 = vcmp.gt.f32.partialorder %v1091_v55, 0.0  ;;  %v1133_v48 = vsel %vm1103_vm11, %v1090_v26, %v1120_v13 }
 0x394   :  { %v1052_v2 = vsel %vm1022_vm10, %v981_v31, %v1039_v50  ;;  %vm1023_vm13 = vcmp.gt.f32.partialorder %v984_v58, 0.0  ;;  %v1040_v7 = vmul.f32 %v2903_v28, %v984_v58 }
 0x395   :  { %v1072_v47 = vmul.f32 %v2910_v46, %v1052_v2  ;;  %v1134_v36 = vsel %vm1104_vm12, %v1091_v55, %v1121_v61  ;;  %2135 = vmatpush3.bf16.msra.mxu0 %v2866_v37 }
 0x396   :  { %v1053_v51 = vsel %vm1023_vm13, %v984_v58, %v1040_v7  ;;  %v1160_v54 = vpack.c.bf16 %v1134_v36, %v1133_v48  ;;  %2136 = vmatprep.subr.bf16.mxu0 %v2255_v0 }
 0x397   :  { %v1092_v4 = vadd.f32 %v2917_v53, %v1072_v47  ;;  %v1073_v57 = vmul.f32 %v2910_v46, %v1053_v51  ;;  %v988_v59 = vpop.f32.mrb[40].mxu1 }
 0x398   :  { %v989_v62 = vadd.f32 %v2901_v45, %v988_v59  ;;  %v2074_v63 = vpop.f32.mrb[41].mxu1  ;;  %2109 = vmatmul.mubr.msk.bf16.gmra.mrb[60].mxu0 %vm354_vm5, %v1160_v54 }
 0x399   :  { %v1122_v1 = vmul.f32 %v2920_v10, %v1092_v4  ;;  %v1093_v3 = vadd.f32 %v2917_v53, %v1073_v57  ;;  %v991_v5 = vpop.f32.mrb[42].mxu1  ;;  %2112 = vmatprep.mubr.msk.bf16.mxu0 %vm2256_vm0, %v2255_v0  ;;  %2137 = vmatpush3.bf16.msra.mxu0 %v2873_v56  ;;  %vm1105_vm15 = vcmp.gt.f32.partialorder %v1092_v4, 0.0 }
 0x39a   :  { %vm1024_vm14 = vcmp.gt.f32.partialorder %v989_v62, 0.0  ;;  %v1041_v37 = vmul.f32 %v2903_v28, %v989_v62  ;;  %v992_v8 = vadd.f32 %v2901_v45, %v991_v5  ;;  %v2075_v11 = vpop.f32.mrb[43].mxu1  ;;  %2138 = vmatprep.subr.bf16.mxu0 %v2255_v0 }
 0x39b   :  { %v1123_v12 = vmul.f32 %v2920_v10, %v1093_v3  ;;  %vm1106_vm1 = vcmp.gt.f32.partialorder %v1093_v3, 0.0  ;;  %v1135_v38 = vsel %vm1105_vm15, %v1092_v4, %v1122_v1 }
 0x39c   :  { %v1054_v16 = vsel %vm1024_vm14, %v989_v62, %v1041_v37  ;;  %vm1025_vm3 = vcmp.gt.f32.partialorder %v992_v8, 0.0  ;;  %v1042_v21 = vmul.f32 %v2903_v28, %v992_v8 }
 0x39d   :  { %v1074_v17 = vmul.f32 %v2910_v46, %v1054_v16  ;;  %v1136_v56 = vsel %vm1106_vm1, %v1093_v3, %v1123_v12  ;;  %2139 = vmatpush3.bf16.msra.mxu0 %v2880_v40 }
 0x39e   :  { %v1055_v18 = vsel %vm1025_vm3, %v992_v8, %v1042_v21  ;;  %v1161_v19 = vpack.c.bf16 %v1136_v56, %v1135_v38  ;;  %2140 = vmatprep.subr.bf16.mxu0 %v2255_v0 }
 0x39f   :  { %v1094_v39 = vadd.f32 %v2917_v53, %v1074_v17  ;;  %v1075_v22 = vmul.f32 %v2910_v46, %v1055_v18  ;;  %v996_v24 = vpop.f32.mrb[44].mxu1 }
 0x3a0   :  { %v997_v25 = vadd.f32 %v2901_v45, %v996_v24  ;;  %v2078_v26 = vpop.f32.mrb[45].mxu1  ;;  %2113 = vmatmul.mubr.msk.bf16.gmra.mrb[64].mxu0 %vm354_vm5, %v1161_v19 }
 0x3a1   :  { %v1124_v29 = vmul.f32 %v2920_v10, %v1094_v39  ;;  %v1095_v34 = vadd.f32 %v2917_v53, %v1075_v22  ;;  %v999_v31 = vpop.f32.mrb[46].mxu1  ;;  %2116 = vmatprep.mubr.msk.bf16.mxu0 %vm2256_vm0, %v2255_v0  ;;  %2141 = vmatpush3.bf16.msra.mxu0 %v2887_v41  ;;  %vm1107_vm6 = vcmp.gt.f32.partialorder %v1094_v39, 0.0 }
 0x3a2   :  { %vm1026_vm4 = vcmp.gt.f32.partialorder %v997_v25, 0.0  ;;  %v1043_v40 = vmul.f32 %v2903_v28, %v997_v25  ;;  %v1000_v32 = vadd.f32 %v2901_v45, %v999_v31  ;;  %v2079_v55 = vpop.f32.mrb[47].mxu1  ;;  %2142 = vmatprep.subr.bf16.mxu0 %v2255_v0 }
 0x3a3   :  { %v1125_v44 = vmul.f32 %v2920_v10, %v1095_v34  ;;  %vm1108_vm7 = vcmp.gt.f32.partialorder %v1095_v34, 0.0  ;;  %v1137_v30 = vsel %vm1107_vm6, %v1094_v39, %v1124_v29 }
 0x3a4   :  { %v1056_v13 = vsel %vm1026_vm4, %v997_v25, %v1043_v40  ;;  %vm1027_vm8 = vcmp.gt.f32.partialorder %v1000_v32, 0.0  ;;  %v1044_v50 = vmul.f32 %v2903_v28, %v1000_v32 }
 0x3a5   :  { %v1076_v58 = vmul.f32 %v2910_v46, %v1056_v13  ;;  %v1138_v41 = vsel %vm1108_vm7, %v1095_v34, %v1125_v44  ;;  %2143 = vmatpush3.bf16.msra.mxu0 %v2894_v42  ;;  %v2262_v13 = vmov 5  }
 0x3a6   :  { %v1057_v61 = vsel %vm1027_vm8, %v1000_v32, %v1044_v50  ;;  %v1162_v2 = vpack.c.bf16 %v1138_v41, %v1137_v30  ;;  %2144 = vmatprep.subr.bf16.mxu0 %v2255_v0  ;;  %2205 = vset.pattern.permute.xlu0 %v2262_v13  ;;  %v2254_v50 = vld [vmem:[%s3168_s21] ss:$0 sm:$0xff] }
 0x3a7   :  { %v1096_v7 = vadd.f32 %v2917_v53, %v1076_v58  ;;  %v1077_v47 = vmul.f32 %v2910_v46, %v1057_v61  ;;  %v1004_v48 = vpop.f32.mrb[48].mxu1  ;;  %1582 = vperm.xlu0 %2205, %v2254_v50   ;;  %v3030_v58 = vld [vmem:[%s3158_s14] ss:$0 sm:$0xff] }
 0x3a8   :  { %v1005_v36 = vadd.f32 %v2901_v45, %v1004_v48  ;;  %v2082_v51 = vpop.f32.mrb[49].mxu1  ;;  %2117 = vmatmul.mubr.msk.bf16.gmra.mrb[68].mxu0 %vm354_vm5, %v1162_v2 }
 0x3a9   :  { %v1126_v54 = vmul.f32 %v2920_v10, %v1096_v7  ;;  %v1097_v4 = vadd.f32 %v2917_v53, %v1077_v47  ;;  %v1007_v57 = vpop.f32.mrb[50].mxu1  ;;  %2120 = vmatprep.mubr.msk.bf16.mxu0 %vm2256_vm0, %v2255_v0  ;;  %vm1109_vm10 = vcmp.gt.f32.partialorder %v1096_v7, 0.0 }
 0x3aa   :  { %vm1028_vm9 = vcmp.gt.f32.partialorder %v1005_v36, 0.0  ;;  %v1045_v42 = vmul.f32 %v2903_v28, %v1005_v36  ;;  %v1008_v59 = vadd.f32 %v2901_v45, %v1007_v57  ;;  %v2083_v62 = vpop.f32.mrb[51].mxu1 }
 0x3ab   :  { %v1127_v63 = vmul.f32 %v2920_v10, %v1097_v4  ;;  %vm1110_vm11 = vcmp.gt.f32.partialorder %v1097_v4, 0.0  ;;  %v1139_v37 = vsel %vm1109_vm10, %v1096_v7, %v1126_v54 }
 0x3ac   :  { %v1058_v1 = vsel %vm1028_vm9, %v1005_v36, %v1045_v42  ;;  %vm1029_vm12 = vcmp.gt.f32.partialorder %v1008_v59, 0.0  ;;  %v1046_v3 = vmul.f32 %v2903_v28, %v1008_v59 }
 0x3ad   :  { %v1078_v5 = vmul.f32 %v2910_v46, %v1058_v1  ;;  %v1140_v8 = vsel %vm1110_vm11, %v1097_v4, %v1127_v63 }
 0x3ae   :  { %v1059_v11 = vsel %vm1029_vm12, %v1008_v59, %v1046_v3  ;;  %v1163_v12 = vpack.c.bf16 %v1140_v8, %v1139_v37 }
 0x3af   :  { %v1098_v16 = vadd.f32 %v2917_v53, %v1078_v5  ;;  %v1079_v21 = vmul.f32 %v2910_v46, %v1059_v11  ;;  %v1012_v17 = vpop.f32.mrb[52].mxu1 }
 0x3b0   :  { %v1013_v38 = vadd.f32 %v2901_v45, %v1012_v17  ;;  %v2086_v56 = vpop.f32.mrb[53].mxu1  ;;  %2121 = vmatmul.mubr.msk.bf16.gmra.mrb[72].mxu0 %vm354_vm5, %v1163_v12 }
 0x3b1   :  { %v1128_v18 = vmul.f32 %v2920_v10, %v1098_v16  ;;  %v1099_v19 = vadd.f32 %v2917_v53, %v1079_v21  ;;  %v1015_v39 = vpop.f32.mrb[54].mxu1  ;;  %2124 = vmatprep.mubr.msk.bf16.mxu0 %vm2256_vm0, %v2255_v0  ;;  %vm1111_vm14 = vcmp.gt.f32.partialorder %v1098_v16, 0.0 }
 0x3b2   :  { %vm1030_vm13 = vcmp.gt.f32.partialorder %v1013_v38, 0.0  ;;  %v1047_v22 = vmul.f32 %v2903_v28, %v1013_v38  ;;  %v2087_v24 = vpop.f32.mrb[55].mxu1 }
 0x3b3   :  { %v1129_v25 = vmul.f32 %v2920_v10, %v1099_v19  ;;  %vm1112_vm15 = vcmp.gt.f32.partialorder %v1099_v19, 0.0  ;;  %v1141_v29 = vsel %vm1111_vm14, %v1098_v16, %v1128_v18 }
 0x3b4   :  { %v1060_v45 = vsel %vm1030_vm13, %v1013_v38, %v1047_v22 }
 0x3b5   :  { %v1080_v26 = vmul.f32 %v2910_v46, %v1060_v45  ;;  %v1142_v34 = vsel %vm1112_vm15, %v1099_v19, %v1129_v25  ;;  %v2252_v46 = vld [vmem:[%s3154_s15 + $0x30] sm:$0xff]  }
 0x3b6   :  { %v1164_v31 = vpack.c.bf16 %v1142_v34, %v1141_v29  ;;  %2145 = vmatpush3.bf16.msra.mxu0 %v2252_v46  ;;  %2190 = vmatpush3.bf16.msra.mxu1 %v2252_v46 }
 0x3b7   :  { %v1100_v40 = vadd.f32 %v2917_v53, %v1080_v26  ;;  %2146 = vmatprep.subr.bf16.mxu0 %v2255_v0  ;;  %v2253_v53 = vld [vmem:[%s3154_s15 + $0x38] ss:$0 sps:$4 sm:$0xff]   ;;  %2183 = vmatprep.subr.bf16.mxu1 %v2255_v0 }
 0x3b8   :  { %2125 = vmatmul.mubr.msk.bf16.gmra.mrb[76].mxu0 %vm354_vm5, %v1164_v31  ;;  %v1478_v44 = vsel %vm376_vm2, %v2253_v53, 0 }
 0x3b9   :  { %2128 = vmatprep.mubr.msk.bf16.mxu0 %vm2256_vm0, %v2255_v0  ;;  %vm1113_vm1 = vcmp.gt.f32.partialorder %v1100_v40, 0.0  ;;  %v1130_v28 = vmul.f32 %v2920_v10, %v1100_v40 }
 0x3ba   :  { %2147 = vmatpush3.bf16.msra.mxu0 %v1478_v44  ;;  %2191 = vmatpush3.bf16.msra.mxu1 %v1478_v44 }
 0x3bb   :  { %v1143_v32 = vsel %vm1113_vm1, %v1100_v40, %v1130_v28 }
 0x3bc   :  { %v1165_v55 = vpack.c.bf16 %v1143_v32, %v1143_v32 }
 0x3c0   :  { %2129 = vmatmul.mubr.msk.bf16.gmra.mrb[80].mxu0 %vm354_vm5, %v1165_v55 }
 0x3c1   :  { %2148 = vmatprep.mubr.msk.bf16.mxu0 %vm2256_vm0, %v2255_v0 }
 0x463   :  { %v1276_v30 = vpop.f32.mrb[56].mxu0 }
 0x464   :  { %v1277_v41 = vadd.f32 %v3030_v58, %v1276_v30  ;;  %v2106_v61 = vpop.f32.mrb[57].mxu0 }
 0x465   :  { %v1279_v2 = vpop.f32.mrb[58].mxu0 }
 0x466   :  { %v1330_v7 = vadd.f32 %v1277_v41, %v2753_v14  ;;  %v1280_v47 = vadd.f32 %v3030_v58, %v1279_v2  ;;  %v2107_v48 = vpop.f32.mrb[59].mxu0 }
 0x468   :  { %v1356_v36 = vmul.f32 %v1330_v7, %v2920_v10  ;;  %v1331_v51 = vadd.f32 %v1280_v47, %v2755_v15  ;;  %vm1343_vm2 = vcmp.gt.f32.partialorder %v1330_v7, 0.0 }
 0x46a   :  { %vm1344_vm3 = vcmp.gt.f32.partialorder %v1331_v51, 0.0  ;;  %v1357_v54 = vmul.f32 %v1331_v51, %v2920_v10  ;;  %v1369_v57 = vsel %vm1343_vm2, %v1330_v7, %v1356_v36 }
 0x46b   :  { %v1284_v4 = vpop.f32.mrb[60].mxu0 }
 0x46c   :  { %v1370_v42 = vsel %vm1344_vm3, %v1331_v51, %v1357_v54  ;;  %v1285_v59 = vadd.f32 %v3030_v58, %v1284_v4  ;;  %v2110_v62 = vpop.f32.mrb[61].mxu0 }
 0x46d   :  { %v1397_v63 = vpack.c.bf16 %v1370_v42, %v1369_v57  ;;  %v1287_v1 = vpop.f32.mrb[62].mxu0 }
 0x46e   :  { %v1332_v14 = vadd.f32 %v1285_v59, %v2768_v27  ;;  %v1288_v3 = vadd.f32 %v3030_v58, %v1287_v1  ;;  %v2111_v5 = vpop.f32.mrb[63].mxu0 }
 0x46f   :  { %2149 = vmatmul.mubr.msk.bf16.vlgmr.msra.gmra.mrb[84].mxu0 %vm354_vm5, %v1397_v63 }
 0x470   :  { %v1358_v15 = vmul.f32 %v1332_v14, %v2920_v10  ;;  %v1333_v37 = vadd.f32 %v1288_v3, %v2770_v49  ;;  %vm1345_vm4 = vcmp.gt.f32.partialorder %v1332_v14, 0.0 }
 0x472   :  { %vm1346_vm6 = vcmp.gt.f32.partialorder %v1333_v37, 0.0  ;;  %v1359_v8 = vmul.f32 %v1333_v37, %v2920_v10  ;;  %v1371_v12 = vsel %vm1345_vm4, %v1332_v14, %v1358_v15 }
 0x473   :  { %v1292_v11 = vpop.f32.mrb[64].mxu0 }
 0x474   :  { %v1372_v16 = vsel %vm1346_vm6, %v1333_v37, %v1359_v8  ;;  %v1293_v21 = vadd.f32 %v3030_v58, %v1292_v11  ;;  %v2114_v17 = vpop.f32.mrb[65].mxu0 }
 0x475   :  { %v1398_v27 = vpack.c.bf16 %v1372_v16, %v1371_v12  ;;  %v1295_v38 = vpop.f32.mrb[66].mxu0 }
 0x476   :  { %v1334_v56 = vadd.f32 %v1293_v21, %v2783_v43  ;;  %v1296_v18 = vadd.f32 %v3030_v58, %v1295_v38  ;;  %v2115_v19 = vpop.f32.mrb[67].mxu0 }
 0x477   :  { %2153 = vmatmul.mubr.msk.bf16.vlgmr.msra.gmra.mrb[56].mxu1 %vm354_vm5, %v1398_v27 }
 0x478   :  { %v1360_v49 = vmul.f32 %v1334_v56, %v2920_v10  ;;  %v1335_v39 = vadd.f32 %v1296_v18, %v2785_v60  ;;  %2156 = vmatprep.mubr.msk.bf16.mxu1 %vm2256_vm0, %v2255_v0  ;;  %vm1347_vm7 = vcmp.gt.f32.partialorder %v1334_v56, 0.0 }
 0x47a   :  { %vm1348_vm8 = vcmp.gt.f32.partialorder %v1335_v39, 0.0  ;;  %v1361_v22 = vmul.f32 %v1335_v39, %v2920_v10  ;;  %v1373_v25 = vsel %vm1347_vm7, %v1334_v56, %v1360_v49 }
 0x47b   :  { %v1300_v24 = vpop.f32.mrb[68].mxu0 }
 0x47c   :  { %v1374_v45 = vsel %vm1348_vm8, %v1335_v39, %v1361_v22  ;;  %v1301_v43 = vadd.f32 %v3030_v58, %v1300_v24  ;;  %v2118_v26 = vpop.f32.mrb[69].mxu0 }
 0x47d   :  { %v1303_v29 = vpop.f32.mrb[70].mxu0  ;;  %v1399_v34 = vpack.c.bf16 %v1374_v45, %v1373_v25 }
 0x47e   :  { %v1336_v31 = vadd.f32 %v1301_v43, %v2798_v52  ;;  %v1304_v40 = vadd.f32 %v3030_v58, %v1303_v29  ;;  %v2119_v60 = vpop.f32.mrb[71].mxu0 }
 0x47f   :  { %2157 = vmatmul.mubr.msk.bf16.gmra.mrb[60].mxu1 %vm354_vm5, %v1399_v34 }
 0x480   :  { %v1362_v28 = vmul.f32 %v1336_v31, %v2920_v10  ;;  %v1337_v32 = vadd.f32 %v1304_v40, %v2800_v9  ;;  %2160 = vmatprep.mubr.msk.bf16.mxu1 %vm2256_vm0, %v2255_v0  ;;  %vm1349_vm9 = vcmp.gt.f32.partialorder %v1336_v31, 0.0 }
 0x482   :  { %vm1350_vm10 = vcmp.gt.f32.partialorder %v1337_v32, 0.0  ;;  %v1363_v55 = vmul.f32 %v1337_v32, %v2920_v10  ;;  %v1375_v53 = vsel %vm1349_vm9, %v1336_v31, %v1362_v28 }
 0x483   :  { %v1308_v46 = vpop.f32.mrb[72].mxu0 }
 0x484   :  { %v1376_v44 = vsel %vm1350_vm10, %v1337_v32, %v1363_v55  ;;  %v1309_v52 = vadd.f32 %v3030_v58, %v1308_v46  ;;  %v2122_v13 = vpop.f32.mrb[73].mxu0 }
 0x485   :  { %v1311_v50 = vpop.f32.mrb[74].mxu0  ;;  %v1400_v30 = vpack.c.bf16 %v1376_v44, %v1375_v53 }
 0x486   :  { %v1338_v41 = vadd.f32 %v1309_v52, %v2813_v6  ;;  %v1312_v61 = vadd.f32 %v3030_v58, %v1311_v50  ;;  %v2123_v9 = vpop.f32.mrb[75].mxu0 }
 0x487   :  { %2161 = vmatmul.mubr.msk.bf16.gmra.mrb[64].mxu1 %vm354_vm5, %v1400_v30 }
 0x488   :  { %v1364_v2 = vmul.f32 %v1338_v41, %v2920_v10  ;;  %v1339_v7 = vadd.f32 %v1312_v61, %v2815_v20  ;;  %2164 = vmatprep.mubr.msk.bf16.mxu1 %vm2256_vm0, %v2255_v0  ;;  %vm1351_vm11 = vcmp.gt.f32.partialorder %v1338_v41, 0.0 }
 0x48a   :  { %vm1352_vm12 = vcmp.gt.f32.partialorder %v1339_v7, 0.0  ;;  %v1365_v47 = vmul.f32 %v1339_v7, %v2920_v10  ;;  %v1377_v36 = vsel %vm1351_vm11, %v1338_v41, %v1364_v2 }
 0x48b   :  { %v1316_v48 = vpop.f32.mrb[76].mxu0 }
 0x48c   :  { %v1378_v51 = vsel %vm1352_vm12, %v1339_v7, %v1365_v47  ;;  %v1317_v6 = vadd.f32 %v3030_v58, %v1316_v48  ;;  %v2126_v54 = vpop.f32.mrb[77].mxu0 }
 0x48d   :  { %v1319_v4 = vpop.f32.mrb[78].mxu0  ;;  %v1401_v57 = vpack.c.bf16 %v1378_v51, %v1377_v36 }
 0x48e   :  { %v1340_v42 = vadd.f32 %v1317_v6, %v2828_v23  ;;  %v1320_v59 = vadd.f32 %v3030_v58, %v1319_v4  ;;  %v2127_v20 = vpop.f32.mrb[79].mxu0 }
 0x48f   :  { %2165 = vmatmul.mubr.msk.bf16.gmra.mrb[68].mxu1 %vm354_vm5, %v1401_v57 }
 0x490   :  { %v1366_v62 = vmul.f32 %v1340_v42, %v2920_v10  ;;  %v1341_v63 = vadd.f32 %v1320_v59, %v2830_v33  ;;  %2168 = vmatprep.mubr.msk.bf16.mxu1 %vm2256_vm0, %v2255_v0  ;;  %vm1353_vm13 = vcmp.gt.f32.partialorder %v1340_v42, 0.0 }
 0x492   :  { %vm1354_vm14 = vcmp.gt.f32.partialorder %v1341_v63, 0.0  ;;  %v1367_v1 = vmul.f32 %v1341_v63, %v2920_v10  ;;  %v1379_v3 = vsel %vm1353_vm13, %v1340_v42, %v1366_v62 }
 0x493   :  { %v1324_v14 = vpop.f32.mrb[80].mxu0 }
 0x494   :  { %v1380_v5 = vsel %vm1354_vm14, %v1341_v63, %v1367_v1  ;;  %v1325_v23 = vadd.f32 %v3030_v58, %v1324_v14  ;;  %v2130_v15 = vpop.f32.mrb[81].mxu0  ;;  %v3091_v58 = vld [vmem:[%s3159_s16] ss:$0 sm:$0xff] }
 0x495   :  { %v1327_v37 = vpop.f32.mrb[82].mxu0  ;;  %v1402_v8 = vpack.c.bf16 %v1380_v5, %v1379_v3 }
 0x496   :  { %v1342_v11 = vadd.f32 %v1325_v23, %v2840_v35  ;;  %v2131_v12 = vpop.f32.mrb[83].mxu0  ;;  %v3093_v35 = vpop.permute.xlu0 %1582 }
 0x497   :  { %2169 = vmatmul.mubr.msk.bf16.gmra.mrb[72].mxu1 %vm354_vm5, %v1402_v8 }
 0x498   :  { %vm1355_vm15 = vcmp.gt.f32.partialorder %v1342_v11, 0.0  ;;  %v1368_v33 = vmul.f32 %v1342_v11, %v2920_v10  ;;  %2172 = vmatprep.mubr.msk.bf16.mxu1 %vm2256_vm0, %v2255_v0 }
 0x49a   :  { %v1381_v16 = vsel %vm1355_vm15, %v1342_v11, %v1368_v33 }
 0x49b   :  { %v1403_v21 = vpack.c.bf16 %v1381_v16, %v1381_v16 }
 0x49f   :  { %2173 = vmatmul.mubr.msk.bf16.gmra.mrb[76].mxu1 %vm354_vm5, %v1403_v21 }
 0x542   :  { %v1514_v17 = vpop.f32.mrb[84].mxu0 }
 0x543   :  { %v1515_v27 = vadd.f32 %v3091_v58, %v1514_v17  ;;  %v2150_v38 = vpop.f32.mrb[85].mxu0 }
 0x544   :  { %v1517_v56 = vpop.f32.mrb[86].mxu0 }
 0x545   :  { %v1518_v10 = vadd.f32 %v3091_v58, %v1517_v56  ;;  %v1585_v0 = vmul.f32 %v3093_v35, %v1515_v27  ;;  %v2151_v18 = vpop.f32.mrb[87].mxu0  ;;  %vm1568_vm0 = vcmp.gt.f32.partialorder %v1515_v27, 0.0 }
 0x547   :  { %vm1569_vm1 = vcmp.gt.f32.partialorder %v1518_v10, 0.0  ;;  %v1586_v19 = vmul.f32 %v3093_v35, %v1518_v10  ;;  %v1598_v49 = vsel %vm1568_vm0, %v1515_v27, %v1585_v0 }
 0x549   :  { %v1599_v39 = vsel %vm1569_vm1, %v1518_v10, %v1586_v19 }
 0x54a   :  { %v1811_v22 = vpack.c.bf16 %v1599_v39, %v1598_v49  ;;  %v1522_v24 = vpop.f32.mrb[56].mxu1 }
 0x54b   :  { %v1523_v25 = vadd.f32 %v3091_v58, %v1522_v24  ;;  %v2154_v45 = vpop.f32.mrb[57].mxu1 }
 0x54c   :  { %1812 = vst [vmem:[%s3160_s18] sm:$0xff] %v1811_v22   ;;  %v1525_v43 = vpop.f32.mrb[58].mxu1 }
 0x54d   :  { %v1587_v26 = vmul.f32 %v3093_v35, %v1523_v25  ;;  %v1526_v29 = vadd.f32 %v3091_v58, %v1525_v43  ;;  %v2155_v34 = vpop.f32.mrb[59].mxu1  ;;  %vm1570_vm5 = vcmp.gt.f32.partialorder %v1523_v25, 0.0 }
 0x54f   :  { %vm1571_vm2 = vcmp.gt.f32.partialorder %v1526_v29, 0.0  ;;  %v1588_v31 = vmul.f32 %v3093_v35, %v1526_v29  ;;  %v1600_v40 = vsel %vm1570_vm5, %v1523_v25, %v1587_v26 }
 0x551   :  { %v1601_v60 = vsel %vm1571_vm2, %v1526_v29, %v1588_v31 }
 0x552   :  { %v1816_v28 = vpack.c.bf16 %v1601_v60, %v1600_v40  ;;  %v1530_v32 = vpop.f32.mrb[60].mxu1 }
 0x553   :  { %v1531_v55 = vadd.f32 %v3091_v58, %v1530_v32  ;;  %v2158_v46 = vpop.f32.mrb[61].mxu1 }
 0x554   :  { %1838 = vst [vmem:[%s3160_s18 + $0x8] sm:$0xff] %v1816_v28   ;;  %v1533_v53 = vpop.f32.mrb[62].mxu1 }
 0x555   :  { %v1589_v44 = vmul.f32 %v3093_v35, %v1531_v55  ;;  %v1534_v52 = vadd.f32 %v3091_v58, %v1533_v53  ;;  %v2159_v13 = vpop.f32.mrb[63].mxu1  ;;  %vm1572_vm3 = vcmp.gt.f32.partialorder %v1531_v55, 0.0 }
 0x557   :  { %vm1573_vm4 = vcmp.gt.f32.partialorder %v1534_v52, 0.0  ;;  %v1590_v50 = vmul.f32 %v3093_v35, %v1534_v52  ;;  %v1602_v30 = vsel %vm1572_vm3, %v1531_v55, %v1589_v44 }
 0x559   :  { %v1603_v41 = vsel %vm1573_vm4, %v1534_v52, %v1590_v50 }
 0x55a   :  { %v1821_v61 = vpack.c.bf16 %v1603_v41, %v1602_v30  ;;  %v1538_v9 = vpop.f32.mrb[64].mxu1 }
 0x55b   :  { %v1539_v2 = vadd.f32 %v3091_v58, %v1538_v9  ;;  %v2162_v7 = vpop.f32.mrb[65].mxu1 }
 0x55c   :  { %1839 = vst [vmem:[%s3160_s18 + $0x10] sm:$0xff] %v1821_v61   ;;  %v1541_v47 = vpop.f32.mrb[66].mxu1 }
 0x55d   :  { %v1591_v48 = vmul.f32 %v3093_v35, %v1539_v2  ;;  %v1542_v36 = vadd.f32 %v3091_v58, %v1541_v47  ;;  %v2163_v51 = vpop.f32.mrb[67].mxu1  ;;  %vm1574_vm6 = vcmp.gt.f32.partialorder %v1539_v2, 0.0 }
 0x55f   :  { %vm1575_vm7 = vcmp.gt.f32.partialorder %v1542_v36, 0.0  ;;  %v1592_v6 = vmul.f32 %v3093_v35, %v1542_v36  ;;  %v1604_v54 = vsel %vm1574_vm6, %v1539_v2, %v1591_v48 }
 0x561   :  { %v1605_v4 = vsel %vm1575_vm7, %v1542_v36, %v1592_v6 }
 0x562   :  { %v1826_v57 = vpack.c.bf16 %v1605_v4, %v1604_v54  ;;  %v1546_v42 = vpop.f32.mrb[68].mxu1 }
 0x563   :  { %v1547_v59 = vadd.f32 %v3091_v58, %v1546_v42  ;;  %v2166_v20 = vpop.f32.mrb[69].mxu1 }
 0x564   :  { %1840 = vst [vmem:[%s3160_s18 + $0x18] sm:$0xff] %v1826_v57   ;;  %v1549_v62 = vpop.f32.mrb[70].mxu1 }
 0x565   :  { %v1593_v63 = vmul.f32 %v3093_v35, %v1547_v59  ;;  %v1550_v1 = vadd.f32 %v3091_v58, %v1549_v62  ;;  %v2167_v14 = vpop.f32.mrb[71].mxu1  ;;  %vm1576_vm8 = vcmp.gt.f32.partialorder %v1547_v59, 0.0 }
 0x567   :  { %vm1577_vm9 = vcmp.gt.f32.partialorder %v1550_v1, 0.0  ;;  %v1594_v3 = vmul.f32 %v3093_v35, %v1550_v1  ;;  %v1606_v5 = vsel %vm1576_vm8, %v1547_v59, %v1593_v63 }
 0x569   :  { %v1607_v23 = vsel %vm1577_vm9, %v1550_v1, %v1594_v3 }
 0x56a   :  { %v1831_v15 = vpack.c.bf16 %v1607_v23, %v1606_v5  ;;  %v1554_v37 = vpop.f32.mrb[72].mxu1 }
 0x56b   :  { %v1555_v8 = vadd.f32 %v3091_v58, %v1554_v37  ;;  %v2170_v11 = vpop.f32.mrb[73].mxu1 }
 0x56c   :  { %1841 = vst [vmem:[%s3160_s18 + $0x20] sm:$0xff] %v1831_v15   ;;  %v1557_v12 = vpop.f32.mrb[74].mxu1 }
 0x56d   :  { %v1595_v33 = vmul.f32 %v3093_v35, %v1555_v8  ;;  %v1558_v16 = vadd.f32 %v3091_v58, %v1557_v12  ;;  %v2171_v21 = vpop.f32.mrb[75].mxu1  ;;  %vm1578_vm10 = vcmp.gt.f32.partialorder %v1555_v8, 0.0 }
 0x56f   :  { %vm1579_vm11 = vcmp.gt.f32.partialorder %v1558_v16, 0.0  ;;  %v1596_v17 = vmul.f32 %v3093_v35, %v1558_v16  ;;  %v1608_v27 = vsel %vm1578_vm10, %v1555_v8, %v1595_v33 }
 0x571   :  { %v1609_v38 = vsel %vm1579_vm11, %v1558_v16, %v1596_v17 }
 0x572   :  { %v1836_v56 = vpack.c.bf16 %v1609_v38, %v1608_v27  ;;  %v1562_v10 = vpop.f32.mrb[76].mxu1 }
 0x573   :  { %v1563_v0 = vadd.f32 %v3091_v58, %v1562_v10  ;;  %v2174_v18 = vpop.f32.mrb[77].mxu1 }
 0x574   :  { %1842 = vst [vmem:[%s3160_s18 + $0x28] sm:$0xff] %v1836_v56   ;;  %v1565_v19 = vpop.f32.mrb[78].mxu1 }
 0x575   :  { %vm1580_vm12 = vcmp.gt.f32.partialorder %v1563_v0, 0.0  ;;  %v1597_v49 = vmul.f32 %v3093_v35, %v1563_v0  ;;  %v2175_v39 = vpop.f32.mrb[79].mxu1 }
 0x577   :  { %v1610_v22 = vsel %vm1580_vm12, %v1563_v0, %v1597_v49 }
 0x578   :  { %v1807_v24 = vpack.c.bf16 %v1610_v22, %v1610_v22 }
 0x57a   :  { %1676 = vst [vmem:[%s3160_s18 + $0x30] sm:$0xf] %v1807_v24 }

// kernel: rcn_forward.3
= control target key start
LH: loop header
LB: loop body
LE: loop exit
PB: predicated region body
PF: predicated region fallthrough
CT: control target
= control target key end

     0   :  { %s10428_s0 = inlined_call_operand.vmem [shape: bf16[2,25,1152], index: 0, kind: input, shape index: {}]   ;;  %s10429_s1 = inlined_call_operand.vmem [shape: f32[9,25,24], index: 1, kind: input, shape index: {}]   ;;  %s10430_s2 = inlined_call_operand.vmem [shape: bf16[1152,24], index: 2, kind: input, shape index: {}]   ;;  %s10431_s3 = inlined_call_operand.vmem [shape: f32[1,24], index: 3, kind: input, shape index: {}]   ;;  %s10432_s4 = inlined_call_operand.vmem [shape: f32[9,24,24], index: 4, kind: input, shape index: {}]   ;;  %s10433_s5 = inlined_call_operand.vmem [shape: f32[1,24], index: 5, kind: input, shape index: {}]   ;;  %s10434_s6 = inlined_call_operand.vmem [shape: f32[1,24], index: 6, kind: input, shape index: {}]   ;;  %s10435_s7 = inlined_call_operand.vmem [shape: f32[1,24], index: 7, kind: input, shape index: {}]   ;;  %s10436_s8 = inlined_call_operand.vmem [shape: f32[9,24,24], index: 8, kind: input, shape index: {}]   ;;  %s10437_s9 = inlined_call_operand.vmem [shape: f32[1,24], index: 9, kind: input, shape index: {}]   ;;  %s10438_s10 = inlined_call_operand.vmem [shape: f32[9,24,24], index: 10, kind: input, shape index: {}]   ;;  %s10439_s11 = inlined_call_operand.vmem [shape: f32[1,24], index: 11, kind: input, shape index: {}]   ;;  %s10440_s12 = inlined_call_operand.vmem [shape: f32[1,24], index: 12, kind: input, shape index: {}]   ;;  %s10441_s13 = inlined_call_operand.vmem [shape: f32[1,24], index: 13, kind: input, shape index: {}]   ;;  %s10442_s14 = inlined_call_operand.vmem [shape: f32[9,24,24], index: 14, kind: input, shape index: {}]   ;;  %s10443_s15 = inlined_call_operand.vmem [shape: f32[1,24], index: 15, kind: input, shape index: {}]   ;;  %s10444_s16 = inlined_call_operand.vmem [shape: f32[24,2], index: 16, kind: input, shape index: {}]   ;;  %s10445_s17 = inlined_call_operand.vmem [shape: f32[1,2], index: 17, kind: input, shape index: {}]   ;;  %s10446_s18 = inlined_call_operand.vmem [shape: f32[24,4], index: 18, kind: input, shape index: {}]   ;;  %s10447_s19 = inlined_call_operand.vmem [shape: f32[1,4], index: 19, kind: input, shape index: {}]   ;;  %s10448_s20 = inlined_call_operand.vmem [shape: f32[1,8], index: 20, kind: input, shape index: {}]   ;;  %s10449_s21 = inlined_call_operand.hbm [shape: f32[2,1,24], index: 21, kind: output, shape index: {0}]   ;;  %s10450_s22 = inlined_call_operand.hbm [shape: f32[2,1,2], index: 22, kind: output, shape index: {1}]   ;;  %s10451_s23 = inlined_call_operand.hbm [shape: f32[2,1,4], index: 23, kind: output, shape index: {2}]  }
   0x1   :  { %10490 = sst [smem:[#allocation26_spill]] %s10428_s0 }
   0x2   :  { %10491 = sst [smem:[#allocation27_spill]] %s10429_s1 }
   0x3   :  { %10492 = sst [smem:[#allocation28_spill]] %s10430_s2 }
   0x4   :  { %10493 = sst [smem:[#allocation29_spill]] %s10431_s3 }
   0x5   :  { %10494 = sst [smem:[#allocation30_spill]] %s10432_s4 }
   0x6   :  { %10495 = sst [smem:[#allocation31_spill]] %s10433_s5 }
   0x7   :  { %10496 = sst [smem:[#allocation32_spill]] %s10434_s6 }
   0x8   :  { %10497 = sst [smem:[#allocation33_spill]] %s10435_s7 }
   0x9   :  { %10498 = sst [smem:[#allocation34_spill]] %s10451_s23 }
   0xa   :  { %29 = vsyncpa [#allocation3], 0 }
   0xb   :  { %31 = vsyncpa [#allocation3 + $0x1], 0 }
   0xc   :  { %32 = vsyncpa [#allocation5], 0 }
   0xd   :  { %34 = vsyncpa [#allocation5 + $0x1], 0  ;;  %s8530_s4 = smov 0   ;;  %s8532_s30 = smov 0  }
   0xe   :  { %s8534_s24 = smov 0   ;;  %s8536_s25 = smov 0  }
   0xf LB: > { %10499 = sst [smem:[#allocation9_spill]] %s8388_s4  ;;  %s8551_s5 = sadd.s32 4294967295, %s8400_s25   ;;  %s8400_s25 = sphi %s8536_s25, %s10546_s25   ;;  %s8396_s24 = sphi %s8534_s24, %s10548_s24   ;;  %s8392_s30 = sphi %s8532_s30, %s10550_s30   ;;  %s8388_s4 = sphi %s8530_s4, %s10549_s4  }
  0x10   : > { %10500 = sst [smem:[#allocation10_spill]] %s8396_s24  ;;  %s10455_s1 = sadd.s32 4294967294, %s8400_s25  }
  0x11   : > { %10501 = sst [smem:[#allocation11_spill]] %s8400_s25  ;;  %s8555_s26 = sadd.s32 1, %s8400_s25  }
  0x12   : > { %10502 = sst [smem:[#allocation12_spill]] %s8555_s26  ;;  %s493_s2 = sadd.s32 1, %s8396_s24 }
  0x13   : > { %s490_s6 = ssub.s32 %s8400_s25, %s8555_s26  ;;  %p503_p0 = scmp.ne.s32.totalorder %s8396_s24, %s8392_s30 }
  0x14   : > { %p491_p1 = scmp.eq.s32.totalorder %s490_s6, 0  ;;  %p504_p2 = scmp.eq.s32.totalorder %s8551_s5, 1 }
  0x15   : > { %p509_p3 = scmp.ne.s32.totalorder %s8392_s30, %s8388_s4  ;;  %p510_p4 = scmp.eq.s32.totalorder %s10455_s1, 1 }
  0x16   : > { %s8568_s27 = scalar_select %p491_p1, %s8396_s24, %s493_s2  }
  0x17   : > { %p8570_p5 = por %p504_p2, %p503_p0  ;;  %p8574_p6 = por %p510_p4, %p509_p3 }
  0x18   : > { %10503 = sst [smem:[#allocation13_spill]] %s8568_s27  ;;  %p6579_p7 = scmp.ge.s32.totalorder %s8400_s25, 1 }
  0x19   : > { %s10505_s28 = scalar_select %p8574_p6, 1, 0 }
  0x1a   : > { %p648_p8 = scmp.lt.s32.totalorder %s8400_s25, 3 }
  0x1b   : > { %10506 = sst [smem:[#allocation14_spill]] %s10505_s28 }
  0x1c   : > { %p649_p9 = pnand %p6579_p7, %p648_p8 }
  0x1e   : > { %652 = sbr.rel (%p649_p9) target bundleno = 1828 (0x724), region = 104 }
  0x25   : > { %s10507_s0 = sld [smem:[#allocation28_spill]]  ;;  %v8402_v3 = vmov 0   ;;  %p719_p10 = scmp.lt.s32.totalorder %s8551_s5, 1  ;;  %vm1726_vm3 = vcmask 1040384   ;;  %vm1691_vm4 = vcmask 1045504   ;;  %vm1704_vm6 = vcmask 1046528  }
  0x26   : > { %8169 = vset.pattern.permute.xlu0 %v8402_v3  ;;  %s10508_s23 = sld [smem:[#allocation26_spill]]  ;;  %s10509_s2 = sld [smem:[#allocation30_spill]]  ;;  %vm1757_vm7 = vcmask 195584   ;;  %vm1957_vm8 = vcmask 1041408   ;;  %vm2094_vm9 = vcmask 1044480   ;;  %vm2118_vm10 = vcmask 1042432  }
  0x27   : > { %s720_s27 = scalar_select %p719_p10, %s8551_s5, 1  ;;  %vm2776_vm11 = vcmask 1043456  }
  0x28   : > { %s10510_s6 = sld [smem:[#allocation29_spill]]  ;;  %s10521_s4 = sld [smem:[#allocation31_spill]] }
  0x29   : > { %s8114_s3 = smul.u32 144, %s720_s27  ;;  %s10523_s28 = sld [smem:[#allocation33_spill]] }
  0x2b   : > { %v8175_v0 = vld [vmem:[%s10507_s0 + $0x40] sm:$0xff]   ;;  %v8179_v5 = vld [vmem:[%s10507_s0 + $0x48] sm:$0xff]   ;;  %v8183_v9 = vld [vmem:[%s10507_s0 + $0x50] sm:$0xff]  }
  0x2c   : > { %v8176_v1 = vld [vmem:[%s10507_s0] sm:$0xff]   ;;  %6966 = vmatprep.subr.bf16.mxu0 %v8175_v0  ;;  %v8180_v6 = vld [vmem:[%s10507_s0 + $0x8] sm:$0xff]   ;;  %v8184_v10 = vld [vmem:[%s10507_s0 + $0x10] sm:$0xff]   ;;  %s8672_s25 = scalar_lea.vmem %s10508_s23, %s8114_s3  ;;  %s10511_s3 = sld [smem:[#allocation27_spill]] }
  0x2d   : > { %v8177_v2 = vld [vmem:[%s10507_s0 + $0xc0] sm:$0xff]   ;;  %6967 = vmatpush3.bf16.msra.mxu0 %v8176_v1  ;;  %v8181_v7 = vld [vmem:[%s10507_s0 + $0xc8] sm:$0xff]   ;;  %v8185_v11 = vld [vmem:[%s10507_s0 + $0xd0] sm:$0xff]   ;;  %s10522_s23 = sld [smem:[#allocation32_spill]] }
  0x2e   : > { %v8178_v4 = vld [vmem:[%s10507_s0 + $0x80] sm:$0xff]   ;;  %6994 = vmatprep.subr.bf16.mxu1 %v8177_v2  ;;  %6968 = vmatprep.subr.bf16.mxu0 %v8179_v5  ;;  %v8182_v8 = vld [vmem:[%s10507_s0 + $0x88] sm:$0xff]   ;;  %v8186_v12 = vld [vmem:[%s10507_s0 + $0x90] sm:$0xff]  }
  0x2f   : > { %6995 = vmatpush3.bf16.msra.mxu1 %v8178_v4  ;;  %v8187_v13 = vld [vmem:[%s10507_s0 + $0x58] sm:$0xff]   ;;  %v8191_v17 = vld [vmem:[%s10507_s0 + $0x60] sm:$0xff]   ;;  %v8195_v21 = vld [vmem:[%s10507_s0 + $0x68] sm:$0xff]  }
  0x30   : > { %6996 = vmatprep.subr.bf16.mxu1 %v8181_v7  ;;  %v8188_v14 = vld [vmem:[%s10507_s0 + $0x18] sm:$0xff]   ;;  %v8192_v18 = vld [vmem:[%s10507_s0 + $0x20] sm:$0xff]   ;;  %v8196_v22 = vld [vmem:[%s10507_s0 + $0x28] sm:$0xff]  }
  0x31   : > { %6969 = vmatpush3.bf16.msra.mxu0 %v8180_v6  ;;  %v8189_v15 = vld [vmem:[%s10507_s0 + $0xd8] sm:$0xff]   ;;  %v8193_v19 = vld [vmem:[%s10507_s0 + $0xe0] sm:$0xff]   ;;  %v8197_v23 = vld [vmem:[%s10507_s0 + $0xe8] sm:$0xff]  }
  0x32   : > { %6970 = vmatprep.subr.bf16.mxu0 %v8183_v9  ;;  %v8190_v16 = vld [vmem:[%s10507_s0 + $0x98] sm:$0xff]   ;;  %v8194_v20 = vld [vmem:[%s10507_s0 + $0xa0] sm:$0xff]   ;;  %v8198_v24 = vld [vmem:[%s10507_s0 + $0xa8] sm:$0xff]  }
  0x33   : > { %6997 = vmatpush3.bf16.msra.mxu1 %v8182_v8  ;;  %v8199_v25 = vld [vmem:[%s10507_s0 + $0x70] sm:$0xff]   ;;  %v8203_v29 = vld [vmem:[%s10507_s0 + $0x78] sm:$0xff]   ;;  %v8206_v32 = vld [vmem:[%s8672_s25] ss:$36 sps:$4 sm:$0xff]  }
  0x34   : > { %6998 = vmatprep.subr.bf16.mxu1 %v8185_v11  ;;  %v8200_v26 = vld [vmem:[%s10507_s0 + $0x30] sm:$0xff]   ;;  %v8204_v30 = vld [vmem:[%s10507_s0 + $0x38] sm:$0xff]   ;;  %v8208_v33 = vld [vmem:[%s8672_s25 + $0x4] ss:$36 sps:$4 sm:$0xff]  }
  0x35   : > { %6971 = vmatpush3.bf16.msra.mxu0 %v8184_v10  ;;  %v8201_v27 = vld [vmem:[%s10507_s0 + $0xf0] sm:$0xff]   ;;  %v8205_v31 = vld [vmem:[%s10507_s0 + $0xf8] sm:$0xff]   ;;  %1453 = vmatprep.mubr.bf16.mxu0 %v8208_v33  ;;  %v8210_v35 = vld [vmem:[%s10507_s0 + $0x140] sm:$0xff]  }
  0x36   : > { %6972 = vmatprep.subr.bf16.mxu0 %v8187_v13  ;;  %v8202_v28 = vld [vmem:[%s10507_s0 + $0xb0] sm:$0xff]   ;;  %v8209_v34 = vld [vmem:[%s10507_s0 + $0xb8] sm:$0xff]   ;;  %v8211_v36 = vld [vmem:[%s8672_s25 + $0x8] ss:$36 sps:$4 sm:$0xff]  }
  0x37   : > { %6999 = vmatpush3.bf16.msra.mxu1 %v8186_v12  ;;  %v8213_v37 = vld [vmem:[%s8672_s25 + $0xc] ss:$36 sps:$4 sm:$0xff]   ;;  %v8214_v38 = vld [vmem:[%s10507_s0 + $0x100] sm:$0xff]   ;;  %v8225_v49 = vld [vmem:[%s10507_s0 + $0x158] sm:$0xff]  }
  0x38   : > { %7000 = vmatprep.subr.bf16.mxu1 %v8189_v15  ;;  %1502 = vmatprep.mubr.bf16.mxu1 %v8213_v37  ;;  %v8215_v39 = vld [vmem:[%s10507_s0 + $0x1c0] sm:$0xff]   ;;  %v8217_v41 = vld [vmem:[%s10507_s0 + $0x148] sm:$0xff]   ;;  %v8221_v45 = vld [vmem:[%s10507_s0 + $0x150] sm:$0xff]  }
  0x39   : > { %6973 = vmatpush3.bf16.msra.mxu0 %v8188_v14  ;;  %v8216_v40 = vld [vmem:[%s10507_s0 + $0x180] sm:$0xff]   ;;  %v8218_v42 = vld [vmem:[%s10507_s0 + $0x108] sm:$0xff]   ;;  %v8222_v46 = vld [vmem:[%s10507_s0 + $0x110] sm:$0xff]  }
  0x3a   : > { %6974 = vmatprep.subr.bf16.mxu0 %v8191_v17  ;;  %v8219_v43 = vld [vmem:[%s10507_s0 + $0x1c8] sm:$0xff]   ;;  %v8223_v47 = vld [vmem:[%s10507_s0 + $0x1d0] sm:$0xff]   ;;  %v8226_v50 = vld [vmem:[%s10507_s0 + $0x118] sm:$0xff]  }
  0x3b   : > { %7001 = vmatpush3.bf16.msra.mxu1 %v8190_v16  ;;  %v8220_v44 = vld [vmem:[%s10507_s0 + $0x188] sm:$0xff]   ;;  %v8224_v48 = vld [vmem:[%s10507_s0 + $0x190] sm:$0xff]   ;;  %v8227_v51 = vld [vmem:[%s10507_s0 + $0x1d8] sm:$0xff]  }
  0x3c   : > { %7002 = vmatprep.subr.bf16.mxu1 %v8193_v19  ;;  %v8228_v52 = vld [vmem:[%s10507_s0 + $0x198] sm:$0xff]   ;;  %v8229_v53 = vld [vmem:[%s10507_s0 + $0x160] sm:$0xff]   ;;  %v8233_v57 = vld [vmem:[%s10507_s0 + $0x168] sm:$0xff]  }
  0x3d   : > { %6975 = vmatpush3.bf16.msra.mxu0 %v8192_v18  ;;  %v8230_v54 = vld [vmem:[%s10507_s0 + $0x120] sm:$0xff]   ;;  %v8234_v58 = vld [vmem:[%s8672_s25 + $0x4c] ss:$36 sps:$4 sm:$0x1f]   ;;  %v8247_v5 = vld [vmem:[%s10507_s0 + $0x178] sm:$0xff]  }
  0x3e   : > { %6976 = vmatprep.subr.bf16.mxu0 %v8195_v21  ;;  %v8231_v55 = vld [vmem:[%s10507_s0 + $0x1e0] sm:$0xff]   ;;  %v8236_v59 = vld [vmem:[%s10507_s0 + $0x128] sm:$0xff]   ;;  %v8239_v62 = vld [vmem:[%s8672_s25 + $0x54] ss:$36 sps:$4 sm:$0x1f]  }
  0x3f   : > { %7003 = vmatpush3.bf16.msra.mxu1 %v8194_v20  ;;  %v8232_v56 = vld [vmem:[%s10507_s0 + $0x1a0] sm:$0xff]   ;;  %v8237_v60 = vld [vmem:[%s8672_s25 + $0x48] ss:$36 sps:$4 sm:$0x1f]   ;;  %v8243_v1 = vld [vmem:[%s10507_s0 + $0x170] sm:$0xff]  }
  0x40   : > { %7004 = vmatprep.subr.bf16.mxu1 %v8197_v23  ;;  %v8238_v61 = vld [vmem:[%s10507_s0 + $0x1e8] sm:$0xff]   ;;  %v8242_v0 = vld [vmem:[%s8672_s25 + $0x50] ss:$36 sps:$4 sm:$0x1f]   ;;  %v8248_v6 = vld [vmem:[%s10507_s0 + $0x138] sm:$0xff]  }
  0x41   : > { %6977 = vmatpush3.bf16.msra.mxu0 %v8196_v22  ;;  %v8241_v63 = vld [vmem:[%s10507_s0 + $0x1a8] sm:$0xff]   ;;  %v8244_v2 = vld [vmem:[%s10507_s0 + $0x130] sm:$0xff]   ;;  %v8249_v7 = vld [vmem:[%s10507_s0 + $0x1f8] sm:$0xff]  }
  0x42   : > { %6978 = vmatprep.subr.bf16.mxu0 %v8199_v25  ;;  %v8245_v3 = vld [vmem:[%s10507_s0 + $0x1f0] sm:$0xff]   ;;  %v8253_v10 = vld [vmem:[%s10507_s0 + $0x1b8] sm:$0xff]   ;;  %v8254_v11 = vld [vmem:[%s10507_s0 + $0x200] sm:$0xff]  }
  0x43   : > { %7005 = vmatpush3.bf16.msra.mxu1 %v8198_v24  ;;  %v8246_v4 = vld [vmem:[%s10507_s0 + $0x1b0] sm:$0xff]   ;;  %v8255_v12 = vld [vmem:[%s8672_s25 + $0x18] ss:$36 sps:$4 sm:$0xff]   ;;  %v8258_v14 = vld [vmem:[%s10507_s0 + $0x208] sm:$0xff]  }
  0x44   : > { %7006 = vmatprep.subr.bf16.mxu1 %v8201_v27  ;;  %v8250_v8 = vld [vmem:[%s8672_s25 + $0x10] ss:$36 sps:$4 sm:$0xff]   ;;  %v8257_v13 = vld [vmem:[%s8672_s25 + $0x1c] ss:$36 sps:$4 sm:$0xff]   ;;  %v8268_v24 = vld [vmem:[%s10507_s0 + $0x228] sm:$0xff]  }
  0x45   : > { %6979 = vmatpush3.bf16.msra.mxu0 %v8200_v26  ;;  %v8252_v9 = vld [vmem:[%s8672_s25 + $0x14] ss:$36 sps:$4 sm:$0xff]   ;;  %v8259_v15 = vld [vmem:[%s8672_s25 + $0x5c] ss:$36 sps:$4 sm:$0x1f]   ;;  %v1715_v33 = vld [vmem:[%s10509_s2 + $0x8] sm:$0xff] }
  0x46   : > { %6980 = vmatprep.subr.bf16.mxu0 %v8203_v29  ;;  %v8261_v16 = vld [vmem:[%s8672_s25 + $0x58] ss:$36 sps:$4 sm:$0x1f]   ;;  %v8262_v17 = vld [vmem:[%s10507_s0 + $0x210] sm:$0xff]   ;;  %v8267_v21 = vld [vmem:[%s10507_s0 + $0x220] sm:$0xff]  }
  0x47   : > { %7007 = vmatpush3.bf16.msra.mxu1 %v8202_v28  ;;  %v8263_v18 = vld [vmem:[%s8672_s25 + $0x64] ss:$36 sps:$4 sm:$0x1f]   ;;  %v8266_v20 = vld [vmem:[%s10507_s0 + $0x218] sm:$0xff]   ;;  %v6672_v23 = vld [vmem:[%s10448_s20] ss:$0 sm:$0xff] }
  0x48   : > { %7008 = vmatprep.subr.bf16.mxu1 %v8205_v31  ;;  %v8265_v19 = vld [vmem:[%s8672_s25 + $0x60] ss:$36 sps:$4 sm:$0x1f]   ;;  %1676 = vperm.xlu0 %8169, %v6672_v23   ;;  %v8269_v25 = vld [vmem:[%s10507_s0 + $0x230] sm:$0xff]   ;;  %v8270_v26 = vld [vmem:[%s10507_s0 + $0x238] sm:$0xff]  }
  0x49   : > { %6981 = vmatpush3.bf16.msra.mxu0 %v8204_v30  ;;  %v8271_v22 = vld [vmem:[%s8672_s25 + $0x20] ss:$36 sps:$4 sm:$0xff]   ;;  %v8272_v27 = vld [vmem:[%s8672_s25 + $0x68] ss:$36 sps:$4 sm:$0x1f]   ;;  %v6677_v28 = vld [vmem:[%s10509_s2 + $0x18] sm:$0xff] }
  0x4a   : > { %7022 = vmatprep.subr.bf16.mxu0 %v8210_v35  ;;  %v6678_v29 = vld [vmem:[%s10509_s2 + $0x20] sm:$0xff]  ;;  %v6679_v31 = vld [vmem:[%s10509_s2 + $0x28] sm:$0xff] }
  0x4b   : > { %7009 = vmatpush3.bf16.msra.mxu1 %v8209_v34  ;;  %v7830_v30 = vpack.c.bf16 %v6678_v29, %v6677_v28 }
  0x4c   : > { %1454 = vmatmul.mubr.bf16.vlgmr.msra.gmra.mrb[0].mxu0 %v8206_v32  ;;  %7050 = vmatprep.subr.bf16.mxu1 %v8215_v39  ;;  %v1714_v32 = vld [vmem:[%s10509_s2] sm:$0xff] }
  0x4d   : > { %7023 = vmatpush3.bf16.msra.mxu0 %v8214_v38  ;;  %1461 = vmatprep.mubr.bf16.mxu0 %v8234_v58  ;;  %v8839_v34 = vpack.c.bf16 %v1715_v33, %v1714_v32 }
  0x4e   : > { %1503 = vmatmul.mubr.bf16.vlgmr.msra.gmra.mrb[0].mxu1 %v8211_v36  ;;  %7024 = vmatprep.subr.bf16.mxu0 %v8217_v41  ;;  %v6581_v36 = vld [vmem:[%s10510_s6] ss:$0 sm:$0xff]  ;;  %s10309_s6 = sand.u32 1, %s8392_s30  }
  0x4f   : > { %7051 = vmatpush3.bf16.msra.mxu1 %v8216_v40  ;;  %1510 = vmatprep.mubr.bf16.mxu1 %v8239_v62  ;;  %v8404_v62 = vmov 2   ;;  %s706_s24 = scalar_lea.vmem [#allocation2], %s10309_s6  ;;  %s6422_s27 = scalar_lea.sflag [#allocation3], %s10309_s6 }
  0x50   : > { %7052 = vmatprep.subr.bf16.mxu1 %v8219_v43  ;;  %8171 = vset.pattern.permute.xlu1 %v8404_v62  ;;  %s6442_s29 = sshll.u32 %s706_s24, 4  ;;  %s6443_s29 = int_to_ptr.vmem [resolvable:$true] %s6442_s29 }
  0x51   : > { %7025 = vmatpush3.bf16.msra.mxu0 %v8218_v42  ;;  %2958 = vperm.xlu1 %8171, %v6672_v23   ;;  %s8278_s1 = scalar_lea.vmem %s6443_s29, 16 }
  0x52   : > { %7026 = vmatprep.subr.bf16.mxu0 %v8221_v45  ;;  %p8279_p11 = scmp.ne.s32.totalorder %s6443_s29, %s8278_s1 }
  0x53   : > { %7053 = vmatpush3.bf16.msra.mxu1 %v8220_v44 }
  0x54   : > { %7054 = vmatprep.subr.bf16.mxu1 %v8223_v47  ;;  %1462 = vmatmul.mubr.bf16.gmra.mrb[4].mxu0 %v8237_v60  ;;  %p8280_p12 = pnand %p8279_p11, %p8570_p5 }
  0x55   : > { %7027 = vmatpush3.bf16.msra.mxu0 %v8222_v46  ;;  %1551 = vmatprep.mubr.bf16.mxu0 %v8252_v9 }
  0x56   : > { %7028 = vmatprep.subr.bf16.mxu0 %v8225_v49  ;;  %1511 = vmatmul.mubr.bf16.gmra.mrb[4].mxu1 %v8242_v0  ;;  %p8281_p13 = pneg %p8280_p12 }
  0x57   : > { %7055 = vmatpush3.bf16.msra.mxu1 %v8224_v48  ;;  %1600 = vmatprep.mubr.bf16.mxu1 %v8257_v13 }
  0x58   : > { %7056 = vmatprep.subr.bf16.mxu1 %v8227_v51 }
  0x59   : > { %7029 = vmatpush3.bf16.msra.mxu0 %v8226_v50 }
  0x5a   : > { %7030 = vmatprep.subr.bf16.mxu0 %v8229_v53 }
  0x5b   : > { %7057 = vmatpush3.bf16.msra.mxu1 %v8228_v52 }
  0x5c   : > { %7058 = vmatprep.subr.bf16.mxu1 %v8231_v55 }
  0x5d   : > { %7031 = vmatpush3.bf16.msra.mxu0 %v8230_v54 }
  0x5e   : > { %7032 = vmatprep.subr.bf16.mxu0 %v8233_v57 }
  0x5f   : > { %7059 = vmatpush3.bf16.msra.mxu1 %v8232_v56 }
  0x60   : > { %7060 = vmatprep.subr.bf16.mxu1 %v8238_v61  ;;  %v8403_v61 = vmov 1  }
  0x61   : > { %7033 = vmatpush3.bf16.msra.mxu0 %v8236_v59  ;;  %8170 = vset.pattern.permute.xlu0 %v8403_v61 }
  0x62   : > { %7034 = vmatprep.subr.bf16.mxu0 %v8243_v1  ;;  %2920 = vperm.xlu0 %8170, %v6672_v23  }
  0x63   : > { %7061 = vmatpush3.bf16.msra.mxu1 %v8241_v63 }
  0x64   : > { %7062 = vmatprep.subr.bf16.mxu1 %v8245_v3 }
  0x65   : > { %7035 = vmatpush3.bf16.msra.mxu0 %v8244_v2 }
  0x66   : > { %7036 = vmatprep.subr.bf16.mxu0 %v8247_v5 }
  0x67   : > { %7063 = vmatpush3.bf16.msra.mxu1 %v8246_v4 }
  0x68   : > { %7064 = vmatprep.subr.bf16.mxu1 %v8249_v7 }
  0x69   : > { %7037 = vmatpush3.bf16.msra.mxu0 %v8248_v6 }
  0x6a   : > { %7354 = vmatprep.subr.bf16.mxu0 %v8254_v11 }
  0x6b   : > { %7065 = vmatpush3.bf16.msra.mxu1 %v8253_v10 }
  0x6c   : > { %1552 = vmatmul.mubr.bf16.vlgmr.msra.gmra.mrb[8].mxu0 %v8250_v8  ;;  %7831 = vmatprep.subr.bf16.mxu1 %v7830_v30 }
  0x6d   : > { %7355 = vmatpush3.bf16.msra.mxu0 %v8254_v11  ;;  %1559 = vmatprep.mubr.bf16.mxu0 %v8259_v15 }
  0x6e   : > { %1601 = vmatmul.mubr.bf16.vlgmr.msra.gmra.mrb[8].mxu1 %v8255_v12  ;;  %7356 = vmatprep.subr.bf16.mxu0 %v8258_v14 }
  0x6f   : > { %1608 = vmatprep.mubr.bf16.mxu1 %v8263_v18  ;;  %7833 = vmatpush3.bf16.msra.mxu1 %v7830_v30 }
  0x70   : > { %7378 = vmatprep.subr.mxu1 %v6679_v31 }
  0x71   : > { %7357 = vmatpush3.bf16.msra.mxu0 %v8258_v14 }
  0x72   : > { %7358 = vmatprep.subr.bf16.mxu0 %v8262_v17 }
  0x73   : > { %7379 = vmatpush3.msra.mxu1 %v6679_v31 }
  0x74   : > { %1560 = vmatmul.mubr.bf16.gmra.mrb[12].mxu0 %v8261_v16  ;;  %7835 = vmatprep.subr.bf16.mxu1 %v8839_v34 }
  0x75   : > { %7359 = vmatpush3.bf16.msra.mxu0 %v8262_v17  ;;  %7370 = vmatprep.mubr.bf16.mxu0 %v8271_v22 }
  0x76   : > { %1609 = vmatmul.mubr.bf16.gmra.mrb[12].mxu1 %v8265_v19  ;;  %7360 = vmatprep.subr.bf16.mxu0 %v8266_v20 }
  0x79   : > { %7361 = vmatpush3.bf16.msra.mxu0 %v8266_v20 }
  0x7a   : > { %7362 = vmatprep.subr.bf16.mxu0 %v8267_v21 }
  0x7d   : > { %7363 = vmatpush3.bf16.msra.mxu0 %v8267_v21 }
  0x7e   : > { %7364 = vmatprep.subr.bf16.mxu0 %v8268_v24 }
  0x81   : > { %7365 = vmatpush3.bf16.msra.mxu0 %v8268_v24 }
  0x82   : > { %7366 = vmatprep.subr.bf16.mxu0 %v8269_v25 }
  0x85   : > { %7367 = vmatpush3.bf16.msra.mxu0 %v8269_v25 }
  0x86   : > { %7368 = vmatprep.subr.bf16.mxu0 %v8270_v26 }
  0x89   : > { %7369 = vmatpush3.bf16.msra.mxu0 %v8270_v26 }
  0x8c   : > { %7371 = vmatmul.mubr.bf16.vlgmr.msra.gmra.mrb[16].mxu0 %v8272_v27 }
 0x11f   : > { %v6982_v35 = vpop.f32.mrb[0].mxu0 }
 0x120   : > { %v6983_v37 = vpop.f32.mrb[1].mxu0 }
 0x121   : > { %v6984_v38 = vadd.f32 %v6983_v37, %v6982_v35  ;;  %v6985_v39 = vpop.f32.mrb[2].mxu0  ;;  %v7010_v40 = vpop.f32.mrb[0].mxu1 }
 0x122   : > { %v6986_v41 = vpop.f32.mrb[3].mxu0  ;;  %v7011_v44 = vpop.f32.mrb[1].mxu1 }
 0x123   : > { %v1456_v42 = vadd.f32 %v6984_v38, %v6581_v36  ;;  %v6987_v43 = vadd.f32 %v6986_v41, %v6985_v39  ;;  %v7012_v45 = vadd.f32 %v7011_v44, %v7010_v40  ;;  %v7013_v46 = vpop.f32.mrb[2].mxu1  ;;  %v6673_v39 = vld [vmem:[%s10511_s3 + $0x20] sm:$0xff]  ;;  %v6674_v40 = vld [vmem:[%s10511_s3 + $0x28] sm:$0xff] }
 0x124   : > { %v7014_v48 = vpop.f32.mrb[3].mxu1 }
 0x125   : > { %v1459_v47 = vadd.f32 %v6987_v43, %v6581_v36  ;;  %v1505_v49 = vadd.f32 %v7012_v45, %v1456_v42  ;;  %v7015_v50 = vadd.f32 %v7014_v48, %v7013_v46  ;;  %v1677_v42 = vpop.permute.xlu0 %1676  ;;  %v6675_v43 = vld [vmem:[%s10511_s3 + $0x30] sm:$0xff]  ;;  %v6676_v46 = vld [vmem:[%s10511_s3 + $0x38] sm:$0x1] }
 0x127   : > { %v1508_v51 = vadd.f32 %v7015_v50, %v1459_v47  ;;  %v6988_v52 = vpop.f32.mrb[4].mxu0  ;;  %v1728_v50 = vrot.slane %v6674_v40, 7  ;;  %v8952_v40 = vld [vmem:[%s10511_s3 + $0x8] sm:$0xff] }
 0x128   : > { %v6989_v53 = vpop.f32.mrb[5].mxu0 }
 0x129   : > { %v6990_v54 = vadd.f32 %v6989_v53, %v6988_v52  ;;  %v6991_v55 = vpop.f32.mrb[6].mxu0  ;;  %v7016_v56 = vpop.f32.mrb[4].mxu1 }
 0x12a   : > { %v6992_v57 = vpop.f32.mrb[7].mxu0  ;;  %v7017_v60 = vpop.f32.mrb[5].mxu1 }
 0x12b   : > { %v1464_v58 = vadd.f32 %v6990_v54, %v6581_v36  ;;  %v6993_v59 = vadd.f32 %v6992_v57, %v6991_v55  ;;  %v7018_v63 = vadd.f32 %v7017_v60, %v7016_v56  ;;  %v7019_v0 = vpop.f32.mrb[6].mxu1  ;;  %v1730_v54 = vrot.slane %v6675_v43, 7 }
 0x12c   : > { %v7020_v2 = vpop.f32.mrb[7].mxu1  ;;  %v1732_v57 = vrot.slane %v6676_v46, 7 }
 0x12d   : > { %v1467_v1 = vadd.f32 %v6993_v59, %v6581_v36  ;;  %v1513_v3 = vadd.f32 %v7018_v63, %v1464_v58  ;;  %v7021_v4 = vadd.f32 %v7020_v2, %v7019_v0 }
 0x12f   : > { %v1516_v5 = vadd.f32 %v7021_v4, %v1467_v1 }
 0x13f   : > { %v7038_v6 = vpop.f32.mrb[8].mxu0 }
 0x140   : > { %v7039_v7 = vpop.f32.mrb[9].mxu0 }
 0x141   : > { %v7040_v8 = vadd.f32 %v7039_v7, %v7038_v6  ;;  %v7041_v9 = vpop.f32.mrb[10].mxu0  ;;  %v7066_v10 = vpop.f32.mrb[8].mxu1  ;;  %v8879_v6 = vsel %vm1726_vm3, %v1728_v50, %v1730_v54  ;;  %v8882_v7 = vsel %vm1726_vm3, %v1730_v54, %v1732_v57  ;;  %v6694_v54 = vld [vmem:[%s10509_s2 + $0x40] sm:$0xff] }
 0x142   : > { %v7042_v11 = vpop.f32.mrb[11].mxu0  ;;  %v7067_v14 = vpop.f32.mrb[9].mxu1 }
 0x143   : > { %v1554_v12 = vadd.f32 %v7040_v8, %v1505_v49  ;;  %v7043_v13 = vadd.f32 %v7042_v11, %v7041_v9  ;;  %v7068_v15 = vadd.f32 %v7067_v14, %v7066_v10  ;;  %v7069_v16 = vpop.f32.mrb[10].mxu1  ;;  %v8857_v49 = vrot.slane %v6673_v39, 7  ;;  %v6700_v39 = vld [vmem:[%s10511_s3 + $0x68] sm:$0xff] }
 0x144   : > { %v7070_v18 = vpop.f32.mrb[11].mxu1  ;;  %v2096_v46 = vrot.slane %v6700_v39, 3 }
 0x145   : > { %v1557_v17 = vadd.f32 %v7043_v13, %v1508_v51  ;;  %v7071_v19 = vadd.f32 %v7070_v18, %v7069_v16  ;;  %v1603_v20 = vadd.f32 %v7068_v15, %v1554_v12  ;;  %v6688_v16 = vld [vmem:[%s10511_s3 + $0x40] sm:$0xff] }
 0x147   : > { %v7044_v21 = vpop.f32.mrb[12].mxu0  ;;  %v1606_v23 = vadd.f32 %v7071_v19, %v1557_v17  ;;  %v6689_v17 = vld [vmem:[%s10511_s3 + $0x48] sm:$0xff] }
 0x148   : > { %v7045_v22 = vpop.f32.mrb[13].mxu0 }
 0x149   : > { %v7046_v24 = vadd.f32 %v7045_v22, %v7044_v21  ;;  %v7047_v25 = vpop.f32.mrb[14].mxu0  ;;  %v7072_v26 = vpop.f32.mrb[12].mxu1  ;;  %v8908_v22 = vrot.slane %v6688_v16, 6 }
 0x14a   : > { %v7048_v27 = vpop.f32.mrb[15].mxu0  ;;  %v7073_v30 = vpop.f32.mrb[13].mxu1 }
 0x14b   : > { %v1562_v28 = vadd.f32 %v7046_v24, %v1513_v3  ;;  %v7049_v29 = vadd.f32 %v7048_v27, %v7047_v25  ;;  %v7074_v31 = vadd.f32 %v7073_v30, %v7072_v26  ;;  %v7075_v32 = vpop.f32.mrb[14].mxu1  ;;  %v8872_v3 = vsel %vm1726_vm3, %v8857_v49, %v1728_v50  ;;  %v6690_v24 = vld [vmem:[%s10511_s3 + $0x50] sm:$0xff]  ;;  %v6691_v27 = vld [vmem:[%s10511_s3 + $0x58] sm:$0x1] }
 0x14c   : > { %v7076_v35 = vpop.f32.mrb[15].mxu1  ;;  %v6693_v30 = vld [vmem:[%s10509_s2 + $0x38] sm:$0xff] }
 0x14d   : > { %v1565_v33 = vadd.f32 %v7049_v29, %v1516_v5  ;;  %v7077_v36 = vadd.f32 %v7076_v35, %v7075_v32  ;;  %v1611_v37 = vadd.f32 %v7074_v31, %v1562_v28  ;;  %v1716_v28 = vld [vmem:[%s10509_s2 + $0x10] sm:$0xff]  ;;  %v8933_v32 = vld [vmem:[%s10511_s3] sm:$0xff]  ;;  %v8979_v50 = vld [vmem:[%s10511_s3 + $0x18] sm:$0x1] }
 0x14e   : > { %v6692_v29 = vld [vmem:[%s10509_s2 + $0x30] sm:$0xff] }
 0x14f   : > { %v1614_v38 = vadd.f32 %v7077_v36, %v1565_v33  ;;  %v1961_v33 = vrot.slane %v6690_v24, 6  ;;  %v1963_v36 = vrot.slane %v6691_v27, 6  ;;  %v6712_v24 = vld [vmem:[%s10511_s3 + $0x90] sm:$0xff] }
 0x15f   : > { %v7372_v41 = vpop.f32.mrb[16].mxu0 }
 0x160   : > { %v1660_v44 = vadd.f32 %v7372_v41, %v1611_v37  ;;  %v1651_v45 = vpop.f32.mrb[17].mxu0  ;;  %v7838_v37 = vpack.c.bf16 %v6693_v30, %v6692_v29  ;;  %v8958_v41 = vld [vmem:[%s10511_s3 + $0x10] sm:$0xff]  ;;  %v6714_v29 = vld [vmem:[%s10509_s2 + $0x60] sm:$0xff]  ;;  %v6715_v30 = vld [vmem:[%s10509_s2 + $0x68] sm:$0xff] }
 0x161   : > { %v1652_v47 = vadd.f32 %v1651_v45, %v1603_v20  ;;  %v7373_v48 = vpop.f32.mrb[18].mxu0 }
 0x162   : > { %vm1668_vm0 = vcmp.gt.f32.partialorder %v1660_v44, 0.0  ;;  %v1681_v51 = vmul.f32 %v1677_v42, %v1660_v44  ;;  %v1663_v52 = vadd.f32 %v7373_v48, %v1614_v38  ;;  %v1654_v53 = vpop.f32.mrb[19].mxu0  ;;  %v6699_v38 = vld [vmem:[%s10511_s3 + $0x60] sm:$0xff] }
 0x163   : > { %vm1666_vm1 = vcmp.gt.f32.partialorder %v1652_v47, 0.0  ;;  %v1679_v55 = vmul.f32 %v1677_v42, %v1652_v47  ;;  %v1655_v56 = vadd.f32 %v1654_v53, %v1606_v23  ;;  %v1959_v23 = vrot.slane %v6689_v17, 6 }
 0x164   : > { %v8859_v58 = vsel %vm1668_vm0, %v1660_v44, %v1681_v51  ;;  %vm1669_vm2 = vcmp.gt.f32.partialorder %v1663_v52, 0.0  ;;  %v1682_v59 = vmul.f32 %v1677_v42, %v1663_v52  ;;  %v8967_v44 = vsel %vm1957_vm8, %v1961_v33, %v1963_v36 }
 0x165   : > { %10512 = vst [vmem:[#allocation15_spill] sm:$0xff] %v8859_v58  ;;  %v8861_v60 = vsel %vm1666_vm1, %v1652_v47, %v1679_v55  ;;  %vm1667_vm5 = vcmp.gt.f32.partialorder %v1655_v56, 0.0  ;;  %v1680_v61 = vmul.f32 %v1677_v42, %v1655_v56  ;;  %v1695_v0 = vrot.slane %v8859_v58, 2  ;;  %v6701_v47 = vld [vmem:[%s10511_s3 + $0x70] sm:$0xff]  ;;  %v6703_v55 = vld [vmem:[%s10509_s2 + $0x48] sm:$0xff] }
 0x166   : > { %v1692_v62 = vrot.slane %v8861_v60, 2  ;;  %v8864_v63 = vsel %vm1669_vm2, %v1663_v52, %v1682_v59  ;;  %v8939_v35 = vsel %vm1957_vm8, %v8908_v22, %v1959_v23  ;;  %v8963_v43 = vsel %vm1957_vm8, %v1959_v23, %v1961_v33  ;;  %v6702_v52 = vld [vmem:[%s10511_s3 + $0x78] sm:$0x1] }
 0x167   : > { %v1697_v1 = vrot.slane %v8864_v63, 2  ;;  %v8868_v2 = vsel %vm1667_vm5, %v1655_v56, %v1680_v61  ;;  %v8969_v45 = vrot.slane %v6699_v38, 3  ;;  %v6704_v56 = vld [vmem:[%s10509_s2 + $0x50] sm:$0xff]  ;;  %v2235_v38 = vrot.slane %v6712_v24, 2 }
 0x168   : > { %v8875_v4 = vsel %vm1691_vm4, 0.0, %v1692_v62  ;;  %v1693_v5 = vrot.slane %v8868_v2, 2 }
 0x169   : > { %v1698_v8 = vsel %vm1691_vm4, %v1695_v0, %v1697_v1  ;;  %v1738_v9 = vmul.f32 %v8857_v49, %v8875_v4  ;;  %10513 = vst [vmem:[#allocation16_spill] sm:$0xff] %v8969_v45  ;;  %v1969_v51 = vmul.f32 %v8908_v22, %v8875_v4  ;;  %v2100_v1 = vrot.slane %v6702_v52, 3 }
 0x16a   : > { %v8888_v10 = vsel %vm1704_vm6, %v1698_v8, 0.0  ;;  %v8891_v11 = vsel %vm1691_vm4, %v1692_v62, %v1693_v5  ;;  %v8894_v12 = vsel %vm1691_vm4, %v1693_v5, %v1695_v0  ;;  %v2098_v62 = vrot.slane %v6701_v47, 3  ;;  %v6721_v47 = vld [vmem:[%s10511_s3 + $0xa0] sm:$0xff] }
 0x16b   : > { %v1739_v13 = vmul.f32 %v8872_v3, %v8891_v11  ;;  %v1740_v14 = vmul.f32 %v8879_v6, %v8894_v12  ;;  %v1741_v15 = vmul.f32 %v8882_v7, %v8888_v10  ;;  %v1750_v18 = vrot.slane %v1738_v9, 1 }
 0x16c   : > { %v1970_v42 = vmul.f32 %v8939_v35, %v8891_v11  ;;  %v1711_v48 = vmul.f32 %v8952_v40, %v8891_v11  ;;  %v1712_v53 = vmul.f32 %v8958_v41, %v8894_v12  ;;  %v1971_v57 = vmul.f32 %v8963_v43, %v8894_v12 }
 0x16d   : > { %v1751_v19 = vrot.slane %v1739_v13, 1  ;;  %v1753_v20 = vrot.slane %v1740_v14, 1  ;;  %v1755_v21 = vrot.slane %v1741_v15, 1  ;;  %v1972_v61 = vmul.f32 %v8967_v44, %v8888_v10  ;;  %v6710_v13 = vld [vmem:[%s10511_s3 + $0x80] sm:$0xff]  ;;  %v6711_v14 = vld [vmem:[%s10511_s3 + $0x88] sm:$0xff] }
 0x16e   : > { %v1982_v59 = vrot.slane %v1970_v42, 2  ;;  %v9005_v0 = vsel %vm2094_vm9, %v8969_v45, %v2096_v46  ;;  %v1713_v5 = vmul.f32 %v8979_v50, %v8888_v10  ;;  %v1981_v8 = vrot.slane %v1969_v51, 2 }
 0x16f   : > { %v1752_v25 = vsel %vm1704_vm6, %v1750_v18, %v1751_v19  ;;  %v1754_v26 = vsel %vm1704_vm6, %v1751_v19, %v1753_v20  ;;  %v1756_v31 = vsel %vm1704_vm6, %v1753_v20, %v1755_v21  ;;  %10514 = vst [vmem:[#allocation17_spill] sm:$0xff] %v9005_v0  ;;  %v7842_v9 = vpack.c.bf16 %v6704_v56, %v6703_v55 }
 0x170   : > { %7380 = vmatprep.mubr.msk.f32.mxu1 %vm1757_vm7, %v1752_v25  ;;  %v1984_v15 = vrot.slane %v1971_v57, 2  ;;  %v1983_v16 = vsel %vm1691_vm4, %v1981_v8, %v1982_v59  ;;  %v1986_v17 = vrot.slane %v1972_v61, 2  ;;  %v2107_v18 = vmul.f32 %v9005_v0, %v8891_v11  ;;  %v6723_v61 = vld [vmem:[%s10511_s3 + $0xb0] sm:$0xff] }
 0x171   : > { %7381 = vmatmul.mubr.msk.f32.vlgmr.msra.gmra.mrb[16].mxu1 %vm1757_vm7, %v1754_v26  ;;  %v9020_v19 = vsel %vm2094_vm9, %v2096_v46, %v2098_v62  ;;  %v9024_v20 = vsel %vm2094_vm9, %v2098_v62, %v2100_v1  ;;  %v2233_v23 = vrot.slane %v6711_v14, 2  ;;  %v2106_v25 = vmul.f32 %v8969_v45, %v8875_v4  ;;  %v6713_v26 = vld [vmem:[%s10511_s3 + $0x98] sm:$0x1]  ;;  %v6716_v8 = vld [vmem:[%s10509_s2 + $0x70] sm:$0xff] }
 0x172   : > { %7837 = vmatpush3.bf16.msra.mxu1 %v8839_v34  ;;  %7383 = vmatprep.mubr.msk.f32.mxu1 %vm1757_vm7, %v1756_v31  ;;  %v1710_v34 = vmul.f32 %v8933_v32, %v8875_v4  ;;  %v1985_v27 = vsel %vm1691_vm4, %v1982_v59, %v1984_v15  ;;  %v2108_v31 = vmul.f32 %v9020_v19, %v8894_v12  ;;  %v2120_v36 = vrot.slane %v2107_v18, 5  ;;  %v6724_v1 = vld [vmem:[%s10511_s3 + $0xb8] sm:$0x1] }
 0x173   : > { %7390 = vmatprep.subr.mxu1 %v1716_v28  ;;  %v1987_v33 = vsel %vm1691_vm4, %v1984_v15, %v1986_v17  ;;  %v2119_v42 = vrot.slane %v2106_v25, 5  ;;  %v7846_v46 = vpack.c.bf16 %v6715_v30, %v6714_v29  ;;  %v9068_v55 = vsel %vm1691_vm4, %v2233_v23, %v2235_v38 }
 0x174   : > { %v2122_v51 = vrot.slane %v2108_v31, 5  ;;  %10516 = vst [vmem:[#allocation19_spill] sm:$0xff] %v9068_v55  ;;  %v9074_v57 = vrot.slane %v6721_v47, 1  ;;  %v2245_v14 = vmul.f32 %v9068_v55, %v8894_v12  ;;  %v2371_v18 = vrot.slane %v6723_v61, 1  ;;  %v6735_v47 = vld [vmem:[%s10511_s3 + $0xd8] sm:$0x1] }
 0x175   : > { %7384 = vmatmul.mubr.msk.f32.gmra.mrb[18].mxu1 %vm1757_vm7, %v1755_v21  ;;  %v9026_v21 = vrot.slane %v6710_v13, 2  ;;  %v2121_v52 = vsel %vm2118_vm10, %v2119_v42, %v2120_v36  ;;  %v6726_v13 = vld [vmem:[%s10509_s2 + $0x80] sm:$0xff]  ;;  %v2373_v24 = vrot.slane %v6724_v1, 1 }
 0x176   : > { %7391 = vmatpush3.msra.mxu1 %v1716_v28  ;;  %7392 = vmatprep.mubr.msk.f32.mxu1 %vm1757_vm7, %v1710_v34  ;;  %v6705_v28 = vld [vmem:[%s10509_s2 + $0x58] sm:$0xff]  ;;  %v2237_v34 = vrot.slane %v6713_v26, 2  ;;  %v2258_v29 = vrot.slane %v2245_v14, 6  ;;  %v6744_v14 = vld [vmem:[%s10511_s3 + $0xe8] sm:$0xff] }
 0x177   : > { %7839 = vmatprep.subr.bf16.mxu1 %v7838_v37  ;;  %v9055_v39 = vsel %vm1691_vm4, %v9026_v21, %v2233_v23  ;;  %v2243_v62 = vmul.f32 %v9026_v21, %v8875_v4 }
 0x178   : > { %10515 = vst [vmem:[#allocation18_spill] sm:$0xff] %v9055_v39  ;;  %v9072_v56 = vsel %vm1691_vm4, %v2235_v38, %v2237_v34  ;;  %v9123_v38 = vsel %vm1704_vm6, %v2371_v18, %v2373_v24 }
 0x179   : > { %7393 = vmatmul.mubr.msk.f32.vlgmr.msra.gmra.mrb[16].mxu1 %vm1757_vm7, %v1711_v48  ;;  %v6722_v48 = vld [vmem:[%s10511_s3 + $0xa8] sm:$0xff]  ;;  %10517 = vst [vmem:[#allocation20_spill] sm:$0xff] %v9072_v56  ;;  %v2255_v25 = vrot.slane %v2243_v62, 6  ;;  %v2382_v62 = vmul.f32 %v9123_v38, %v8888_v10 }
 0x17a   : > { %7841 = vmatpush3.bf16.msra.mxu1 %v7838_v37  ;;  %7395 = vmatprep.mubr.msk.f32.mxu1 %vm1757_vm7, %v1712_v53  ;;  %v2109_v37 = vmul.f32 %v9024_v20, %v8888_v10  ;;  %v2369_v59 = vrot.slane %v6722_v48, 1 }
 0x17b   : > { %7402 = vmatprep.subr.mxu1 %v6694_v54 }
 0x17c   : > { %v2124_v53 = vrot.slane %v2109_v37, 5  ;;  %v9103_v23 = vsel %vm1704_vm6, %v9074_v57, %v2369_v59  ;;  %v6734_v37 = vld [vmem:[%s10511_s3 + $0xd0] sm:$0xff] }
 0x17d   : > { %7396 = vmatmul.mubr.msk.f32.gmra.mrb[18].mxu1 %vm1757_vm7, %v1713_v5  ;;  %v2123_v5 = vsel %vm2118_vm10, %v2120_v36, %v2122_v51  ;;  %v9116_v36 = vsel %vm1704_vm6, %v2369_v59, %v2371_v18  ;;  %v2396_v18 = vrot.slane %v2382_v62, 7  ;;  %v6755_v62 = vld [vmem:[%s10511_s3 + $0x108] sm:$0xff] }
 0x17e   : > { %7403 = vmatpush3.msra.mxu1 %v6694_v54  ;;  %7404 = vmatprep.mubr.msk.f32.mxu1 %vm1757_vm7, %v1983_v16  ;;  %v2244_v54 = vmul.f32 %v9055_v39, %v8891_v11  ;;  %v2125_v15 = vsel %vm2118_vm10, %v2122_v51, %v2124_v53  ;;  %v6727_v51 = vld [vmem:[%s10509_s2 + $0x88] sm:$0xff] }
 0x17f   : > { %7843 = vmatprep.subr.bf16.mxu1 %v7842_v9 }
 0x180   : > { %v2256_v16 = vrot.slane %v2244_v54, 6  ;;  %v2507_v54 = vrot.slane %v6734_v37, 6  ;;  %v6747_v37 = vld [vmem:[%s10509_s2 + $0xa8] sm:$0xff] }
 0x181   : > { %7405 = vmatmul.mubr.msk.f32.vlgmr.msra.gmra.mrb[16].mxu1 %vm1757_vm7, %v1985_v27  ;;  %v6732_v27 = vld [vmem:[%s10511_s3 + $0xc0] sm:$0xff] }
 0x182   : > { %7845 = vmatpush3.bf16.msra.mxu1 %v7842_v9  ;;  %7407 = vmatprep.mubr.msk.f32.mxu1 %vm1757_vm7, %v1987_v33  ;;  %v6725_v9 = vld [vmem:[%s10509_s2 + $0x78] sm:$0xff]  ;;  %v2257_v30 = vsel %vm1957_vm8, %v2255_v25, %v2256_v16  ;;  %v2380_v33 = vmul.f32 %v9103_v23, %v8891_v11  ;;  %v9125_v34 = vrot.slane %v6732_v27, 6  ;;  %v2259_v48 = vsel %vm1957_vm8, %v2256_v16, %v2258_v29 }
 0x183   : > { %7414 = vmatprep.subr.mxu1 %v6705_v28  ;;  %v7850_v26 = vpack.c.bf16 %v6726_v13, %v6725_v9  ;;  %v6743_v13 = vld [vmem:[%s10511_s3 + $0xe0] sm:$0xff] }
 0x184   : > { %10518 = vst [vmem:[#allocation21_spill] sm:$0xff] %v9125_v34  ;;  %v2392_v61 = vrot.slane %v2380_v33, 7  ;;  %v2515_v24 = vmul.f32 %v9125_v34, %v8891_v11  ;;  %v6738_v33 = vld [vmem:[%s10509_s2 + $0xa0] sm:$0xff] }
 0x185   : > { %7408 = vmatmul.mubr.msk.f32.gmra.mrb[18].mxu1 %vm1757_vm7, %v1986_v17  ;;  %v2246_v17 = vmul.f32 %v9072_v56, %v8888_v10 }
 0x186   : > { %7415 = vmatpush3.msra.mxu1 %v6705_v28  ;;  %7416 = vmatprep.mubr.msk.f32.mxu1 %vm1757_vm7, %v2121_v52  ;;  %v6733_v28 = vld [vmem:[%s10511_s3 + $0xc8] sm:$0xff]  ;;  %v6736_v52 = vld [vmem:[%s10509_s2 + $0x90] sm:$0xff] }
 0x187   : > { %7847 = vmatprep.subr.bf16.mxu1 %v7846_v46  ;;  %v2260_v31 = vrot.slane %v2246_v17, 6  ;;  %v2505_v42 = vrot.slane %v6733_v28, 6  ;;  %v9173_v28 = vrot.slane %v6743_v13, 5 }
 0x189   : > { %7417 = vmatmul.mubr.msk.f32.vlgmr.msra.gmra.mrb[16].mxu1 %vm1757_vm7, %v2123_v5  ;;  %v2261_v59 = vsel %vm1957_vm8, %v2258_v29, %v2260_v31  ;;  %v9151_v1 = vsel %vm1957_vm8, %v9125_v34, %v2505_v42  ;;  %v2509_v5 = vrot.slane %v6735_v47, 6  ;;  %v9160_v16 = vsel %vm1957_vm8, %v2505_v42, %v2507_v54  ;;  %10519 = vst [vmem:[#allocation22_spill] sm:$0xff] %v9173_v28  ;;  %v6748_v42 = vld [vmem:[%s10509_s2 + $0xb0] sm:$0xff] }
 0x18a   : > { %7849 = vmatpush3.bf16.msra.mxu1 %v7846_v46  ;;  %7419 = vmatprep.mubr.msk.f32.mxu1 %vm1757_vm7, %v2125_v15  ;;  %v2379_v46 = vmul.f32 %v9074_v57, %v8875_v4  ;;  %v2381_v4 = vmul.f32 %v9116_v36, %v8894_v12  ;;  %v2516_v25 = vmul.f32 %v9151_v1, %v8894_v12  ;;  %v2641_v29 = vrot.slane %v6744_v14, 5 }
 0x18b   : > { %7426 = vmatprep.subr.mxu1 %v6716_v8  ;;  %v2510_v27 = vsel %vm1957_vm8, %v2507_v54, %v2509_v5  ;;  %v2651_v14 = vmul.f32 %v9173_v28, %v8891_v11 }
 0x18c   : > { %v2394_v15 = vrot.slane %v2381_v4, 7  ;;  %v9195_v4 = vsel %vm2118_vm10, %v9173_v28, %v2641_v29 }
 0x18d   : > { %7420 = vmatmul.mubr.msk.f32.gmra.mrb[18].mxu1 %vm1757_vm7, %v2124_v53  ;;  %v6737_v53 = vld [vmem:[%s10509_s2 + $0x98] sm:$0xff] }
 0x18e   : > { %7427 = vmatpush3.msra.mxu1 %v6716_v8  ;;  %7428 = vmatprep.mubr.msk.f32.mxu1 %vm1757_vm7, %v2257_v30  ;;  %v2391_v8 = vrot.slane %v2379_v46, 7  ;;  %v7854_v9 = vpack.c.bf16 %v6737_v53, %v6736_v52  ;;  %v6746_v30 = vld [vmem:[%s10511_s3 + $0xf8] sm:$0x1]  ;;  %v2517_v46 = vmul.f32 %v9160_v16, %v8888_v10  ;;  %v2528_v52 = vrot.slane %v2516_v25, 2 }
 0x18f   : > { %7851 = vmatprep.subr.bf16.mxu1 %v7850_v26  ;;  %v2518_v53 = vmul.f32 0.0, %v2510_v27  ;;  %v2645_v54 = vrot.slane %v6746_v30, 5  ;;  %v2778_v25 = vrot.slane %v6755_v62, 4  ;;  %v6758_v30 = vld [vmem:[%s10509_s2 + $0xc0] sm:$0xff] }
 0x190   : > { %v2393_v17 = vsel %vm1726_vm3, %v2391_v8, %v2392_v61  ;;  %v2530_v5 = vrot.slane %v2517_v46, 2  ;;  %v2663_v46 = vrot.slane %v2651_v14, 3 }
 0x191   : > { %7429 = vmatmul.mubr.msk.f32.vlgmr.msra.gmra.mrb[16].mxu1 %vm1757_vm7, %v2259_v48  ;;  %v2397_v48 = vsel %vm1726_vm3, %v2394_v15, %v2396_v18  ;;  %v9208_v13 = vrot.slane %v2518_v53, 2 }
 0x192   : > { %7853 = vmatpush3.bf16.msra.mxu1 %v7850_v26  ;;  %7431 = vmatprep.mubr.msk.f32.mxu1 %vm1757_vm7, %v2261_v59  ;;  %v6745_v26 = vld [vmem:[%s10511_s3 + $0xf0] sm:$0xff]  ;;  %v7858_v59 = vpack.c.bf16 %v6748_v42, %v6747_v37  ;;  %v2531_v27 = vsel %vm1691_vm4, %v2528_v52, %v2530_v5 }
 0x193   : > { %7438 = vmatprep.subr.mxu1 %v6727_v51  ;;  %v2643_v47 = vrot.slane %v6745_v26, 5  ;;  %v6757_v26 = vld [vmem:[%s10511_s3 + $0x118] sm:$0x1]  ;;  %v2533_v42 = vsel %vm1691_vm4, %v2530_v5, %v9208_v13 }
 0x195   : > { %7432 = vmatmul.mubr.msk.f32.gmra.mrb[18].mxu1 %vm1757_vm7, %v2260_v31  ;;  %v2395_v31 = vsel %vm1726_vm3, %v2392_v61, %v2394_v15  ;;  %v6754_v61 = vld [vmem:[%s10511_s3 + $0x100] sm:$0xff]  ;;  %v9204_v8 = vsel %vm2118_vm10, %v2641_v29, %v2643_v47  ;;  %v2652_v15 = vmul.f32 %v9195_v4, %v8894_v12  ;;  %v6749_v29 = vld [vmem:[%s10509_s2 + $0xb8] sm:$0xff] }
 0x196   : > { %7439 = vmatpush3.msra.mxu1 %v6727_v51  ;;  %7440 = vmatprep.mubr.msk.f32.mxu1 %vm1757_vm7, %v2393_v17  ;;  %v2527_v51 = vrot.slane %v2515_v24, 2  ;;  %10520 = vst [vmem:[#allocation23_spill] sm:$0xff] %v9204_v8  ;;  %v6756_v17 = vld [vmem:[%s10511_s3 + $0x110] sm:$0xff]  ;;  %v2646_v24 = vsel %vm2118_vm10, %v2643_v47, %v2645_v54 }
 0x197   : > { %7855 = vmatprep.subr.bf16.mxu1 %v7854_v9  ;;  %v2780_v37 = vrot.slane %v6756_v17, 4  ;;  %v2664_v47 = vrot.slane %v2652_v15, 3  ;;  %v6760_v17 = vld [vmem:[%s10509_s2 + $0xd0] sm:$0xff] }
 0x199   : > { %7441 = vmatmul.mubr.msk.f32.vlgmr.msra.gmra.mrb[16].mxu1 %vm1757_vm7, %v2395_v31  ;;  %v6759_v31 = vld [vmem:[%s10509_s2 + $0xc8] sm:$0xff]  ;;  %v2665_v62 = vsel %vm2094_vm9, %v2663_v46, %v2664_v47 }
 0x19a   : > { %7857 = vmatpush3.bf16.msra.mxu1 %v7854_v9  ;;  %7443 = vmatprep.mubr.msk.f32.mxu1 %vm1757_vm7, %v2397_v48  ;;  %v2529_v9 = vsel %vm1691_vm4, %v2527_v51, %v2528_v52  ;;  %v2654_v48 = vmul.f32 0.0, %v2646_v24  ;;  %v2782_v52 = vrot.slane %v6757_v26, 4  ;;  %v7862_v53 = vpack.c.bf16 %v6759_v31, %v6758_v30  ;;  %v6770_v46 = vld [vmem:[%s10436_s8 + $0x28] sm:$0xff] }
 0x19b   : > { %7450 = vmatprep.subr.mxu1 %v6738_v33 }
 0x19c   : > { %v9250_v5 = vrot.slane %v2654_v48, 3  ;;  %v2783_v14 = vsel %vm2776_vm11, %v2780_v37, %v2782_v52  ;;  %v2991_v48 = vld [vmem:[%s10436_s8 + $0x8] sm:$0xff] }
 0x19d   : > { %7444 = vmatmul.mubr.msk.f32.gmra.mrb[18].mxu1 %vm1757_vm7, %v2396_v18  ;;  %v9219_v18 = vrot.slane %v6754_v61, 4  ;;  %v9245_v61 = vsel %vm2776_vm11, %v2778_v25, %v2780_v37  ;;  %v2791_v26 = vmul.f32 0.0, %v2783_v14  ;;  %v6769_v37 = vld [vmem:[%s10436_s8 + $0x20] sm:$0xff] }
 0x19e   : > { %7451 = vmatpush3.msra.mxu1 %v6738_v33  ;;  %7452 = vmatprep.mubr.msk.f32.mxu1 %vm1757_vm7, %v2529_v9  ;;  %v2653_v33 = vmul.f32 %v9204_v8, %v8888_v10  ;;  %v2790_v24 = vmul.f32 %v9245_v61, %v8888_v10 }
 0x19f   : > { %7859 = vmatprep.subr.bf16.mxu1 %v7858_v59  ;;  %v9242_v51 = vsel %vm2776_vm11, %v9219_v18, %v2778_v25  ;;  %v9271_v30 = vrot.slane %v2791_v26, 4 }
 0x1a0   : > { %v2666_v54 = vrot.slane %v2653_v33, 3  ;;  %v2789_v9 = vmul.f32 %v9242_v51, %v8894_v12  ;;  %v6768_v33 = vld [vmem:[%s10436_s8 + $0x18] sm:$0xff] }
 0x1a1   : > { %7453 = vmatmul.mubr.msk.f32.vlgmr.msra.gmra.mrb[16].mxu1 %vm1757_vm7, %v2531_v27  ;;  %v2803_v27 = vrot.slane %v2790_v24, 4 }
 0x1a2   : > { %7861 = vmatpush3.bf16.msra.mxu1 %v7858_v59  ;;  %7455 = vmatprep.mubr.msk.f32.mxu1 %vm1757_vm7, %v2533_v42  ;;  %v2788_v59 = vmul.f32 %v9219_v18, %v8891_v11  ;;  %v2667_v15 = vsel %vm2094_vm9, %v2664_v47, %v2666_v54  ;;  %v2669_v11 = vsel %vm2094_vm9, %v2666_v54, %v9250_v5  ;;  %v2801_v25 = vrot.slane %v2789_v9, 4  ;;  %v2990_v47 = vld [vmem:[%s10436_s8] sm:$0xff] }
 0x1a3   : > { %7462 = vmatprep.subr.mxu1 %v6749_v29  ;;  %v2806_v31 = vsel %vm2776_vm11, %v2803_v27, %v9271_v30  ;;  %v7866_v42 = vpack.c.bf16 %v6769_v37, %v6768_v33  ;;  %v9296_v52 = vpack.c.bf16 %v2991_v48, %v2990_v47 }
 0x1a4   : > { %v2800_v12 = vrot.slane %v2788_v59, 4  ;;  %v2804_v10 = vsel %vm2776_vm11, %v2801_v25, %v2803_v27 }
 0x1a5   : > { %7456 = vmatmul.mubr.msk.f32.gmra.mrb[18].mxu1 %vm1757_vm7, %v9208_v13  ;;  %7867 = vmatprep.subr.bf16.mxu0 %v7866_v42 }
 0x1a6   : > { %7463 = vmatpush3.msra.mxu1 %v6749_v29  ;;  %7464 = vmatprep.mubr.msk.f32.mxu1 %vm1757_vm7, %v2665_v62  ;;  %v2802_v29 = vsel %vm2776_vm11, %v2800_v12, %v2801_v25  ;;  %v2921_v62 = vpop.permute.xlu0 %2920  ;;  %v6767_v12 = vld [vmem:[%s10523_s28] ss:$0 sm:$0xff] }
 0x1a7   : > { %7863 = vmatprep.subr.bf16.mxu1 %v7862_v53  ;;  %7869 = vmatpush3.bf16.msra.mxu0 %v7866_v42  ;;  %v9308_v42 = vpop.permute.xlu1 %2958 }
 0x1a8   : > { %7486 = vmatprep.subr.mxu0 %v6770_v46 }
 0x1a9   : > { %7465 = vmatmul.mubr.msk.f32.vlgmr.msra.gmra.mrb[16].mxu1 %vm1757_vm7, %v2667_v15  ;;  %v6766_v15 = vld [vmem:[%s10522_s23] ss:$0 sm:$0xff]  ;;  %s10314_s23 = sshll.u32 %s8551_s5, 4 }
 0x1aa   : > { %7865 = vmatpush3.bf16.msra.mxu1 %v7862_v53  ;;  %7467 = vmatprep.mubr.msk.f32.mxu1 %vm1757_vm7, %v2669_v11  ;;  %v6765_v53 = vld [vmem:[%s10521_s4] ss:$0 sm:$0xff]  ;;  %s10320_s28 = scalar_lea.hbm %s10449_s21, %s10314_s23  ;;  %s8407_s4 = smov [#allocation2]  }
 0x1ab   : > { %7474 = vmatprep.subr.mxu1 %v6760_v17  ;;  %7487 = vmatpush3.msra.mxu0 %v6770_v46  ;;  %s8282_s0 = sshll.u32 %s8407_s4, 4  ;;  %s8283_s0 = int_to_ptr.vmem [resolvable:$false] %s8282_s0 }
 0x1ac   : > { %7871 = vmatprep.subr.bf16.mxu0 %v9296_v52  ;;  %s8284_s2 = scalar_lea.vmem %s8283_s0, 32  ;;  %p8285_p0 = scmp.lt.s32.totalorder %s6443_s29, %s8283_s0 }
 0x1ad   : > { %7468 = vmatmul.mubr.msk.f32.gmra.mrb[18].mxu1 %vm1757_vm7, %v9250_v5  ;;  %p8286_p1 = scmp.lt.s32.totalorder %s8284_s2, %s8278_s1 }
 0x1ae   : > { %7475 = vmatpush3.msra.mxu1 %v6760_v17  ;;  %7476 = vmatprep.mubr.msk.f32.mxu1 %vm1757_vm7, %v2802_v29 }
 0x1af   : > { %p8287_p2 = por %p8286_p1, %p8285_p0 }
 0x1b1   : > { %7477 = vmatmul.mubr.msk.f32.vlgmr.msra.gmra.mrb[16].mxu1 %vm1757_vm7, %v2804_v10  ;;  %p8288_p3 = pnand %p8287_p2, %p8281_p13 }
 0x1b2   : > { %7479 = vmatprep.mubr.msk.f32.mxu1 %vm1757_vm7, %v2806_v31 }
 0x1b5   : > { %7480 = vmatmul.mubr.msk.f32.gmra.mrb[18].mxu1 %vm1757_vm7, %v9271_v30 }
 0x284   : > { %v7478_v54 = vpop.f32.mrb[16].mxu1 }
 0x285   : > { %v2912_v59 = vadd.f32 %v7478_v54, %v6765_v53  ;;  %v2881_v9 = vpop.f32.mrb[17].mxu1 }
 0x286   : > { %v2911_v14 = vadd.f32 %v6765_v53, %v2881_v9 }
 0x287   : > { %vm2916_vm12 = vcmp.gt.f32.partialorder %v2912_v59, 0.0  ;;  %v2924_v17 = vmul.f32 %v2921_v62, %v2912_v59 }
 0x288   : > { %vm2915_vm13 = vcmp.gt.f32.partialorder %v2911_v14, 0.0  ;;  %v2923_v24 = vmul.f32 %v2921_v62, %v2911_v14  ;;  %v7481_v11 = vpop.f32.mrb[18].mxu1 }
 0x289   : > { %v2928_v25 = vsel %vm2916_vm12, %v2912_v59, %v2924_v17  ;;  %v2914_v26 = vadd.f32 %v7481_v11, %v6765_v53  ;;  %v2891_v27 = vpop.f32.mrb[19].mxu1  ;;  %v6779_v11 = vld [vmem:[%s10436_s8 + $0x30] sm:$0xff] }
 0x28a   : > { %v2927_v29 = vsel %vm2915_vm13, %v2911_v14, %v2923_v24  ;;  %v2939_v10 = vmul.f32 %v6766_v15, %v2928_v25  ;;  %v2913_v31 = vadd.f32 %v6765_v53, %v2891_v27 }
 0x28b   : > { %v2938_v33 = vmul.f32 %v6766_v15, %v2927_v29  ;;  %vm2918_vm14 = vcmp.gt.f32.partialorder %v2914_v26, 0.0  ;;  %v2926_v37 = vmul.f32 %v2921_v62, %v2914_v26  ;;  %v6786_v29 = vld [vmem:[%s10436_s8 + $0x48] sm:$0xff] }
 0x28c   : > { %v2950_v46 = vadd.f32 %v6767_v12, %v2939_v10  ;;  %vm2917_vm15 = vcmp.gt.f32.partialorder %v2913_v31, 0.0  ;;  %v2925_v47 = vmul.f32 %v2921_v62, %v2913_v31  ;;  %v6780_v62 = vld [vmem:[%s10436_s8 + $0x38] sm:$0xff] }
 0x28d   : > { %v2949_v48 = vadd.f32 %v6767_v12, %v2938_v33  ;;  %v2930_v54 = vsel %vm2918_vm14, %v2914_v26, %v2926_v37  ;;  %v9326_v33 = vpack.c.bf16 %v6780_v62, %v6779_v11 }
 0x28e   : > { %vm2954_vm0 = vcmp.gt.f32.partialorder %v2950_v46, 0.0  ;;  %v2941_v9 = vmul.f32 %v6766_v15, %v2930_v54  ;;  %v2929_v58 = vsel %vm2917_vm15, %v2913_v31, %v2925_v47  ;;  %v2962_v59 = vmul.f32 %v9308_v42, %v2950_v46 }
 0x28f   : > { %vm2953_vm1 = vcmp.gt.f32.partialorder %v2949_v48, 0.0  ;;  %v2940_v17 = vmul.f32 %v6766_v15, %v2929_v58  ;;  %v2961_v14 = vmul.f32 %v9308_v42, %v2949_v48  ;;  %v6787_v58 = vld [vmem:[%s10436_s8 + $0x50] sm:$0xff] }
 0x290   : > { %v2952_v53 = vadd.f32 %v6767_v12, %v2941_v9  ;;  %v2966_v24 = vsel %vm2954_vm0, %v2950_v46, %v2962_v59  ;;  %v9332_v47 = vpack.c.bf16 %v6787_v58, %v6786_v29 }
 0x291   : > { %v2951_v25 = vadd.f32 %v6767_v12, %v2940_v17  ;;  %v2974_v26 = vrot.slane %v2966_v24, 2  ;;  %v2965_v27 = vsel %vm2953_vm1, %v2949_v48, %v2961_v14 }
 0x292   : > { %vm2956_vm2 = vcmp.gt.f32.partialorder %v2952_v53, 0.0  ;;  %v2964_v15 = vmul.f32 %v9308_v42, %v2952_v53  ;;  %v2973_v10 = vrot.slane %v2965_v27, 2 }
 0x293   : > { %vm2955_vm5 = vcmp.gt.f32.partialorder %v2951_v25, 0.0  ;;  %v2963_v31 = vmul.f32 %v9308_v42, %v2951_v25 }
 0x294   : > { %v2968_v12 = vsel %vm2956_vm2, %v2952_v53, %v2964_v15  ;;  %v9329_v37 = vsel %vm1691_vm4, %v2973_v10, %v2974_v26  ;;  %v2984_v46 = vsel %vm1691_vm4, 0.0, %v2973_v10 }
 0x295   : > { %v2967_v48 = vsel %vm2955_vm5, %v2951_v25, %v2963_v31  ;;  %v2978_v54 = vrot.slane %v2968_v12, 2  ;;  %v2993_v9 = vmul.f32 %v2984_v46, %v8857_v49  ;;  %v2994_v59 = vmul.f32 %v9329_v37, %v8872_v3 }
 0x296   : > { %v2976_v17 = vrot.slane %v2967_v48, 2  ;;  %v2986_v14 = vmul.f32 %v2984_v46, %v8933_v32  ;;  %v9340_v53 = vmul.f32 %v9329_v37, %v8952_v40  ;;  %v3202_v24 = vmul.f32 %v2984_v46, %v8908_v22 }
 0x297   : > { %v3005_v11 = vrot.slane %v2993_v9, 1  ;;  %v3006_v62 = vrot.slane %v2994_v59, 1  ;;  %v3203_v25 = vmul.f32 %v9329_v37, %v8939_v35  ;;  %v3318_v27 = vmul.f32 %v2984_v46, %v8969_v45 }
 0x298   : > { %v9347_v29 = vsel %vm1691_vm4, %v2974_v26, %v2976_v17  ;;  %v2979_v58 = vsel %vm1691_vm4, %v2976_v17, %v2978_v54  ;;  %v3214_v15 = vrot.slane %v3202_v24, 2  ;;  %v3319_v32 = vmul.f32 %v9329_v37, %v9005_v0 }
 0x299   : > { %v3007_v40 = vsel %vm1704_vm6, %v3005_v11, %v3006_v62  ;;  %v2995_v10 = vmul.f32 %v9347_v29, %v8879_v6  ;;  %v9356_v31 = vsel %vm1704_vm6, %v2979_v58, 0.0  ;;  %v9360_v12 = vmul.f32 %v9347_v29, %v8958_v41 }
 0x29a   : > { %7488 = vmatprep.mubr.msk.f32.mxu0 %vm1757_vm7, %v3007_v40  ;;  %v2996_v26 = vmul.f32 %v9356_v31, %v8882_v7  ;;  %v9367_v48 = vmul.f32 %v9356_v31, %v8979_v50  ;;  %v3215_v54 = vrot.slane %v3203_v25, 2  ;;  %v3204_v9 = vmul.f32 %v9347_v29, %v8963_v43 }
 0x29b   : > { %v3008_v59 = vrot.slane %v2995_v10, 1  ;;  %v9373_v17 = vmul.f32 %v9356_v31, %v8967_v44  ;;  %v3330_v41 = vrot.slane %v3318_v27, 5  ;;  %v3331_v24 = vrot.slane %v3319_v32, 5  ;;  %v2992_v10 = vld [vmem:[%s10436_s8 + $0x10] sm:$0xff] }
 0x29c   : > { %v3010_v11 = vrot.slane %v2996_v26, 1  ;;  %v9376_v58 = vsel %vm1691_vm4, %v3214_v15, %v3215_v54  ;;  %v3217_v40 = vrot.slane %v3204_v9, 2  ;;  %v3320_v50 = vmul.f32 %v9347_v29, %v9020_v19 }
 0x29d   : > { %v3009_v25 = vsel %vm1704_vm6, %v3006_v62, %v3008_v59  ;;  %v10469_v0 = vrot.slane %v9373_v17, 2  ;;  %v9386_v45 = vsel %vm2118_vm10, %v3330_v41, %v3331_v24  ;;  %v9390_v27 = vmul.f32 %v9356_v31, %v9024_v20 }
 0x29e   : > { %7489 = vmatmul.mubr.msk.f32.vlgmr.msra.gmra.mrb[20].mxu0 %vm1757_vm7, %v3009_v25  ;;  %v3011_v15 = vsel %vm1704_vm6, %v3008_v59, %v3010_v11  ;;  %v9395_v32 = vsel %vm1691_vm4, %v3215_v54, %v3217_v40  ;;  %v3333_v62 = vrot.slane %v3320_v50, 5  ;;  %v3434_v26 = vmul.f32 %v2984_v46, %v9026_v21 }
 0x29f   : > { %7873 = vmatpush3.bf16.msra.mxu0 %v9296_v52  ;;  %7491 = vmatprep.mubr.msk.f32.mxu0 %vm1757_vm7, %v3011_v15  ;;  %v9403_v9 = vsel %vm1691_vm4, %v3217_v40, %v10469_v0  ;;  %v10476_v41 = vrot.slane %v9390_v27, 5  ;;  %v3435_v59 = vmul.f32 %v9329_v37, %v9055_v39  ;;  %v3436_v54 = vmul.f32 %v9347_v29, %v9068_v55 }
 0x2a0   : > { %7498 = vmatprep.subr.mxu0 %v2992_v10  ;;  %v9411_v50 = vsel %vm2118_vm10, %v3331_v24, %v3333_v62  ;;  %v3446_v52 = vrot.slane %v3434_v26, 6  ;;  %v9415_v25 = vmul.f32 %v9356_v31, %v9072_v56  ;;  %v3550_v40 = vmul.f32 %v2984_v46, %v9074_v57 }
 0x2a1   : > { %v9421_v15 = vsel %vm2118_vm10, %v3333_v62, %v10476_v41  ;;  %v3447_v0 = vrot.slane %v3435_v59, 6  ;;  %v3449_v39 = vrot.slane %v3436_v54, 6  ;;  %v3551_v55 = vmul.f32 %v9329_v37, %v9103_v23 }
 0x2a2   : > { %7492 = vmatmul.mubr.msk.f32.gmra.mrb[22].mxu0 %vm1757_vm7, %v3010_v11  ;;  %v10479_v24 = vrot.slane %v9415_v25, 6  ;;  %v3562_v26 = vrot.slane %v3550_v40, 7  ;;  %v3552_v56 = vmul.f32 %v9347_v29, %v9116_v36  ;;  %v9431_v46 = vmul.f32 %v9356_v31, %v9123_v38 }
 0x2a3   : > { %7499 = vmatpush3.msra.mxu0 %v2992_v10  ;;  %7500 = vmatprep.mubr.msk.f32.mxu0 %vm1757_vm7, %v2986_v14  ;;  %v9435_v62 = vsel %vm1957_vm8, %v3446_v52, %v3447_v0  ;;  %v9438_v59 = vsel %vm1957_vm8, %v3447_v0, %v3449_v39  ;;  %v3563_v11 = vrot.slane %v3551_v55, 7  ;;  %v3666_v54 = vmul.f32 %v9329_v37, %v9125_v34  ;;  %v6781_v0 = vld [vmem:[%s10436_s8 + $0x40] sm:$0xff] }
 0x2a4   : > { %7875 = vmatprep.subr.bf16.mxu0 %v9326_v33  ;;  %v9446_v40 = vsel %vm1957_vm8, %v3449_v39, %v10479_v24  ;;  %v3565_v10 = vrot.slane %v3552_v56, 7  ;;  %v10482_v14 = vrot.slane %v9431_v46, 7  ;;  %v3667_v52 = vmul.f32 %v9347_v29, %v9151_v1 }
 0x2a5   : > { %v9455_v55 = vsel %vm1726_vm3, %v3562_v26, %v3563_v11  ;;  %v3676_v41 = vrot.slane %v3666_v54, 2  ;;  %v9459_v34 = vmul.f32 %v9356_v31, %v9160_v16  ;;  %v3777_v39 = vmul.f32 %v9329_v37, %v9173_v28 }
 0x2a6   : > { %7501 = vmatmul.mubr.msk.f32.vlgmr.msra.gmra.mrb[20].mxu0 %vm1757_vm7, %v9340_v53  ;;  %v9466_v56 = vsel %vm1726_vm3, %v3563_v11, %v3565_v10  ;;  %v9471_v24 = vsel %vm1726_vm3, %v3565_v10, %v10482_v14  ;;  %v3677_v26 = vrot.slane %v3667_v52, 2  ;;  %v3778_v54 = vmul.f32 %v9347_v29, %v9195_v4 }
 0x2a7   : > { %7877 = vmatpush3.bf16.msra.mxu0 %v9326_v33  ;;  %7503 = vmatprep.mubr.msk.f32.mxu0 %vm1757_vm7, %v9360_v12  ;;  %v3679_v28 = vrot.slane %v9459_v34, 2  ;;  %v3787_v53 = vrot.slane %v3777_v39, 3  ;;  %v9481_v11 = vmul.f32 %v9356_v31, %v9204_v8  ;;  %v3888_v10 = vmul.f32 %v9329_v37, %v9219_v18 }
 0x2a8   : > { %7510 = vmatprep.subr.mxu0 %v6781_v0  ;;  %v9486_v52 = vsel %vm1691_vm4, %v3676_v41, %v3677_v26  ;;  %v3788_v14 = vrot.slane %v3778_v54, 3  ;;  %v3889_v33 = vmul.f32 %v9347_v29, %v9242_v51  ;;  %v9492_v12 = vmul.f32 %v9356_v31, %v9245_v61 }
 0x2a9   : > { %v9497_v39 = vsel %vm1691_vm4, %v3677_v26, %v3679_v28  ;;  %v3790_v8 = vrot.slane %v9481_v11, 3  ;;  %v3898_v41 = vrot.slane %v3888_v10, 4  ;;  %v10524_v10 = vrot.slane %v9373_v17, 2  ;;  %v6830_v11 = vld [vmem:[%s10438_s10 + $0x20] sm:$0xff] }
 0x2aa   : > { %7504 = vmatmul.mubr.msk.f32.gmra.mrb[22].mxu0 %vm1757_vm7, %v9367_v48  ;;  %v9503_v37 = vsel %vm2094_vm9, %v3787_v53, %v3788_v14  ;;  %v3899_v54 = vrot.slane %v3889_v33, 4  ;;  %v3901_v29 = vrot.slane %v9492_v12, 4  ;;  %v10525_v17 = vrot.slane %v9390_v27, 5  ;;  %v6802_v33 = vld [vmem:[%s10436_s8 + $0x88] sm:$0xff] }
 0x2ab   : > { %7511 = vmatpush3.msra.mxu0 %v6781_v0  ;;  %7512 = vmatprep.mubr.msk.f32.mxu0 %vm1757_vm7, %v9376_v58  ;;  %v9511_v31 = vsel %vm2094_vm9, %v3788_v14, %v3790_v8  ;;  %v6788_v0 = vld [vmem:[%s10436_s8 + $0x58] sm:$0xff]  ;;  %v6793_v58 = vld [vmem:[%s10436_s8 + $0x60] sm:$0xff]  ;;  %v6794_v14 = vld [vmem:[%s10436_s8 + $0x68] sm:$0xff]  ;;  %v3792_v34 = vsel %vm2094_vm9, %v3790_v8, %v9250_v5 }
 0x2ac   : > { %7879 = vmatprep.subr.bf16.mxu0 %v9332_v47  ;;  %v9515_v48 = vsel %vm2776_vm11, %v3898_v41, %v3899_v54  ;;  %v9520_v26 = vsel %vm2776_vm11, %v3899_v54, %v3901_v29  ;;  %v7882_v53 = vpack.c.bf16 %v6794_v14, %v6793_v58  ;;  %v6809_v41 = vld [vmem:[%s10436_s8 + $0xa0] sm:$0xff]  ;;  %v6816_v54 = vld [vmem:[%s10436_s8 + $0xb8] sm:$0xff]  ;;  %v6831_v12 = vld [vmem:[%s10438_s10 + $0x28] sm:$0xff] }
 0x2ad   : > { %v6829_v8 = vld [vmem:[%s10438_s10 + $0x18] sm:$0xff]  ;;  %v8273_v58 = vld [vmem:[%s10448_s20] ss:$0 sm:$0xff] }
 0x2ae   : > { %7513 = vmatmul.mubr.msk.f32.vlgmr.msra.gmra.mrb[20].mxu0 %vm1757_vm7, %v9395_v32  ;;  %v6795_v32 = vld [vmem:[%s10436_s8 + $0x70] sm:$0xff]  ;;  %v6828_v14 = vld [vmem:[%s10437_s9] ss:$0 sm:$0xff] }
 0x2af   : > { %7881 = vmatpush3.bf16.msra.mxu0 %v9332_v47  ;;  %7515 = vmatprep.mubr.msk.f32.mxu0 %vm1757_vm7, %v9403_v9  ;;  %v6800_v47 = vld [vmem:[%s10436_s8 + $0x78] sm:$0xff]  ;;  %v6801_v9 = vld [vmem:[%s10436_s8 + $0x80] sm:$0xff] }
 0x2b0   : > { %7522 = vmatprep.subr.mxu0 %v6788_v0 }
 0x2b2   : > { %7516 = vmatmul.mubr.msk.f32.gmra.mrb[22].mxu0 %vm1757_vm7, %v10524_v10 }
 0x2b3   : > { %7523 = vmatpush3.msra.mxu0 %v6788_v0  ;;  %7524 = vmatprep.mubr.msk.f32.mxu0 %vm1757_vm7, %v9386_v45  ;;  %v7886_v45 = vpack.c.bf16 %v6801_v9, %v6800_v47  ;;  %v8406_v0 = vmov 4  }
 0x2b4   : > { %7883 = vmatprep.subr.bf16.mxu0 %v7882_v53  ;;  %8174 = vset.pattern.permute.xlu0 %v8406_v0 }
 0x2b6   : > { %7525 = vmatmul.mubr.msk.f32.vlgmr.msra.gmra.mrb[20].mxu0 %vm1757_vm7, %v9411_v50  ;;  %v6807_v50 = vld [vmem:[%s10436_s8 + $0x90] sm:$0xff] }
 0x2b7   : > { %7885 = vmatpush3.bf16.msra.mxu0 %v7882_v53  ;;  %7527 = vmatprep.mubr.msk.f32.mxu0 %vm1757_vm7, %v9421_v15  ;;  %v6808_v15 = vld [vmem:[%s10436_s8 + $0x98] sm:$0xff] }
 0x2b8   : > { %7534 = vmatprep.subr.mxu0 %v6795_v32  ;;  %v7890_v27 = vpack.c.bf16 %v6808_v15, %v6807_v50 }
 0x2ba   : > { %7528 = vmatmul.mubr.msk.f32.gmra.mrb[22].mxu0 %vm1757_vm7, %v10525_v17 }
 0x2bb   : > { %7535 = vmatpush3.msra.mxu0 %v6795_v32  ;;  %7536 = vmatprep.mubr.msk.f32.mxu0 %vm1757_vm7, %v9435_v62  ;;  %v10526_v62 = vrot.slane %v9415_v25, 6 }
 0x2bc   : > { %7887 = vmatprep.subr.bf16.mxu0 %v7886_v45 }
 0x2be   : > { %7537 = vmatmul.mubr.msk.f32.vlgmr.msra.gmra.mrb[20].mxu0 %vm1757_vm7, %v9438_v59  ;;  %v6814_v59 = vld [vmem:[%s10436_s8 + $0xa8] sm:$0xff] }
 0x2bf   : > { %7889 = vmatpush3.bf16.msra.mxu0 %v7886_v45  ;;  %7539 = vmatprep.mubr.msk.f32.mxu0 %vm1757_vm7, %v9446_v40  ;;  %v6815_v40 = vld [vmem:[%s10436_s8 + $0xb0] sm:$0xff] }
 0x2c0   : > { %7546 = vmatprep.subr.mxu0 %v6802_v33  ;;  %v7894_v25 = vpack.c.bf16 %v6815_v40, %v6814_v59 }
 0x2c2   : > { %7540 = vmatmul.mubr.msk.f32.gmra.mrb[22].mxu0 %vm1757_vm7, %v10526_v62 }
 0x2c3   : > { %7547 = vmatpush3.msra.mxu0 %v6802_v33  ;;  %7548 = vmatprep.mubr.msk.f32.mxu0 %vm1757_vm7, %v9455_v55  ;;  %v10527_v55 = vrot.slane %v9431_v46, 7  ;;  %v3681_v46 = vsel %vm1691_vm4, %v3679_v28, %v9208_v13  ;;  %v3903_v28 = vsel %vm2776_vm11, %v3901_v29, %v9271_v30  ;;  %v4047_v29 = vld [vmem:[%s10438_s10] sm:$0xff] }
 0x2c4   : > { %7891 = vmatprep.subr.bf16.mxu0 %v7890_v27 }
 0x2c6   : > { %7549 = vmatmul.mubr.msk.f32.vlgmr.msra.gmra.mrb[20].mxu0 %vm1757_vm7, %v9466_v56  ;;  %v6821_v56 = vld [vmem:[%s10436_s8 + $0xc0] sm:$0xff] }
 0x2c7   : > { %7893 = vmatpush3.bf16.msra.mxu0 %v7890_v27  ;;  %7551 = vmatprep.mubr.msk.f32.mxu0 %vm1757_vm7, %v9471_v24  ;;  %v6822_v24 = vld [vmem:[%s10436_s8 + $0xc8] sm:$0xff] }
 0x2c8   : > { %7558 = vmatprep.subr.mxu0 %v6809_v41 }
 0x2ca   : > { %7552 = vmatmul.mubr.msk.f32.gmra.mrb[22].mxu0 %vm1757_vm7, %v10527_v55 }
 0x2cb   : > { %7559 = vmatpush3.msra.mxu0 %v6809_v41  ;;  %7560 = vmatprep.mubr.msk.f32.mxu0 %vm1757_vm7, %v9486_v52  ;;  %v7898_v52 = vpack.c.bf16 %v6822_v24, %v6821_v56 }
 0x2cc   : > { %7895 = vmatprep.subr.bf16.mxu0 %v7894_v25 }
 0x2ce   : > { %7561 = vmatmul.mubr.msk.f32.vlgmr.msra.gmra.mrb[20].mxu0 %vm1757_vm7, %v9497_v39  ;;  %v6823_v39 = vld [vmem:[%s10436_s8 + $0xd0] sm:$0xff] }
 0x2cf   : > { %7897 = vmatpush3.bf16.msra.mxu0 %v7894_v25  ;;  %7563 = vmatprep.mubr.msk.f32.mxu0 %vm1757_vm7, %v3681_v46 }
 0x2d0   : > { %7570 = vmatprep.subr.mxu0 %v6816_v54 }
 0x2d2   : > { %7564 = vmatmul.mubr.msk.f32.gmra.mrb[22].mxu0 %vm1757_vm7, %v9208_v13 }
 0x2d3   : > { %7571 = vmatpush3.msra.mxu0 %v6816_v54  ;;  %7572 = vmatprep.mubr.msk.f32.mxu0 %vm1757_vm7, %v9503_v37  ;;  %v7902_v37 = vpack.c.bf16 %v6830_v11, %v6829_v8 }
 0x2d4   : > { %7899 = vmatprep.subr.bf16.mxu0 %v7898_v52 }
 0x2d5   : > { %7903 = vmatprep.subr.bf16.mxu1 %v7902_v37 }
 0x2d6   : > { %7573 = vmatmul.mubr.msk.f32.vlgmr.msra.gmra.mrb[20].mxu0 %vm1757_vm7, %v9511_v31  ;;  %v4048_v31 = vld [vmem:[%s10438_s10 + $0x8] sm:$0xff]  ;;  %7905 = vmatpush3.bf16.msra.mxu1 %v7902_v37 }
 0x2d7   : > { %7901 = vmatpush3.bf16.msra.mxu0 %v7898_v52  ;;  %7575 = vmatprep.mubr.msk.f32.mxu0 %vm1757_vm7, %v3792_v34 }
 0x2d8   : > { %7582 = vmatprep.subr.mxu0 %v6823_v39  ;;  %7594 = vmatprep.subr.mxu1 %v6831_v12 }
 0x2da   : > { %7576 = vmatmul.mubr.msk.f32.gmra.mrb[22].mxu0 %vm1757_vm7, %v9250_v5  ;;  %7595 = vmatpush3.msra.mxu1 %v6831_v12 }
 0x2db   : > { %7583 = vmatpush3.msra.mxu0 %v6823_v39  ;;  %7584 = vmatprep.mubr.msk.f32.mxu0 %vm1757_vm7, %v9515_v48  ;;  %v7906_v48 = vpack.c.bf16 %v4048_v31, %v4047_v29 }
 0x2dd   : > { %7907 = vmatprep.subr.bf16.mxu1 %v7906_v48 }
 0x2de   : > { %7585 = vmatmul.mubr.msk.f32.vlgmr.msra.gmra.mrb[20].mxu0 %vm1757_vm7, %v9520_v26  ;;  %v8405_v26 = vmov 3  }
 0x2df   : > { %7587 = vmatprep.mubr.msk.f32.mxu0 %vm1757_vm7, %v3903_v28  ;;  %8172 = vset.pattern.permute.xlu1 %v8405_v26 }
 0x2e0   : > { %5072 = vperm.xlu1 %8172, %v8273_v58  }
 0x2e2   : > { %7588 = vmatmul.mubr.msk.f32.gmra.mrb[22].mxu0 %vm1757_vm7, %v9271_v30 }
 0x2e4   : > { %8173 = vset.pattern.permute.xlu1 %v8406_v0 }
 0x2e5   : > { %5110 = vperm.xlu1 %8173, %v8273_v58  }
 0x3b1   : > { %v7586_v53 = vpop.f32.mrb[20].mxu0 }
 0x3b2   : > { %v4007_v10 = vadd.f32 %v7586_v53, %v6828_v14  ;;  %v3976_v32 = vpop.f32.mrb[21].mxu0 }
 0x3b3   : > { %v4006_v47 = vadd.f32 %v6828_v14, %v3976_v32  ;;  %v6840_v32 = vld [vmem:[%s10438_s10 + $0x30] sm:$0xff] }
 0x3b4   : > { %v4011_v9 = vadd.f32 %v4007_v10, %v8868_v2  ;;  %v10530_v2 = vld [vmem:[#allocation15_spill] sm:$0xff]  ;;  %v4049_v10 = vld [vmem:[%s10438_s10 + $0x10] sm:$0xff] }
 0x3b5   : > { %v4010_v45 = vadd.f32 %v4006_v47, %v8861_v60  ;;  %v7589_v17 = vpop.f32.mrb[22].mxu0  ;;  %v6841_v47 = vld [vmem:[%s10438_s10 + $0x38] sm:$0xff] }
 0x3b6   : > { %vm4015_vm12 = vcmp.gt.f32.partialorder %v4011_v9, 0.0  ;;  %v4019_v33 = vmul.f32 %v4011_v9, %v9308_v42  ;;  %v4009_v50 = vadd.f32 %v7589_v17, %v6828_v14  ;;  %v3986_v15 = vpop.f32.mrb[23].mxu0  ;;  %v9718_v17 = vld [vmem:[%s10511_s3] sm:$0xff] }
 0x3b7   : > { %vm4014_vm13 = vcmp.gt.f32.partialorder %v4010_v45, 0.0  ;;  %v4018_v27 = vmul.f32 %v4010_v45, %v9308_v42  ;;  %v4008_v62 = vadd.f32 %v6828_v14, %v3986_v15  ;;  %v9731_v15 = vld [vmem:[%s10511_s3 + $0x8] sm:$0xff] }
 0x3b8   : > { %v9663_v41 = vsel %vm4015_vm12, %v4011_v9, %v4019_v33  ;;  %v4013_v59 = vadd.f32 %v4009_v50, %v8864_v63 }
 0x3b9   : > { %10528 = vst [vmem:[#allocation24_spill] sm:$0xff] %v9663_v41  ;;  %v4031_v40 = vrot.slane %v9663_v41, 2  ;;  %v9667_v25 = vsel %vm4014_vm13, %v4010_v45, %v4018_v27  ;;  %v4012_v60 = vadd.f32 %v4008_v62, %v10530_v2  ;;  %v7910_v45 = vpack.c.bf16 %v6841_v47, %v6840_v32  ;;  %v9738_v62 = vld [vmem:[%s10511_s3 + $0x10] sm:$0xff]  ;;  %v6847_v2 = vld [vmem:[%s10438_s10 + $0x48] sm:$0xff] }
 0x3ba   : > { %10529 = vst [vmem:[#allocation25_spill] sm:$0xff] %v9667_v25  ;;  %v4030_v55 = vrot.slane %v9667_v25, 2  ;;  %vm4017_vm14 = vcmp.gt.f32.partialorder %v4013_v59, 0.0  ;;  %v4021_v54 = vmul.f32 %v4013_v59, %v9308_v42  ;;  %v6855_v32 = vld [vmem:[%s10438_s10 + $0x68] sm:$0xff] }
 0x3bb   : > { %vm4016_vm15 = vcmp.gt.f32.partialorder %v4012_v60, 0.0  ;;  %v4020_v56 = vmul.f32 %v4012_v60, %v9308_v42 }
 0x3bc   : > { %v9674_v24 = vsel %vm1691_vm4, %v4030_v55, %v4031_v40  ;;  %v9677_v46 = vsel %vm1691_vm4, 0.0, %v4030_v55  ;;  %v9679_v63 = vsel %vm4017_vm14, %v4013_v59, %v4021_v54 }
 0x3bd   : > { %v4035_v52 = vrot.slane %v9679_v63, 2  ;;  %v9682_v39 = vsel %vm4016_vm15, %v4012_v60, %v4020_v56  ;;  %v4050_v34 = vmul.f32 %v9677_v46, %v8857_v49  ;;  %v4051_v28 = vmul.f32 %v9674_v24, %v8872_v3  ;;  %v6848_v60 = vld [vmem:[%s10438_s10 + $0x50] sm:$0xff] }
 0x3be   : > { %v4033_v42 = vrot.slane %v9682_v39, 2  ;;  %v4043_v33 = vmul.f32 %v9718_v17, %v9677_v46  ;;  %v4259_v50 = vmul.f32 %v9677_v46, %v8908_v22  ;;  %v4044_v27 = vmul.f32 %v9731_v15, %v9674_v24 }
 0x3bf   : > { %v4062_v8 = vrot.slane %v4050_v34, 1  ;;  %v4063_v11 = vrot.slane %v4051_v28, 1  ;;  %v9760_v34 = vld [vmem:[%s10511_s3 + $0x18] sm:$0x1] }
 0x3c0   : > { %v9690_v37 = vsel %vm1691_vm4, %v4031_v40, %v4033_v42  ;;  %v4036_v12 = vsel %vm1691_vm4, %v4033_v42, %v4035_v52  ;;  %v6842_v40 = vld [vmem:[%s10438_s10 + $0x40] sm:$0xff]  ;;  %v4271_v54 = vrot.slane %v4259_v50, 2  ;;  %v7914_v42 = vpack.c.bf16 %v6848_v60, %v6847_v2 }
 0x3c1   : > { %v9694_v29 = vsel %vm1704_vm6, %v4036_v12, 0.0  ;;  %v4064_v31 = vsel %vm1704_vm6, %v4062_v8, %v4063_v11  ;;  %v4052_v26 = vmul.f32 %v9690_v37, %v8879_v6  ;;  %v4045_v59 = vmul.f32 %v9738_v62, %v9690_v37  ;;  %v10533_v60 = vld [vmem:[#allocation18_spill] sm:$0xff] }
 0x3c2   : > { %7596 = vmatprep.mubr.msk.f32.mxu1 %vm1757_vm7, %v4064_v31  ;;  %v4053_v0 = vmul.f32 %v9694_v29, %v8882_v7  ;;  %v4261_v55 = vmul.f32 %v9690_v37, %v8963_v43  ;;  %v4262_v52 = vmul.f32 %v9694_v29, %v8967_v44  ;;  %v4046_v28 = vmul.f32 %v9760_v34, %v9694_v29  ;;  %v10531_v31 = vld [vmem:[#allocation16_spill] sm:$0xff] }
 0x3c3   : > { %v4065_v58 = vrot.slane %v4052_v26, 1  ;;  %v4375_v26 = vmul.f32 %v9677_v46, %v10531_v31  ;;  %v4377_v47 = vmul.f32 %v9690_v37, %v9020_v19  ;;  %v4378_v50 = vmul.f32 %v9694_v29, %v9024_v20 }
 0x3c4   : > { %v4067_v14 = vrot.slane %v4053_v0, 1  ;;  %v4274_v8 = vrot.slane %v4261_v55, 2  ;;  %v4276_v12 = vrot.slane %v4262_v52, 2  ;;  %v10532_v0 = vld [vmem:[#allocation17_spill] sm:$0xff]  ;;  %v4491_v2 = vmul.f32 %v9677_v46, %v9026_v21 }
 0x3c5   : > { %v4066_v53 = vsel %vm1704_vm6, %v4063_v11, %v4065_v58  ;;  %v4492_v55 = vmul.f32 %v9674_v24, %v10533_v60  ;;  %v6861_v52 = vld [vmem:[%s10438_s10 + $0x78] sm:$0xff] }
 0x3c6   : > { %7597 = vmatmul.mubr.msk.f32.vlgmr.msra.gmra.mrb[20].mxu1 %vm1757_vm7, %v4066_v53  ;;  %v4068_v9 = vsel %vm1704_vm6, %v4065_v58, %v4067_v14  ;;  %v4376_v58 = vmul.f32 %v9674_v24, %v10532_v0  ;;  %v6849_v53 = vld [vmem:[%s10438_s10 + $0x58] sm:$0xff] }
 0x3c7   : > { %7909 = vmatpush3.bf16.msra.mxu1 %v7906_v48  ;;  %7599 = vmatprep.mubr.msk.f32.mxu1 %vm1757_vm7, %v4068_v9  ;;  %v4260_v48 = vmul.f32 %v9674_v24, %v8939_v35  ;;  %v4277_v9 = vsel %vm1691_vm4, %v4274_v8, %v4276_v12 }
 0x3c8   : > { %7606 = vmatprep.subr.mxu1 %v4049_v10 }
 0x3c9   : > { %v4272_v56 = vrot.slane %v4260_v48, 2 }
 0x3ca   : > { %7600 = vmatmul.mubr.msk.f32.gmra.mrb[22].mxu1 %vm1757_vm7, %v4067_v14 }
 0x3cb   : > { %7607 = vmatpush3.msra.mxu1 %v4049_v10  ;;  %7608 = vmatprep.mubr.msk.f32.mxu1 %vm1757_vm7, %v4043_v33  ;;  %v4273_v11 = vsel %vm1691_vm4, %v4271_v54, %v4272_v56  ;;  %v4275_v14 = vsel %vm1691_vm4, %v4272_v56, %v4274_v8  ;;  %v6854_v10 = vld [vmem:[%s10438_s10 + $0x60] sm:$0xff]  ;;  %v4388_v33 = vrot.slane %v4376_v58, 5  ;;  %v6856_v56 = vld [vmem:[%s10438_s10 + $0x70] sm:$0xff] }
 0x3cc   : > { %7911 = vmatprep.subr.bf16.mxu1 %v7910_v45  ;;  %v7918_v48 = vpack.c.bf16 %v6855_v32, %v6854_v10  ;;  %v10535_v58 = vld [vmem:[#allocation20_spill] sm:$0xff] }
 0x3ce   : > { %7609 = vmatmul.mubr.msk.f32.vlgmr.msra.gmra.mrb[20].mxu1 %vm1757_vm7, %v4044_v27  ;;  %v4390_v27 = vrot.slane %v4377_v47, 5 }
 0x3cf   : > { %7913 = vmatpush3.bf16.msra.mxu1 %v7910_v45  ;;  %7611 = vmatprep.mubr.msk.f32.mxu1 %vm1757_vm7, %v4045_v59  ;;  %v4387_v45 = vrot.slane %v4375_v26, 5  ;;  %v4504_v26 = vrot.slane %v4492_v55, 6  ;;  %v4610_v55 = vmul.f32 %v9694_v29, %v9123_v38 }
 0x3d0   : > { %7618 = vmatprep.subr.mxu1 %v6842_v40  ;;  %v4391_v54 = vsel %vm2118_vm10, %v4388_v33, %v4390_v27 }
 0x3d1   : > { %v4389_v59 = vsel %vm2118_vm10, %v4387_v45, %v4388_v33  ;;  %v4608_v45 = vmul.f32 %v9674_v24, %v9103_v23 }
 0x3d2   : > { %7612 = vmatmul.mubr.msk.f32.gmra.mrb[22].mxu1 %vm1757_vm7, %v4046_v28  ;;  %v6862_v28 = vld [vmem:[%s10438_s10 + $0x80] sm:$0xff] }
 0x3d3   : > { %7619 = vmatpush3.msra.mxu1 %v6842_v40  ;;  %7620 = vmatprep.mubr.msk.f32.mxu1 %vm1757_vm7, %v4273_v11  ;;  %v4392_v40 = vrot.slane %v4378_v50, 5  ;;  %v6863_v50 = vld [vmem:[%s10438_s10 + $0x88] sm:$0xff] }
 0x3d4   : > { %7915 = vmatprep.subr.bf16.mxu1 %v7914_v42 }
 0x3d5   : > { %v4393_v11 = vsel %vm2118_vm10, %v4390_v27, %v4392_v40  ;;  %v4609_v27 = vmul.f32 %v9690_v37, %v9116_v36 }
 0x3d6   : > { %7621 = vmatmul.mubr.msk.f32.vlgmr.msra.gmra.mrb[20].mxu1 %vm1757_vm7, %v4275_v14  ;;  %v4494_v14 = vmul.f32 %v9694_v29, %v10535_v58 }
 0x3d7   : > { %7917 = vmatpush3.bf16.msra.mxu1 %v7914_v42  ;;  %7623 = vmatprep.mubr.msk.f32.mxu1 %vm1757_vm7, %v4277_v9  ;;  %v10534_v42 = vld [vmem:[#allocation19_spill] sm:$0xff]  ;;  %v4607_v9 = vmul.f32 %v9677_v46, %v9074_v57  ;;  %v6869_v46 = vld [vmem:[%s10438_s10 + $0x98] sm:$0xff] }
 0x3d8   : > { %7630 = vmatprep.subr.mxu1 %v6849_v53  ;;  %v4493_v8 = vmul.f32 %v9690_v37, %v10534_v42  ;;  %v4508_v47 = vrot.slane %v4494_v14, 6  ;;  %v6870_v14 = vld [vmem:[%s10438_s10 + $0xa0] sm:$0xff] }
 0x3da   : > { %7624 = vmatmul.mubr.msk.f32.gmra.mrb[22].mxu1 %vm1757_vm7, %v4276_v12  ;;  %v4503_v12 = vrot.slane %v4491_v2, 6  ;;  %v4506_v10 = vrot.slane %v4493_v8, 6  ;;  %v4620_v2 = vrot.slane %v4608_v45, 7  ;;  %v4724_v8 = vmul.f32 %v9690_v37, %v9151_v1 }
 0x3db   : > { %7631 = vmatpush3.msra.mxu1 %v6849_v53  ;;  %7632 = vmatprep.mubr.msk.f32.mxu1 %vm1757_vm7, %v4389_v59  ;;  %v7922_v53 = vpack.c.bf16 %v6862_v28, %v6861_v52  ;;  %v4624_v28 = vrot.slane %v4610_v55, 7  ;;  %v6882_v55 = vld [vmem:[%s10438_s10 + $0xc0] sm:$0xff] }
 0x3dc   : > { %7919 = vmatprep.subr.bf16.mxu1 %v7918_v48  ;;  %v4505_v32 = vsel %vm1957_vm8, %v4503_v12, %v4504_v26  ;;  %v4507_v33 = vsel %vm1957_vm8, %v4504_v26, %v4506_v10  ;;  %v4509_v59 = vsel %vm1957_vm8, %v4506_v10, %v4508_v47  ;;  %v6876_v10 = vld [vmem:[%s10438_s10 + $0xb0] sm:$0xff] }
 0x3de   : > { %7633 = vmatmul.mubr.msk.f32.vlgmr.msra.gmra.mrb[20].mxu1 %vm1757_vm7, %v4391_v54 }
 0x3df   : > { %7921 = vmatpush3.bf16.msra.mxu1 %v7918_v48  ;;  %7635 = vmatprep.mubr.msk.f32.mxu1 %vm1757_vm7, %v4393_v11  ;;  %v6868_v48 = vld [vmem:[%s10438_s10 + $0x90] sm:$0xff] }
 0x3e0   : > { %7642 = vmatprep.subr.mxu1 %v6856_v56  ;;  %v7926_v54 = vpack.c.bf16 %v6869_v46, %v6868_v48  ;;  %v10536_v11 = vld [vmem:[#allocation21_spill] sm:$0xff]  ;;  %v4835_v46 = vmul.f32 %v9690_v37, %v9195_v4 }
 0x3e1   : > { %v4723_v12 = vmul.f32 %v9674_v24, %v10536_v11 }
 0x3e2   : > { %7636 = vmatmul.mubr.msk.f32.gmra.mrb[22].mxu1 %vm1757_vm7, %v4392_v40  ;;  %v4619_v40 = vrot.slane %v4607_v9, 7  ;;  %v4734_v9 = vrot.slane %v4724_v8, 2  ;;  %v4845_v8 = vrot.slane %v4835_v46, 3 }
 0x3e3   : > { %7643 = vmatpush3.msra.mxu1 %v6856_v56  ;;  %7644 = vmatprep.mubr.msk.f32.mxu1 %vm1757_vm7, %v4505_v32  ;;  %v4622_v56 = vrot.slane %v4609_v27, 7  ;;  %v4725_v32 = vmul.f32 %v9694_v29, %v9160_v16  ;;  %v4733_v45 = vrot.slane %v4723_v12, 2  ;;  %v10537_v27 = vld [vmem:[#allocation22_spill] sm:$0xff] }
 0x3e4   : > { %7923 = vmatprep.subr.bf16.mxu1 %v7922_v53  ;;  %v4621_v52 = vsel %vm1726_vm3, %v4619_v40, %v4620_v2 }
 0x3e5   : > { %v4623_v26 = vsel %vm1726_vm3, %v4620_v2, %v4622_v56  ;;  %v4735_v48 = vsel %vm1691_vm4, %v4733_v45, %v4734_v9  ;;  %v6877_v2 = vld [vmem:[%s10438_s10 + $0xb8] sm:$0xff]  ;;  %v4947_v45 = vmul.f32 %v9694_v29, %v9245_v61 }
 0x3e6   : > { %7645 = vmatmul.mubr.msk.f32.vlgmr.msra.gmra.mrb[20].mxu1 %vm1757_vm7, %v4507_v33 }
 0x3e7   : > { %7925 = vmatpush3.bf16.msra.mxu1 %v7922_v53  ;;  %7647 = vmatprep.mubr.msk.f32.mxu1 %vm1757_vm7, %v4509_v59  ;;  %v6875_v53 = vld [vmem:[%s10438_s10 + $0xa8] sm:$0xff]  ;;  %v4834_v59 = vmul.f32 %v9674_v24, %v10537_v27 }
 0x3e8   : > { %7654 = vmatprep.subr.mxu1 %v6863_v50  ;;  %v7930_v33 = vpack.c.bf16 %v6876_v10, %v6875_v53  ;;  %v4946_v10 = vmul.f32 %v9690_v37, %v9242_v51 }
 0x3e9   : > { %v4844_v12 = vrot.slane %v4834_v59, 3  ;;  %v6892_v59 = vld [vmem:[%s10442_s14 + $0x18] sm:$0xff] }
 0x3ea   : > { %7648 = vmatmul.mubr.msk.f32.gmra.mrb[22].mxu1 %vm1757_vm7, %v4508_v47  ;;  %v4625_v47 = vsel %vm1726_vm3, %v4622_v56, %v4624_v28  ;;  %v10538_v56 = vld [vmem:[#allocation23_spill] sm:$0xff] }
 0x3eb   : > { %7655 = vmatpush3.msra.mxu1 %v6863_v50  ;;  %7656 = vmatprep.mubr.msk.f32.mxu1 %vm1757_vm7, %v4621_v52  ;;  %v4736_v50 = vrot.slane %v4725_v32, 2  ;;  %v4836_v52 = vmul.f32 %v9694_v29, %v10538_v56  ;;  %v4846_v53 = vsel %vm2094_vm9, %v4844_v12, %v4845_v8  ;;  %v4945_v32 = vmul.f32 %v9674_v24, %v9219_v18  ;;  %v6946_v12 = vld [vmem:[%s10442_s14 + $0xc8] sm:$0xff] }
 0x3ec   : > { %7927 = vmatprep.subr.bf16.mxu1 %v7926_v54 }
 0x3ed   : > { %v4737_v40 = vsel %vm1691_vm4, %v4734_v9, %v4736_v50  ;;  %v6884_v9 = vld [vmem:[%s10438_s10 + $0xd0] sm:$0xff]  ;;  %v4955_v24 = vrot.slane %v4945_v32, 4  ;;  %v5073_v32 = vpop.permute.xlu1 %5072 }
 0x3ee   : > { %7657 = vmatmul.mubr.msk.f32.vlgmr.msra.gmra.mrb[20].mxu1 %vm1757_vm7, %v4623_v26 }
 0x3ef   : > { %7929 = vmatpush3.bf16.msra.mxu1 %v7926_v54  ;;  %7659 = vmatprep.mubr.msk.f32.mxu1 %vm1757_vm7, %v4625_v47  ;;  %v6883_v54 = vld [vmem:[%s10438_s10 + $0xc8] sm:$0xff] }
 0x3f0   : > { %7666 = vmatprep.subr.mxu1 %v6870_v14  ;;  %v7934_v26 = vpack.c.bf16 %v6883_v54, %v6882_v55  ;;  %v6894_v55 = vld [vmem:[%s10442_s14 + $0x28] sm:$0xff]  ;;  %v5142_v54 = vld [vmem:[%s10442_s14] sm:$0xff] }
 0x3f2   : > { %7660 = vmatmul.mubr.msk.f32.gmra.mrb[22].mxu1 %vm1757_vm7, %v4624_v28  ;;  %v4738_v28 = vsel %vm1691_vm4, %v4736_v50, %v9208_v13  ;;  %v4958_v50 = vrot.slane %v4947_v45, 4 }
 0x3f3   : > { %7667 = vmatpush3.msra.mxu1 %v6870_v14  ;;  %7668 = vmatprep.mubr.msk.f32.mxu1 %vm1757_vm7, %v4735_v48  ;;  %v4847_v14 = vrot.slane %v4836_v52, 3  ;;  %v5143_v52 = vld [vmem:[%s10442_s14 + $0x8] sm:$0xff] }
 0x3f4   : > { %7931 = vmatprep.subr.bf16.mxu1 %v7930_v33  ;;  %v4960_v46 = vsel %vm2776_vm11, %v4958_v50, %v9271_v30 }
 0x3f5   : > { %v4848_v47 = vsel %vm2094_vm9, %v4845_v8, %v4847_v14  ;;  %v4849_v37 = vsel %vm2094_vm9, %v4847_v14, %v9250_v5  ;;  %v6945_v8 = vld [vmem:[%s10442_s14 + $0xc0] sm:$0xff]  ;;  %v9941_v14 = vld [vmem:[%s10442_s14 + $0xd0] sm:$0xff] }
 0x3f6   : > { %7669 = vmatmul.mubr.msk.f32.vlgmr.msra.gmra.mrb[20].mxu1 %vm1757_vm7, %v4737_v40  ;;  %v6893_v40 = vld [vmem:[%s10442_s14 + $0x20] sm:$0xff] }
 0x3f7   : > { %7933 = vmatpush3.bf16.msra.mxu1 %v7930_v33  ;;  %7671 = vmatprep.mubr.msk.f32.mxu1 %vm1757_vm7, %v4738_v28  ;;  %v4956_v33 = vrot.slane %v4946_v10, 4  ;;  %v9925_v28 = vpack.c.bf16 %v5143_v52, %v5142_v54 }
 0x3f8   : > { %7678 = vmatprep.subr.mxu1 %v6877_v2 }
 0x3f9   : > { %v4957_v48 = vsel %vm2776_vm11, %v4955_v24, %v4956_v33  ;;  %v4959_v29 = vsel %vm2776_vm11, %v4956_v33, %v4958_v50  ;;  %v6890_v33 = vld [vmem:[%s10440_s12] ss:$0 sm:$0xff] }
 0x3fa   : > { %7672 = vmatmul.mubr.msk.f32.gmra.mrb[22].mxu1 %vm1757_vm7, %v9208_v13 }
 0x3fb   : > { %7679 = vmatpush3.msra.mxu1 %v6877_v2  ;;  %7680 = vmatprep.mubr.msk.f32.mxu1 %vm1757_vm7, %v4846_v53  ;;  %v7938_v2 = vpack.c.bf16 %v6893_v40, %v6892_v59  ;;  %v6889_v53 = vld [vmem:[%s10439_s11] ss:$0 sm:$0xff] }
 0x3fc   : > { %7935 = vmatprep.subr.bf16.mxu1 %v7934_v26 }
 0x3fd   : > { %7939 = vmatprep.subr.bf16.mxu0 %v7938_v2 }
 0x3fe   : > { %7681 = vmatmul.mubr.msk.f32.vlgmr.msra.gmra.mrb[20].mxu1 %vm1757_vm7, %v4848_v47  ;;  %7941 = vmatpush3.bf16.msra.mxu0 %v7938_v2 }
 0x3ff   : > { %7937 = vmatpush3.bf16.msra.mxu1 %v7934_v26  ;;  %7683 = vmatprep.mubr.msk.f32.mxu1 %vm1757_vm7, %v4849_v37  ;;  %v9934_v26 = vpack.c.bf16 %v6946_v12, %v6945_v8  ;;  %v9954_v8 = vpop.permute.xlu1 %5110 }
 0x400   : > { %7690 = vmatprep.subr.mxu1 %v6884_v9  ;;  %7702 = vmatprep.subr.mxu0 %v6894_v55 }
 0x402   : > { %7684 = vmatmul.mubr.msk.f32.gmra.mrb[22].mxu1 %vm1757_vm7, %v9250_v5  ;;  %7703 = vmatpush3.msra.mxu0 %v6894_v55 }
 0x403   : > { %7691 = vmatpush3.msra.mxu1 %v6884_v9  ;;  %7692 = vmatprep.mubr.msk.f32.mxu1 %vm1757_vm7, %v4957_v48 }
 0x404   : > { %7943 = vmatprep.subr.bf16.mxu0 %v9925_v28  ;;  %7982 = vmatprep.subr.bf16.mxu1 %v9934_v26 }
 0x406   : > { %7693 = vmatmul.mubr.msk.f32.vlgmr.msra.gmra.mrb[20].mxu1 %vm1757_vm7, %v4959_v29 }
 0x407   : > { %7695 = vmatprep.mubr.msk.f32.mxu1 %vm1757_vm7, %v4960_v46  ;;  %7984 = vmatpush3.bf16.msra.mxu1 %v9934_v26  ;;  %v6891_v46 = vld [vmem:[%s10441_s13] ss:$0 sm:$0xff] }
 0x408   : > { %7983 = vmatprep.subr.mxu1 %v9941_v14 }
 0x40a   : > { %7696 = vmatmul.mubr.msk.f32.gmra.mrb[22].mxu1 %vm1757_vm7, %v9271_v30 }
 0x40b   : > { %7985 = vmatpush3.msra.mxu1 %v9941_v14 }
 0x4d9   : > { %v7694_v10 = vpop.f32.mrb[20].mxu1 }
 0x4da   : > { %v5064_v47 = vadd.f32 %v7694_v10, %v6889_v53  ;;  %v5033_v9 = vpop.f32.mrb[21].mxu1 }
 0x4db   : > { %v5063_v45 = vadd.f32 %v6889_v53, %v5033_v9 }
 0x4dc   : > { %vm5068_vm0 = vcmp.gt.f32.partialorder %v5064_v47, 0.0  ;;  %v5076_v37 = vmul.f32 %v5073_v32, %v5064_v47 }
 0x4dd   : > { %vm5067_vm1 = vcmp.gt.f32.partialorder %v5063_v45, 0.0  ;;  %v5075_v24 = vmul.f32 %v5073_v32, %v5063_v45  ;;  %v7697_v50 = vpop.f32.mrb[22].mxu1 }
 0x4de   : > { %v5080_v48 = vsel %vm5068_vm0, %v5064_v47, %v5076_v37  ;;  %v5066_v29 = vadd.f32 %v7697_v50, %v6889_v53  ;;  %v5043_v59 = vpop.f32.mrb[23].mxu1 }
 0x4df   : > { %v5079_v40 = vsel %vm5067_vm1, %v5063_v45, %v5075_v24  ;;  %v5091_v2 = vmul.f32 %v6890_v33, %v5080_v48  ;;  %v5065_v55 = vadd.f32 %v6889_v53, %v5043_v59  ;;  %v6903_v48 = vld [vmem:[%s10442_s14 + $0x30] sm:$0xff] }
 0x4e0   : > { %vm5070_vm2 = vcmp.gt.f32.partialorder %v5066_v29, 0.0  ;;  %v5078_v54 = vmul.f32 %v5073_v32, %v5066_v29  ;;  %v5090_v52 = vmul.f32 %v6890_v33, %v5079_v40 }
 0x4e1   : > { %v5102_v12 = vadd.f32 %v6891_v46, %v5091_v2  ;;  %vm5069_vm5 = vcmp.gt.f32.partialorder %v5065_v55, 0.0  ;;  %v5077_v10 = vmul.f32 %v5073_v32, %v5065_v55  ;;  %v6904_v32 = vld [vmem:[%s10442_s14 + $0x38] sm:$0xff]  ;;  %v6910_v2 = vld [vmem:[%s10442_s14 + $0x48] sm:$0xff] }
 0x4e2   : > { %v5082_v9 = vsel %vm5070_vm2, %v5066_v29, %v5078_v54  ;;  %v5101_v25 = vadd.f32 %v6891_v46, %v5090_v52 }
 0x4e3   : > { %v5093_v47 = vmul.f32 %v6890_v33, %v5082_v9  ;;  %vm5106_vm12 = vcmp.gt.f32.partialorder %v5102_v12, 0.0  ;;  %v5081_v37 = vsel %vm5069_vm5, %v5065_v55, %v5077_v10  ;;  %v5114_v50 = vmul.f32 %v9954_v8, %v5102_v12 }
 0x4e4   : > { %vm5105_vm13 = vcmp.gt.f32.partialorder %v5101_v25, 0.0  ;;  %v5092_v41 = vmul.f32 %v6890_v33, %v5081_v37  ;;  %v5113_v45 = vmul.f32 %v9954_v8, %v5101_v25  ;;  %v6911_v33 = vld [vmem:[%s10442_s14 + $0x50] sm:$0xff] }
 0x4e5   : > { %v5104_v53 = vadd.f32 %v6891_v46, %v5093_v47  ;;  %v5118_v24 = vsel %vm5106_vm12, %v5102_v12, %v5114_v50  ;;  %v9972_v12 = vpack.c.bf16 %v6904_v32, %v6903_v48  ;;  %v9978_v10 = vpack.c.bf16 %v6911_v33, %v6910_v2 }
 0x4e6   : > { %v5103_v29 = vadd.f32 %v6891_v46, %v5092_v41  ;;  %v5126_v59 = vrot.slane %v5118_v24, 2  ;;  %v5117_v40 = vsel %vm5105_vm13, %v5101_v25, %v5113_v45 }
 0x4e7   : > { %vm5108_vm14 = vcmp.gt.f32.partialorder %v5104_v53, 0.0  ;;  %v5116_v55 = vmul.f32 %v9954_v8, %v5104_v53  ;;  %v5125_v54 = vrot.slane %v5117_v40, 2 }
 0x4e8   : > { %vm5107_vm15 = vcmp.gt.f32.partialorder %v5103_v29, 0.0  ;;  %v5115_v52 = vmul.f32 %v9954_v8, %v5103_v29 }
 0x4e9   : > { %v5120_v41 = vsel %vm5108_vm14, %v5104_v53, %v5116_v55  ;;  %v9975_v25 = vsel %vm1691_vm4, %v5125_v54, %v5126_v59  ;;  %v5136_v46 = vsel %vm1691_vm4, 0.0, %v5125_v54 }
 0x4ea   : > { %v5119_v9 = vsel %vm5107_vm15, %v5103_v29, %v5115_v52  ;;  %v5130_v47 = vrot.slane %v5120_v41, 2  ;;  %v5145_v37 = vmul.f32 %v5136_v46, %v8857_v49  ;;  %v5146_v50 = vmul.f32 %v9975_v25, %v8872_v3 }
 0x4eb   : > { %v5128_v45 = vrot.slane %v5119_v9, 2  ;;  %v5138_v24 = vmul.f32 %v9718_v17, %v5136_v46  ;;  %v9986_v53 = vmul.f32 %v9731_v15, %v9975_v25  ;;  %v5354_v48 = vmul.f32 %v5136_v46, %v8908_v22 }
 0x4ec   : > { %v5157_v32 = vrot.slane %v5145_v37, 1  ;;  %v5158_v40 = vrot.slane %v5146_v50, 1  ;;  %v5355_v29 = vmul.f32 %v9975_v25, %v8939_v35  ;;  %v5470_v2 = vmul.f32 %v5136_v46, %v10531_v31  ;;  %v5144_v37 = vld [vmem:[%s10442_s14 + $0x10] sm:$0xff] }
 0x4ed   : > { %v9993_v49 = vsel %vm1691_vm4, %v5126_v59, %v5128_v45  ;;  %v5131_v3 = vsel %vm1691_vm4, %v5128_v45, %v5130_v47  ;;  %v5366_v33 = vrot.slane %v5354_v48, 2  ;;  %v5471_v17 = vmul.f32 %v9975_v25, %v10532_v0 }
 0x4ee   : > { %v9999_v15 = vsel %vm1704_vm6, %v5131_v3, 0.0  ;;  %v5159_v22 = vsel %vm1704_vm6, %v5157_v32, %v5158_v40  ;;  %v5147_v55 = vmul.f32 %v9993_v49, %v8879_v6  ;;  %v10006_v35 = vmul.f32 %v9738_v62, %v9993_v49 }
 0x4ef   : > { %7704 = vmatprep.mubr.msk.f32.mxu0 %vm1757_vm7, %v5159_v22  ;;  %v5148_v31 = vmul.f32 %v9999_v15, %v8882_v7  ;;  %v10013_v0 = vmul.f32 %v9999_v15, %v9245_v61  ;;  %v10017_v59 = vmul.f32 %v9760_v34, %v9999_v15  ;;  %v5367_v54 = vrot.slane %v5355_v29, 2 }
 0x4f0   : > { %v5160_v52 = vrot.slane %v5147_v55, 1  ;;  %v5356_v6 = vmul.f32 %v9993_v49, %v8963_v43  ;;  %v10023_v62 = vmul.f32 %v9999_v15, %v8967_v44  ;;  %v5482_v41 = vrot.slane %v5470_v2, 5 }
 0x4f1   : > { %v5162_v9 = vrot.slane %v5148_v31, 1  ;;  %v6053_v7 = vrot.slane %v10013_v0, 4  ;;  %v10027_v61 = vsel %vm1691_vm4, %v5366_v33, %v5367_v54  ;;  %v5483_v47 = vrot.slane %v5471_v17, 5  ;;  %v6919_v0 = vld [vmem:[%s10442_s14 + $0x70] sm:$0xff] }
 0x4f2   : > { %v5161_v34 = vsel %vm1704_vm6, %v5158_v40, %v5160_v52  ;;  %v5369_v50 = vrot.slane %v5356_v6, 2  ;;  %v5371_v43 = vrot.slane %v10023_v62, 2  ;;  %v5472_v44 = vmul.f32 %v9993_v49, %v9020_v19 }
 0x4f3   : > { %7705 = vmatmul.mubr.msk.f32.vlgmr.msra.gmra.mrb[24].mxu0 %vm1757_vm7, %v5161_v34  ;;  %v5163_v45 = vsel %vm1704_vm6, %v5160_v52, %v5162_v9  ;;  %v6055_v48 = vsel %vm2776_vm11, %v6053_v7, %v9271_v30  ;;  %v10043_v32 = vsel %vm2118_vm10, %v5482_v41, %v5483_v47  ;;  %v10047_v40 = vmul.f32 %v9999_v15, %v9024_v20 }
 0x4f4   : > { %7945 = vmatpush3.bf16.msra.mxu0 %v9925_v28  ;;  %7707 = vmatprep.mubr.msk.f32.mxu0 %vm1757_vm7, %v5163_v45  ;;  %v10052_v19 = vsel %vm1691_vm4, %v5367_v54, %v5369_v50  ;;  %v10057_v29 = vsel %vm1691_vm4, %v5369_v50, %v5371_v43  ;;  %v5485_v2 = vrot.slane %v5472_v44, 5  ;;  %v5586_v3 = vmul.f32 %v5136_v46, %v9026_v21 }
 0x4f5   : > { %7803 = vmatprep.mubr.msk.f32.mxu1 %vm1757_vm7, %v6055_v48  ;;  %7714 = vmatprep.subr.mxu0 %v5144_v37  ;;  %v5487_v20 = vrot.slane %v10047_v40, 5  ;;  %v5587_v28 = vmul.f32 %v9975_v25, %v10533_v60  ;;  %v5588_v33 = vmul.f32 %v9993_v49, %v10534_v42  ;;  %v10068_v17 = vmul.f32 %v9999_v15, %v10535_v58 }
 0x4f6   : > { %v10071_v22 = vsel %vm2118_vm10, %v5483_v47, %v5485_v2  ;;  %v5598_v55 = vrot.slane %v5586_v3, 6  ;;  %v5702_v21 = vmul.f32 %v5136_v46, %v9074_v57  ;;  %v5703_v31 = vmul.f32 %v9975_v25, %v9103_v23  ;;  %7804 = vmatmul.mubr.msk.f32.vlgmr.msra.gmra.mrb[24].mxu1 %vm1757_vm7, %v9271_v30 }
 0x4f7   : > { %7708 = vmatmul.mubr.msk.f32.gmra.mrb[26].mxu0 %vm1757_vm7, %v5162_v9  ;;  %v10082_v60 = vsel %vm2118_vm10, %v5485_v2, %v5487_v20  ;;  %v5599_v42 = vrot.slane %v5587_v28, 6  ;;  %v5601_v58 = vrot.slane %v5588_v33, 6  ;;  %v5603_v54 = vrot.slane %v10068_v17, 6 }
 0x4f8   : > { %7715 = vmatpush3.msra.mxu0 %v5144_v37  ;;  %7716 = vmatprep.mubr.msk.f32.mxu0 %vm1757_vm7, %v5138_v24  ;;  %v5714_v57 = vrot.slane %v5702_v21, 7  ;;  %v5715_v46 = vrot.slane %v5703_v31, 7  ;;  %v5704_v23 = vmul.f32 %v9993_v49, %v9116_v36  ;;  %v10090_v30 = vmul.f32 %v9999_v15, %v9123_v38  ;;  %v6905_v36 = vld [vmem:[%s10442_s14 + $0x40] sm:$0xff]  ;;  %v6940_v21 = vld [vmem:[%s10442_s14 + $0xb8] sm:$0xff] }
 0x4f9   : > { %7947 = vmatprep.subr.bf16.mxu0 %v9972_v12  ;;  %v5600_v52 = vsel %vm1957_vm8, %v5598_v55, %v5599_v42  ;;  %v10095_v6 = vsel %vm1957_vm8, %v5599_v42, %v5601_v58  ;;  %v10100_v24 = vsel %vm1957_vm8, %v5601_v58, %v5603_v54  ;;  %v5818_v41 = vmul.f32 %v9975_v25, %v10536_v11  ;;  %v6279_v58 = vld [vmem:[%s10446_s18 + $0x8] sm:$0xff] }
 0x4fa   : > { %v10108_v38 = vsel %vm1726_vm3, %v5714_v57, %v5715_v46  ;;  %v5717_v9 = vrot.slane %v5704_v23, 7  ;;  %v5719_v47 = vrot.slane %v10090_v30, 7  ;;  %v5819_v34 = vmul.f32 %v9993_v49, %v9151_v1  ;;  %v6952_v30 = vld [vmem:[%s10443_s15] ss:$0 sm:$0xff] }
 0x4fb   : > { %7717 = vmatmul.mubr.msk.f32.vlgmr.msra.gmra.mrb[24].mxu0 %vm1757_vm7, %v9986_v53  ;;  %v5828_v37 = vrot.slane %v5818_v41, 2  ;;  %v10117_v11 = vmul.f32 %v9999_v15, %v9160_v16  ;;  %v5929_v50 = vmul.f32 %v9975_v25, %v10537_v27  ;;  %v5930_v44 = vmul.f32 %v9993_v49, %v9195_v4 }
 0x4fc   : > { %7949 = vmatpush3.bf16.msra.mxu0 %v9972_v12  ;;  %7719 = vmatprep.mubr.msk.f32.mxu0 %vm1757_vm7, %v10006_v35  ;;  %v5718_v1 = vsel %vm1726_vm3, %v5715_v46, %v5717_v9  ;;  %v10130_v53 = vsel %vm1726_vm3, %v5717_v9, %v5719_v47  ;;  %v5829_v16 = vrot.slane %v5819_v34, 2  ;;  %v10134_v45 = vmul.f32 %v9999_v15, %v10538_v56 }
 0x4fd   : > { %7726 = vmatprep.subr.mxu0 %v6905_v36  ;;  %v5831_v4 = vrot.slane %v10117_v11, 2  ;;  %v5939_v27 = vrot.slane %v5929_v50, 3  ;;  %v5940_v12 = vrot.slane %v5930_v44, 3  ;;  %v6040_v35 = vmul.f32 %v9975_v25, %v9219_v18  ;;  %v10539_v50 = vld [vmem:[#allocation24_spill] sm:$0xff] }
 0x4fe   : > { %v5830_v48 = vsel %vm1691_vm4, %v5828_v37, %v5829_v16  ;;  %v5942_v2 = vrot.slane %v10134_v45, 3  ;;  %v6041_v3 = vmul.f32 %v9993_v49, %v9242_v51  ;;  %v6912_v49 = vld [vmem:[%s10442_s14 + $0x58] sm:$0xff] }
 0x4ff   : > { %7720 = vmatmul.mubr.msk.f32.gmra.mrb[26].mxu0 %vm1757_vm7, %v10017_v59  ;;  %v5832_v56 = vsel %vm1691_vm4, %v5829_v16, %v5831_v4  ;;  %v10149_v15 = vsel %vm2094_vm9, %v5939_v27, %v5940_v12  ;;  %v6050_v51 = vrot.slane %v6040_v35, 4  ;;  %v6917_v59 = vld [vmem:[%s10442_s14 + $0x60] sm:$0xff]  ;;  %v5833_v31 = vsel %vm1691_vm4, %v5831_v4, %v9208_v13 }
 0x500   : > { %7727 = vmatpush3.msra.mxu0 %v6905_v36  ;;  %7728 = vmatprep.mubr.msk.f32.mxu0 %vm1757_vm7, %v10027_v61  ;;  %v10156_v18 = vsel %vm2094_vm9, %v5940_v12, %v5942_v2  ;;  %v6051_v25 = vrot.slane %v6041_v3, 4  ;;  %v6918_v61 = vld [vmem:[%s10442_s14 + $0x68] sm:$0xff] }
 0x501   : > { %7951 = vmatprep.subr.bf16.mxu0 %v9978_v10  ;;  %v7954_v55 = vpack.c.bf16 %v6918_v61, %v6917_v59 }
 0x502   : > { %v10169_v28 = vsel %vm2776_vm11, %v6050_v51, %v6051_v25  ;;  %v10174_v33 = vsel %vm2776_vm11, %v6051_v25, %v6053_v7  ;;  %v6925_v7 = vld [vmem:[%s10442_s14 + $0x80] sm:$0xff] }
 0x503   : > { %7729 = vmatmul.mubr.msk.f32.vlgmr.msra.gmra.mrb[24].mxu0 %vm1757_vm7, %v10052_v19  ;;  %v6932_v19 = vld [vmem:[%s10442_s14 + $0x98] sm:$0xff] }
 0x504   : > { %7953 = vmatpush3.bf16.msra.mxu0 %v9978_v10  ;;  %7731 = vmatprep.mubr.msk.f32.mxu0 %vm1757_vm7, %v10057_v29  ;;  %v6924_v10 = vld [vmem:[%s10442_s14 + $0x78] sm:$0xff]  ;;  %v6933_v29 = vld [vmem:[%s10442_s14 + $0xa0] sm:$0xff] }
 0x505   : > { %7738 = vmatprep.subr.mxu0 %v6912_v49  ;;  %v7958_v62 = vpack.c.bf16 %v6925_v7, %v6924_v10 }
 0x507   : > { %7732 = vmatmul.mubr.msk.f32.gmra.mrb[26].mxu0 %vm1757_vm7, %v5371_v43  ;;  %v6926_v43 = vld [vmem:[%s10442_s14 + $0x88] sm:$0xff] }
 0x508   : > { %7739 = vmatpush3.msra.mxu0 %v6912_v49  ;;  %7740 = vmatprep.mubr.msk.f32.mxu0 %vm1757_vm7, %v10043_v32  ;;  %v6931_v32 = vld [vmem:[%s10442_s14 + $0x90] sm:$0xff] }
 0x509   : > { %7955 = vmatprep.subr.bf16.mxu0 %v7954_v55  ;;  %v7962_v40 = vpack.c.bf16 %v6932_v19, %v6931_v32 }
 0x50b   : > { %7741 = vmatmul.mubr.msk.f32.vlgmr.msra.gmra.mrb[24].mxu0 %vm1757_vm7, %v10071_v22  ;;  %v6939_v22 = vld [vmem:[%s10442_s14 + $0xb0] sm:$0xff] }
 0x50c   : > { %7957 = vmatpush3.bf16.msra.mxu0 %v7954_v55  ;;  %7743 = vmatprep.mubr.msk.f32.mxu0 %vm1757_vm7, %v10082_v60  ;;  %v5944_v60 = vsel %vm2094_vm9, %v5942_v2, %v9250_v5  ;;  %v6280_v2 = vld [vmem:[%s10446_s18 + $0x10] sm:$0xff]  ;;  %vm6371_vm9 = vcmask 188416  }
 0x50d   : > { %7750 = vmatprep.subr.mxu0 %v6919_v0 }
 0x50f   : > { %7744 = vmatmul.mubr.msk.f32.gmra.mrb[26].mxu0 %vm1757_vm7, %v5487_v20  ;;  %v6938_v20 = vld [vmem:[%s10442_s14 + $0xa8] sm:$0xff] }
 0x510   : > { %7751 = vmatpush3.msra.mxu0 %v6919_v0  ;;  %7752 = vmatprep.mubr.msk.f32.mxu0 %vm1757_vm7, %v5600_v52  ;;  %v7966_v17 = vpack.c.bf16 %v6939_v22, %v6938_v20 }
 0x511   : > { %7959 = vmatprep.subr.bf16.mxu0 %v7958_v62 }
 0x513   : > { %7753 = vmatmul.mubr.msk.f32.vlgmr.msra.gmra.mrb[24].mxu0 %vm1757_vm7, %v10095_v6 }
 0x514   : > { %7961 = vmatpush3.bf16.msra.mxu0 %v7958_v62  ;;  %7755 = vmatprep.mubr.msk.f32.mxu0 %vm1757_vm7, %v10100_v24 }
 0x515   : > { %7762 = vmatprep.subr.mxu0 %v6926_v43 }
 0x517   : > { %7756 = vmatmul.mubr.msk.f32.gmra.mrb[26].mxu0 %vm1757_vm7, %v5603_v54 }
 0x518   : > { %7763 = vmatpush3.msra.mxu0 %v6926_v43  ;;  %7764 = vmatprep.mubr.msk.f32.mxu0 %vm1757_vm7, %v10108_v38 }
 0x519   : > { %7963 = vmatprep.subr.bf16.mxu0 %v7962_v40 }
 0x51b   : > { %7765 = vmatmul.mubr.msk.f32.vlgmr.msra.gmra.mrb[24].mxu0 %vm1757_vm7, %v5718_v1  ;;  %v10540_v1 = vld [vmem:[#allocation25_spill] sm:$0xff] }
 0x51c   : > { %7965 = vmatpush3.bf16.msra.mxu0 %v7962_v40  ;;  %7767 = vmatprep.mubr.msk.f32.mxu0 %vm1757_vm7, %v10130_v53 }
 0x51d   : > { %7774 = vmatprep.subr.mxu0 %v6933_v29 }
 0x51f   : > { %7768 = vmatmul.mubr.msk.f32.gmra.mrb[26].mxu0 %vm1757_vm7, %v5719_v47 }
 0x520   : > { %7775 = vmatpush3.msra.mxu0 %v6933_v29  ;;  %7776 = vmatprep.mubr.msk.f32.mxu0 %vm1757_vm7, %v5830_v48 }
 0x521   : > { %7967 = vmatprep.subr.bf16.mxu0 %v7966_v17 }
 0x523   : > { %7777 = vmatmul.mubr.msk.f32.vlgmr.msra.gmra.mrb[24].mxu0 %vm1757_vm7, %v5832_v56 }
 0x524   : > { %7969 = vmatpush3.bf16.msra.mxu0 %v7966_v17  ;;  %7779 = vmatprep.mubr.msk.f32.mxu0 %vm1757_vm7, %v5833_v31 }
 0x525   : > { %7786 = vmatprep.subr.mxu0 %v6940_v21 }
 0x527   : > { %7780 = vmatmul.mubr.msk.f32.gmra.mrb[26].mxu0 %vm1757_vm7, %v9208_v13  ;;  %v6178_v13 = vld [vmem:[%s10444_s16] sm:$0xff] }
 0x528   : > { %7787 = vmatpush3.msra.mxu0 %v6940_v21  ;;  %7788 = vmatprep.mubr.msk.f32.mxu0 %vm1757_vm7, %v10149_v15 }
 0x529   : > { %7971 = vmatprep.subr.bf16.mxu0 %v9934_v26 }
 0x52b   : > { %7789 = vmatmul.mubr.msk.f32.vlgmr.msra.gmra.mrb[24].mxu0 %vm1757_vm7, %v10156_v18 }
 0x52c   : > { %7973 = vmatpush3.bf16.msra.mxu0 %v9934_v26  ;;  %7791 = vmatprep.mubr.msk.f32.mxu0 %vm1757_vm7, %v5944_v60  ;;  %v6179_v26 = vld [vmem:[%s10444_s16 + $0x8] sm:$0xff] }
 0x52d   : > { %7798 = vmatprep.subr.mxu0 %v9941_v14  ;;  %v7974_v42 = vpack.c.bf16 %v6179_v26, %v6178_v13 }
 0x52f   : > { %7792 = vmatmul.mubr.msk.f32.gmra.mrb[26].mxu0 %vm1757_vm7, %v9250_v5  ;;  %v6180_v5 = vld [vmem:[%s10444_s16 + $0x10] sm:$0xff]  ;;  %7975 = vmatprep.subr.bf16.mxu1 %v7974_v42 }
 0x530   : > { %7799 = vmatpush3.msra.mxu0 %v9941_v14  ;;  %7800 = vmatprep.mubr.msk.f32.mxu0 %vm1757_vm7, %v10169_v28  ;;  %v6278_v14 = vld [vmem:[%s10446_s18] sm:$0xff] }
 0x531   : > { %7977 = vmatpush3.bf16.msra.mxu1 %v7974_v42  ;;  %v7978_v54 = vpack.c.bf16 %v6279_v58, %v6278_v14 }
 0x532   : > { %7810 = vmatprep.subr.mxu1 %v6180_v5 }
 0x533   : > { %7801 = vmatmul.mubr.msk.f32.vlgmr.msra.gmra.mrb[24].mxu0 %vm1757_vm7, %v10174_v33 }
 0x535   : > { %7811 = vmatpush3.msra.mxu1 %v6180_v5 }
 0x536   : > { %7979 = vmatprep.subr.bf16.mxu1 %v7978_v54 }
 0x5c9   : > { %v7805_v57 = vpop.f32.mrb[24].mxu1 }
 0x5ca   : > { %v6138_v46 = vpop.f32.mrb[25].mxu1 }
 0x602   : > { %v7793_v23 = vpop.f32.mrb[26].mxu0 }
 0x603   : > { %v7986_v52 = vadd.f32 %v7805_v57, %v7793_v23  ;;  %v6027_v6 = vpop.f32.mrb[27].mxu0 }
 0x604   : > { %v7987_v24 = vadd.f32 %v6138_v46, %v6027_v6 }
 0x605   : > { %v6161_v41 = vadd.f32 %v7986_v52, %v6952_v30 }
 0x606   : > { %v6160_v36 = vadd.f32 %v7987_v24, %v6952_v30  ;;  %v7802_v38 = vpop.f32.mrb[24].mxu0 }
 0x607   : > { %v6159_v9 = vadd.f32 %v7802_v38, %v6952_v30  ;;  %v6128_v47 = vpop.f32.mrb[25].mxu0  ;;  %v6165_v34 = vadd.f32 %v6161_v41, %v9679_v63 }
 0x608   : > { %v6164_v37 = vadd.f32 %v6160_v36, %v9682_v39  ;;  %v6158_v11 = vadd.f32 %v6952_v30, %v6128_v47 }
 0x609   : > { %v6163_v44 = vadd.f32 %v6159_v9, %v10539_v50  ;;  %v6173_v27 = vmul.f32 %v6165_v34, %v9954_v8  ;;  %vm6169_vm8 = vcmp.gt.f32.partialorder %v6165_v34, 0.0 }
 0x60a   : > { %v6162_v53 = vadd.f32 %v6158_v11, %v10540_v1  ;;  %v6172_v16 = vmul.f32 %v6164_v37, %v9954_v8  ;;  %vm6168_vm4 = vcmp.gt.f32.partialorder %v6164_v37, 0.0 }
 0x60b   : > { %vm6167_vm3 = vcmp.gt.f32.partialorder %v6163_v44, 0.0  ;;  %v6171_v45 = vmul.f32 %v6163_v44, %v9954_v8  ;;  %v6177_v56 = vsel %vm6169_vm8, %v6165_v34, %v6173_v27 }
 0x60c   : > { %v6170_v4 = vmul.f32 %v6162_v53, %v9954_v8  ;;  %vm6166_vm6 = vcmp.gt.f32.partialorder %v6162_v53, 0.0  ;;  %v6176_v35 = vsel %vm6168_vm4, %v6164_v37, %v6172_v16  ;;  %v6372_v18 = vsel %vm6371_vm9, %v6177_v56, 0.0 }
 0x60d   : > { %v6175_v12 = vsel %vm6167_vm3, %v6163_v44, %v6171_v45  ;;  %v6369_v8 = vsel %vm1757_vm7, %v6176_v35, 0.0 }
 0x60e   : > { %v6174_v63 = vsel %vm6166_vm6, %v6162_v53, %v6170_v4  ;;  %v6367_v39 = vsel %vm1757_vm7, %v6175_v12, 0.0 }
 0x60f   : > { %7812 = vmatprep.mubr.msk.f32.mxu1 %vm1757_vm7, %v6174_v63  ;;  %v6366_v48 = vsel %vm1757_vm7, %v6174_v63, 0.0 }
 0x610   : > { %7813 = vmatmul.mubr.msk.f32.vlgmr.msra.gmra.mrb[26].mxu1 %vm1757_vm7, %v6175_v12  ;;  %v6368_v3 = vadd.f32 %v6367_v39, %v6366_v48 }
 0x611   : > { %7981 = vmatpush3.bf16.msra.mxu1 %v7978_v54  ;;  %7815 = vmatprep.mubr.msk.f32.mxu1 %vm1757_vm7, %v6176_v35 }
 0x612   : > { %v6370_v15 = vadd.f32 %v6369_v8, %v6368_v3  ;;  %7822 = vmatprep.subr.mxu1 %v6280_v2 }
 0x614   : > { %7816 = vmatmul.mubr.msk.f32.gmra.mrb[28].mxu1 %vm1757_vm7, %v6177_v56  ;;  %v6373_v51 = vadd.f32 %v6372_v18, %v6370_v15 }
 0x615   : > { %7823 = vmatpush3.msra.mxu1 %v6280_v2  ;;  %7824 = vmatprep.mubr.msk.f32.mxu1 %vm1757_vm7, %v6174_v63 }
 0x616   : > { %v6374_v25 = vrot.slane %v6373_v51, 4 }
 0x618   : > { %v6375_v49 = vadd.f32 %v6374_v25, %v6373_v51  ;;  %7825 = vmatmul.mubr.msk.f32.vlgmr.msra.gmra.mrb[30].mxu1 %vm1757_vm7, %v6175_v12 }
 0x619   : > { %7827 = vmatprep.mubr.msk.f32.mxu1 %vm1757_vm7, %v6176_v35 }
 0x61a   : > { %v6376_v59 = vrot.slane %v6375_v49, 2 }
 0x61c   : > { %7828 = vmatmul.mubr.msk.f32.gmra.mrb[32].mxu1 %vm1757_vm7, %v6177_v56  ;;  %v6377_v61 = vadd.f32 %v6376_v59, %v6375_v49 }
 0x61e   : > { %v6378_v28 = vrot.slane %v6377_v61, 1 }
 0x620   : > { %v6379_v33 = vadd.f32 %v6378_v28, %v6377_v61 }
 0x622   : > { %v6381_v55 = vmul.f32 0.04, %v6379_v33 }
 0x624   : > { %6418 = vst.msk [vmem:[%s706_s24] sm:$0x1] %vm6371_vm9, %v6381_v55 }
 0x625   : > { %8291 = shalt.err (!%p8288_p3)
}
 0x626   : > { %s8292_s24 = scalar_lea.hbm %s10320_s28, 16  ;;  %s8296_s4 = scalar_lea.hbm %s10449_s21, 32 }
 0x627   : > { %p8293_p4 = scmp.ne.s32.totalorder %s10320_s28, %s8292_s24  ;;  %p8297_p9 = scmp.lt.u32.totalorder %s10320_s28, %s10449_s21 }
 0x628   : > { %p8298_p10 = scmp.lt.u32.totalorder %s8296_s4, %s8292_s24  ;;  %p8300_p12 = scmp.lt.u32.totalorder %s8292_s24, %s10320_s28 }
 0x629   : > { %p8294_p7 = pnand %p8293_p4, %p8570_p5 }
 0x62a   : > { %p8299_p11 = por %p8298_p10, %p8297_p9 }
 0x62b   : > { %p8295_p8 = pneg %p8294_p7 }
 0x62c   : > { %p8301_p13 = por %p8300_p12, %p8299_p11 }
 0x62e   : > { %p8302_p0 = pnand %p8301_p13, %p8295_p8 }
 0x630   : > { %8305 = shalt.err (!%p8302_p0)
}
 0x631   : > { %8115 = dma.vmem_to_hbm [thread:$0]  (%p8570_p5), %s6443_s29, 16, %s10320_s28, %s6422_s27   ;;  %vm6382_vm7 = vcmask 15360   ;;  %vm6388_vm10 = vcmask 8192   ;;  %vm6400_vm11 = vcmask 31744   ;;  %vm6406_vm0 = vcmask 24576  }
 0x632   : > { %s6425_s2 = sand.u32 1, %s8551_s5   ;;  %v6398_v36 = vld [vmem:[%s10445_s17] sm:$0x1]  ;;  %s712_s29 = scalar_lea.vmem [#allocation4], %s10309_s6 }
 0x633   : > { %s6455_s27 = sshll.u32 %s712_s29, 4  ;;  %s10351_s26 = scalar_lea.hbm %s10450_s22, %s10314_s23  ;;  %s10353_s27 = int_to_ptr.vmem [resolvable:$true] %s6455_s27 }
 0x634   : > { %s10356_s5 = scalar_lea.sflag [#allocation5], %s6425_s2  ;;  %s8306_s25 = scalar_lea.vmem %s10353_s27, 16 }
 0x635   : > { %p8307_p1 = scmp.ne.s32.totalorder %s10353_s27, %s8306_s25  ;;  %s8408_s4 = smov [#allocation4]  }
 0x636   : > { %s8310_s0 = sshll.u32 %s8408_s4, 4  ;;  %s8311_s0 = int_to_ptr.vmem [resolvable:$false] %s8310_s0 }
 0x637   : > { %p8308_p2 = pnand %p8307_p1, %p8570_p5  ;;  %s8312_s3 = scalar_lea.vmem %s8311_s0, 32 }
 0x638   : > { %p8313_p4 = scmp.lt.s32.totalorder %s10353_s27, %s8311_s0  ;;  %p8314_p7 = scmp.lt.s32.totalorder %s8312_s3, %s8306_s25 }
 0x639   : > { %p8309_p3 = pneg %p8308_p2 }
 0x63a   : > { %p8315_p8 = por %p8314_p7, %p8313_p4 }
 0x63c   : > { %p8316_p9 = pnand %p8315_p8, %p8309_p3 }
 0x6e3   : > { %v7814_v0 = vpop.f32.mrb[26].mxu1 }
 0x6e4   : > { %v6384_v10 = vsel %vm6382_vm7, %v7814_v0, 0.0  ;;  %v6259_v7 = vpop.f32.mrb[27].mxu1 }
 0x6e5   : > { %v6383_v62 = vsel %vm6382_vm7, %v6259_v7, 0.0 }
 0x6e6   : > { %v6385_v43 = vadd.f32 %v6384_v10, %v6383_v62 }
 0x6e7   : > { %v7817_v32 = vpop.f32.mrb[28].mxu1 }
 0x6e8   : > { %v6269_v19 = vpop.f32.mrb[29].mxu1  ;;  %v6389_v20 = vsel %vm6388_vm10, %v7817_v32, 0.0 }
 0x6e9   : > { %v6386_v40 = vsel %vm6382_vm7, %v6269_v19, 0.0 }
 0x6ea   : > { %v6387_v29 = vadd.f32 %v6386_v40, %v6385_v43 }
 0x6eb   : > { %v7826_v22 = vpop.f32.mrb[30].mxu1 }
 0x6ec   : > { %v6390_v17 = vadd.f32 %v6389_v20, %v6387_v29  ;;  %v6402_v21 = vsel %vm6400_vm11, %v7826_v22, 0.0  ;;  %v6347_v31 = vpop.f32.mrb[31].mxu1 }
 0x6ed   : > { %v6401_v60 = vsel %vm6400_vm11, %v6347_v31, 0.0 }
 0x6ee   : > { %v6391_v13 = vrot.slane %v6390_v17, 4  ;;  %v6403_v26 = vadd.f32 %v6402_v21, %v6401_v60 }
 0x6ef   : > { %v7829_v42 = vpop.f32.mrb[32].mxu1 }
 0x6f0   : > { %v6392_v5 = vadd.f32 %v6391_v13, %v6390_v17  ;;  %v6357_v14 = vpop.f32.mrb[33].mxu1  ;;  %v6407_v46 = vsel %vm6406_vm0, %v7829_v42, 0.0 }
 0x6f1   : > { %v6404_v58 = vsel %vm6400_vm11, %v6357_v14, 0.0 }
 0x6f2   : > { %v6393_v54 = vrot.slane %v6392_v5, 2  ;;  %v6405_v57 = vadd.f32 %v6404_v58, %v6403_v26 }
 0x6f4   : > { %v6394_v23 = vadd.f32 %v6393_v54, %v6392_v5  ;;  %v6408_v30 = vadd.f32 %v6407_v46, %v6405_v57 }
 0x6f6   : > { %v6395_v52 = vrot.slane %v6394_v23, 1  ;;  %v6409_v6 = vrot.slane %v6408_v30, 4 }
 0x6f8   : > { %v6396_v24 = vadd.f32 %v6395_v52, %v6394_v23  ;;  %v6410_v41 = vadd.f32 %v6409_v6, %v6408_v30 }
 0x6fa   : > { %v6411_v38 = vrot.slane %v6410_v41, 2  ;;  %v6397_v9 = vmul.f32 0.04, %v6396_v24 }
 0x6fc   : > { %v6412_v47 = vadd.f32 %v6411_v38, %v6410_v41  ;;  %v6399_v34 = vadd.f32 %v6398_v36, %v6397_v9 }
 0x6fe   : > { %v6413_v37 = vrot.slane %v6412_v47, 1  ;;  %6419 = vst.msk [vmem:[%s712_s29] sm:$0x1] %vm6388_vm10, %v6399_v34 }
 0x6ff   : > { %8319 = shalt.err (!%p8316_p9)
}
 0x700   : > { %s8320_s2 = scalar_lea.hbm %s10351_s26, 16  ;;  %s8324_s1 = scalar_lea.hbm %s10450_s22, 32 }
 0x701   : > { %p8321_p10 = scmp.ne.s32.totalorder %s10351_s26, %s8320_s2  ;;  %p8325_p13 = scmp.lt.u32.totalorder %s10351_s26, %s10450_s22 }
 0x702   : > { %p8326_p0 = scmp.lt.u32.totalorder %s8324_s1, %s8320_s2  ;;  %p8328_p2 = scmp.lt.u32.totalorder %s8320_s2, %s10351_s26 }
 0x703   : > { %p8322_p11 = pnand %p8321_p10, %p8570_p5 }
 0x704   : > { %p8327_p1 = por %p8326_p0, %p8325_p13 }
 0x705   : > { %p8323_p12 = pneg %p8322_p11 }
 0x706   : > { %p8329_p3 = por %p8328_p2, %p8327_p1 }
 0x708   : > { %p8330_p4 = pnand %p8329_p3, %p8323_p12 }
 0x70a   : > { %8333 = shalt.err (!%p8330_p4)
}
 0x70b   : > { %8116 = dma.vmem_to_hbm [thread:$0]  (%p8570_p5), %s10353_s27, 16, %s10351_s26, %s10356_s5   ;;  %v6414_v11 = vadd.f32 %v6413_v37, %v6412_v47  ;;  %v6416_v50 = vld [vmem:[%s10447_s19] sm:$0x1] }
 0x70c   : > { %s718_s3 = scalar_lea.vmem [#allocation6], %s10309_s6  ;;  %s10541_s1 = sld [smem:[#allocation34_spill]] }
 0x70d   : > { %s6468_s28 = sshll.u32 %s718_s3, 4  ;;  %v6415_v44 = vmul.f32 0.04, %v6414_v11  ;;  %s8409_s27 = smov [#allocation6]   ;;  %s6469_s28 = int_to_ptr.vmem [resolvable:$true] %s6468_s28 }
 0x70e   : > { %s8334_s4 = scalar_lea.vmem %s6469_s28, 16  ;;  %s8338_s26 = sshll.u32 %s8409_s27, 4  ;;  %s8339_s26 = int_to_ptr.vmem [resolvable:$false] %s8338_s26 }
 0x70f   : > { %v6417_v1 = vadd.f32 %v6416_v50, %v6415_v44  ;;  %p8335_p7 = scmp.ne.s32.totalorder %s6469_s28, %s8334_s4  ;;  %s8340_s6 = scalar_lea.vmem %s8339_s26, 32 }
 0x710   : > { %p8341_p10 = scmp.lt.s32.totalorder %s6469_s28, %s8339_s26  ;;  %p8342_p11 = scmp.lt.s32.totalorder %s8340_s6, %s8334_s4 }
 0x711   : > { %6420 = vst.msk [vmem:[%s718_s3] sm:$0x1] %vm6406_vm0, %v6417_v1  ;;  %p8336_p8 = pnand %p8335_p7, %p8570_p5 }
 0x712   : > { %s10388_s24 = scalar_lea.hbm %s10541_s1, %s10314_s23  ;;  %p8343_p12 = por %p8342_p11, %p8341_p10 }
 0x713   : > { %p8337_p9 = pneg %p8336_p8 }
 0x715   : > { %p8344_p13 = pnand %p8343_p12, %p8337_p9 }
 0x717   : > { %8347 = shalt.err (!%p8344_p13)
}
 0x718   : > { %s8348_s23 = scalar_lea.hbm %s10388_s24, 16  ;;  %s8352_s3 = scalar_lea.hbm %s10541_s1, 32 }
 0x719   : > { %p8349_p0 = scmp.ne.s32.totalorder %s10388_s24, %s8348_s23  ;;  %p8353_p3 = scmp.lt.u32.totalorder %s10388_s24, %s10541_s1 }
 0x71a   : > { %p8354_p4 = scmp.lt.u32.totalorder %s8352_s3, %s8348_s23  ;;  %p8356_p8 = scmp.lt.u32.totalorder %s8348_s23, %s10388_s24 }
 0x71b   : > { %p8350_p1 = pnand %p8349_p0, %p8570_p5 }
 0x71c   : > { %p8355_p7 = por %p8354_p4, %p8353_p3 }
 0x71d   : > { %p8351_p2 = pneg %p8350_p1 }
 0x71e   : > { %p8357_p9 = por %p8356_p8, %p8355_p7 }
 0x720   : > { %p8358_p10 = pnand %p8357_p9, %p8351_p2 }
 0x722   : > { %8361 = shalt.err (!%p8358_p10)
}
 0x723   : > { %8117 = dma.vmem_to_hbm [thread:$0]  (%p8570_p5), %s6469_s28, 16, %s10388_s24, %s10356_s5  }
 0x724 PF: > { %s10542_s4 = sld [smem:[#allocation11_spill]]  ;;  %s10543_s27 = sld [smem:[#allocation9_spill]] }
 0x72a   : > { %p8131_p11 = scmp.ge.s32.totalorder %s10542_s4, 2  ;;  %s6480_s6 = sand.u32 1, %s10543_s27  }
 0x72b   : > { %s6481_s25 = scalar_lea.sflag [#allocation3], %s6480_s6 }
 0x72c   : > { %p8122_p12 = pnand %p8131_p11, %p8574_p6 }
 0x72e   : > { %8379 = dma.done.wait (!%p8122_p12), %s6481_s25, 16  }
 0x72f   : > { %8381 = vsyncadd (!%p8122_p12), %s6481_s25, 4294967280  ;;  %s10545_s23 = sadd.s32 4294967294, %s10542_s4  }
 0x730   : > { %s6488_s0 = sand.u32 1, %s10545_s23  }
 0x731   : > { %s6489_s3 = scalar_lea.sflag [#allocation5], %s6488_s0 }
 0x732   : > { %8383 = dma.done.wait (!%p8122_p12), %s6489_s3, 32  }
 0x733   : > { %8385 = vsyncadd (!%p8122_p12), %s6489_s3, 4294967264  ;;  %s10546_s25 = sld [smem:[#allocation12_spill]]  ;;  %s10547_s7 = sld [smem:[#allocation10_spill]] }
 0x734   : > { %s10548_s24 = sld [smem:[#allocation13_spill]]  ;;  %s10549_s4 = smov %s8392_s30 }
 0x739   : > { %p37_p5 = scmp.ge.s32.totalorder %s10546_s25, 4   ;;  %s10550_s30 = smov %s10547_s7 }
 0x73b   :  { %39 = sbr.rel (!%p37_p5) target bundleno = 15 (0xf), region = 211 }
 0x742   :  { %6501 = vsyncpa [#allocation3], 1 }
 0x743   :  { %6503 = vsyncpa [#allocation3 + $0x1], 1 }
 0x744   :  { %6504 = vsyncpa [#allocation5], 1 }
 0x745   :  { %6506 = vsyncpa [#allocation5 + $0x1], 1 }

</bundles_post_ra>
